<compile_context>
chip_gen: v7x
topology: tpu7x:2x2x1
jax: 0.10.0
libtpu: 0.0.40
codegen_flags: <defaults>
</compile_context>

<pallas_src>
import jax
import jax.numpy as jnp
from jax.experimental import pallas as pl
from jax.experimental.pallas import tpu as pltpu


def bottleneck3d_kernel(
    x_ref,    # (2, 2, D, Ho, Wo, N*Cin)  bf16 input; (rh, rw) parity leading, (n,c) on lanes
    w1_ref,   # (N*Cin, NWp)              bf16 block-diag conv1 weight, BN1 scale folded, lane-padded
    w2_ref,   # (9, 3*NWp, NWp)           bf16 conv2 weights; per (kh,kw) the 3 kd taps stacked on K
    w3d_ref,  # (NWp + N*Cin, N*Cin)      bf16 [conv3 ; downsample] stacked along K (BN folded)
    b1_ref,   # (1, NWp)   f32            bn1 bias (tiled over N, lane-padded)
    b2_ref,   # (1, NWp)   f32            bn2 bias
    b3d_ref,  # (1, N*Cin) f32            bn3 bias + downsample-bn bias
    o_ref,    # (D*Ho*Wo, N*Cin)          f32 lane-dense output
    a1p_ref,  # scratch (2, 2, D+2, Ho+1, Wo+1, NWp) f32: zero-padded conv1 activation,
              #   indexed (ph % 2, pw % 2, pd, ph // 2, pw // 2, lane)
):
    _, _, D, Ho, Wo, NC = x_ref.shape
    NWp = w1_ref.shape[1]
    M1 = 4 * D * Ho * Wo            # all D*H*W input positions
    M2 = D * Ho * Wo                # output positions

    # ---- conv1 (1x1x1) + bias + relu: bf16 operands, f32 MXU accumulation ----
    a1 = jnp.dot(x_ref[...].reshape(M1, NC), w1_ref[...],
                 preferred_element_type=jnp.float32)                  # (M1, NWp)
    a1 = jnp.maximum(a1 + b1_ref[...], 0.0)
    a1 = a1.reshape(2, 2, D, Ho, Wo, NWp)        # (rh, rw, d, qh, qw, lane); h=2qh+rh, w=2qw+rw

    # ---- stage zero-padded conv1 activation in the parity-leading scratch ----
    # Zero only the halo faces the conv2 taps read:
    #   pd=0 (d=-1), pd=D+1 (d=D), (rh'=0, qh'=0) i.e. ph=0 (h=-1), (rw'=0, qw'=0) i.e. pw=0.
    # Proof the remaining halo faces are never read (left stale on purpose):
    #   kh in {0,1,2} reads (rh', qh') in {(0,[0,Ho)), (1,[0,Ho)), (0,[1,Ho])}, so
    #   (rh'=1, qh'=Ho) (= ph H+1) is never read; same argument for (rw'=1, qw'=Wo).
    a1p_ref[:, :, 0:1] = jnp.zeros((2, 2, 1, Ho + 1, Wo + 1, NWp), jnp.float32)
    a1p_ref[:, :, D + 1:D + 2] = jnp.zeros((2, 2, 1, Ho + 1, Wo + 1, NWp), jnp.float32)
    a1p_ref[0:1, :, :, 0:1] = jnp.zeros((1, 2, D + 2, 1, Wo + 1, NWp), jnp.float32)
    a1p_ref[:, 0:1, :, :, 0:1] = jnp.zeros((2, 1, D + 2, Ho + 1, 1, NWp), jnp.float32)
    # interior: padded ph = h+1, so rh=0 -> (rh'=1, qh'=qh); rh=1 -> (rh'=0, qh'=qh+1); pd = d+1
    for rh in range(2):
        hp, h0 = 1 - rh, rh
        for rw in range(2):
            wp, w0 = 1 - rw, rw
            a1p_ref[hp:hp + 1, wp:wp + 1, 1:D + 1, h0:h0 + Ho, w0:w0 + Wo, :] = (
                a1[rh:rh + 1, rw:rw + 1])

    # ---- conv2 (3x3x3, stride (1,2,2), pad 1) + bias + relu -------------------
    # Tap (kd,kh,kw) reads padded (d+kd, 2h_o+kh, 2w_o+kw); in parity coords that is the
    # contiguous window [kh%2, kw%2, kd:kd+D, kh//2:kh//2+Ho, kw//2:kw//2+Wo, :].
    # Per (kh,kw) the 3 kd windows are stacked on the lane/contraction axis -> 9 dots, K=3*NWp.
    acc = None
    for kh in range(3):
        hp, h0 = kh % 2, kh // 2
        for kw in range(3):
            wp, w0 = kw % 2, kw // 2
            slab = jnp.concatenate(
                [a1p_ref[hp:hp + 1, wp:wp + 1, kd:kd + D,
                         h0:h0 + Ho, w0:w0 + Wo, :].reshape(M2, NWp)
                 for kd in range(3)], axis=-1)                        # (M2, 3*NWp)
            part = jnp.dot(slab.astype(jnp.bfloat16), w2_ref[kh * 3 + kw],
                           preferred_element_type=jnp.float32)
            acc = part if acc is None else acc + part
    a2 = jnp.maximum(acc + b2_ref[...], 0.0).astype(jnp.bfloat16)     # (M2, NWp)

    # ---- conv3 + downsample (1x1x1, BN folded) fused into ONE dot, residual in weights ----
    xs = x_ref[0:1, 0:1].reshape(M2, NC)          # stride-(2,2) subsample: even h, even w (free view)
    out = jnp.dot(jnp.concatenate([a2, xs], axis=-1), w3d_ref[...],
                  preferred_element_type=jnp.float32)                 # K = NWp + NC
    o_ref[...] = jnp.maximum(out + b3d_ref[...], 0.0)                 # lane-dense unmasked store


def fold_bn(gamma, beta, mean, var, eps=1e-5):
    s = gamma / jnp.sqrt(var + eps)
    return s, beta - mean * s


def bottleneck3d_pallas(x_ncdhw, params):
    N, Cin, D, H, W = x_ncdhw.shape
    Wd = params["w1"].shape[0]
    assert H % 2 == 0 and W % 2 == 0
    Ho, Wo = H // 2, W // 2
    NC, NW = N * Cin, N * Wd
    NWp = max(128, -(-NW // 128) * 128)      # lane-pad conv2-path width to full vregs

    s1, b1 = fold_bn(*params["bn1"])
    s2, b2 = fold_bn(*params["bn2"])
    s3, b3 = fold_bn(*params["bn3"])
    sd, bd = fold_bn(*params["bnd"])

    # BN scales folded into conv weights; weights expanded to block-diagonal form so every
    # in-kernel matmul contracts the merged (n, channel) lane axis.  All weights cast to bf16.
    eye = jnp.eye(N, dtype=jnp.float32)
    bdg = lambda w: jnp.kron(eye, w)

    w1k = bdg(params["w1"][:, :, 0, 0, 0].T * s1[None, :])                 # (NC, NW)
    w1k = jnp.pad(w1k, ((0, 0), (0, NWp - NW))).astype(jnp.bfloat16)       # (NC, NWp)

    w2t = jnp.transpose(params["w2"], (2, 3, 4, 1, 0)) * s2                # (3,3,3,Wd,Wd) [kd,kh,kw,i,o]
    w2b = jax.vmap(bdg)(w2t.reshape(27, Wd, Wd))                           # (27, NW, NW)
    w2b = jnp.pad(w2b, ((0, 0), (0, NWp - NW), (0, NWp - NW)))             # (27, NWp, NWp)
    w2g = jnp.transpose(w2b.reshape(3, 3, 3, NWp, NWp),
                        (1, 2, 0, 3, 4)).reshape(9, 3 * NWp, NWp)          # [(kh,kw), kd*NWp+i, o]
    w2g = w2g.astype(jnp.bfloat16)

    w3k = jnp.pad(bdg(params["w3"][:, :, 0, 0, 0].T * s3[None, :]),
                  ((0, NWp - NW), (0, 0)))                                 # (NWp, NC)
    wdk = bdg(params["wd"][:, :, 0, 0, 0].T * sd[None, :])                 # (NC, NC)
    w3d = jnp.concatenate([w3k, wdk], axis=0).astype(jnp.bfloat16)         # (NWp+NC, NC)

    b1t = jnp.pad(jnp.tile(b1, N), (0, NWp - NW)).reshape(1, NWp).astype(jnp.float32)
    b2t = jnp.pad(jnp.tile(b2, N), (0, NWp - NW)).reshape(1, NWp).astype(jnp.float32)
    b3dt = jnp.tile(b3 + bd, N).reshape(1, NC).astype(jnp.float32)

    # layout plumbing: NCDHW -> (rh, rw, D, Ho, Wo, N*Cin) with h = 2*qh + rh, w = 2*qw + rw
    x_k = jnp.transpose(x_ncdhw, (2, 3, 4, 0, 1)).reshape(D, Ho, 2, Wo, 2, NC)
    x_k = jnp.transpose(x_k, (2, 4, 0, 1, 3, 5)).astype(jnp.bfloat16)

    M1, M2 = 4 * D * Ho * Wo, D * Ho * Wo
    flops = 2 * (M1 * NC * NWp + 9 * M2 * 3 * NWp * NWp + M2 * (NWp + NC) * NC)
    bytes_accessed = (2 * (x_k.size + w1k.size + w2g.size + w3d.size)
                      + 4 * (b1t.size + b2t.size + b3dt.size) + 4 * M2 * NC)

    out_k = pl.pallas_call(
        bottleneck3d_kernel,
        out_shape=jax.ShapeDtypeStruct((M2, NC), jnp.float32),
        scratch_shapes=[pltpu.VMEM((2, 2, D + 2, Ho + 1, Wo + 1, NWp), jnp.float32)],
        compiler_params=pltpu.CompilerParams(vmem_limit_bytes=32 * 1024 * 1024),
        cost_estimate=pl.CostEstimate(flops=int(flops), transcendentals=0,
                                      bytes_accessed=int(bytes_accessed)),
    )(x_k, w1k, w2g, w3d, b1t, b2t, b3dt)

    out = out_k.reshape(D, Ho, Wo, N, Cin)
    return jnp.transpose(out, (3, 4, 0, 1, 2))                             # (N, Cin, D, Ho, Wo)


# ---------------- pure-JAX reference (PyTorch NCDHW semantics, strict f32) ----------------
def _conv3d(x, w, stride, pad):
    return jax.lax.conv_general_dilated(
        x, w, window_strides=stride, padding=[(p, p) for p in pad],
        dimension_numbers=("NCDHW", "OIDHW", "NCDHW"),
        precision=jax.lax.Precision.HIGHEST)


def _bn(x, sb):
    s, b = sb
    return x * s[None, :, None, None, None] + b[None, :, None, None, None]


def bottleneck3d_reference(x, params):
    s1 = fold_bn(*params["bn1"])
    s2 = fold_bn(*params["bn2"])
    s3 = fold_bn(*params["bn3"])
    sd = fold_bn(*params["bnd"])
    out = jax.nn.relu(_bn(_conv3d(x, params["w1"], (1, 1, 1), (0, 0, 0)), s1))
    out = jax.nn.relu(_bn(_conv3d(out, params["w2"], (1, 2, 2), (1, 1, 1)), s2))
    out = _bn(_conv3d(out, params["w3"], (1, 1, 1), (0, 0, 0)), s3)
    ident = _bn(_conv3d(x, params["wd"], (1, 2, 2), (0, 0, 0)), sd)
    return jax.nn.relu(out + ident)


if __name__ == "__main__":
    # Bottleneck3D(inplanes=16, planes=4, width=8); conv2 stride (1,2,2).
    # N=8, Cin=16 so that N*Cin = 128 fills the lane axis exactly.
    N, Cin, Wd = 8, 16, 8
    D, H, W = 4, 8, 8

    key = jax.random.PRNGKey(0)
    ks = jax.random.split(key, 12)

    def bn_params(k, c):
        k1, k2, k3, k4 = jax.random.split(k, 4)
        gamma = 1.0 + 0.2 * jax.random.normal(k1, (c,), jnp.float32)
        beta = 0.1 * jax.random.normal(k2, (c,), jnp.float32)
        mean = 0.1 * jax.random.normal(k3, (c,), jnp.float32)
        var = jax.random.uniform(k4, (c,), jnp.float32, 0.5, 1.5)
        return gamma, beta, mean, var

    params = {
        "w1": 0.2 * jax.random.normal(ks[0], (Wd, Cin, 1, 1, 1), jnp.float32),
        "w2": 0.2 * jax.random.normal(ks[1], (Wd, Wd, 3, 3, 3), jnp.float32),
        "w3": 0.2 * jax.random.normal(ks[2], (Cin, Wd, 1, 1, 1), jnp.float32),
        "wd": 0.2 * jax.random.normal(ks[3], (Cin, Cin, 1, 1, 1), jnp.float32),
        "bn1": bn_params(ks[4], Wd),
        "bn2": bn_params(ks[5], Wd),
        "bn3": bn_params(ks[6], Cin),
        "bnd": bn_params(ks[7], Cin),
    }
    x = jax.random.normal(ks[8], (N, Cin, D, H, W), jnp.float32)

    out = jax.block_until_ready(bottleneck3d_pallas(x, params))
    ref = jax.block_until_ready(bottleneck3d_reference(x, params))

    assert out.shape == (N, Cin, D, H // 2, W // 2), out.shape
    max_err = float(jnp.max(jnp.abs(out - ref)))
    # bf16 MXU operands (f32 accumulation) vs. a strict-f32 (HIGHEST) reference:
    # expected max-abs error ~1e-2 at these magnitudes; 5e-2 still rejects any
    # structural bug (wrong tap / parity / residual), which shows as O(1) error.
    assert max_err < 5e-2, f"max abs err {max_err}"
    print("KERNEL_OK")
</pallas_src>

<mosaic_0001>
module attributes {stable_mosaic.version = 11 : i64} {
  func.func @bottleneck3d_kernel(%arg0: memref<2x2x4x4x4x128xbf16, #tpu.memory_space<vmem>>, %arg1: memref<128x128xbf16, #tpu.memory_space<vmem>>, %arg2: memref<9x384x128xbf16, #tpu.memory_space<vmem>>, %arg3: memref<256x128xbf16, #tpu.memory_space<vmem>>, %arg4: memref<1x128xf32, #tpu.memory_space<vmem>>, %arg5: memref<1x128xf32, #tpu.memory_space<vmem>>, %arg6: memref<1x128xf32, #tpu.memory_space<vmem>>, %arg7: memref<64x128xf32, #tpu.memory_space<vmem>>, %arg8: memref<2x2x6x5x5x128xf32, #tpu.memory_space<vmem>>) attributes {dimension_semantics = [], scalar_prefetch = 0 : i64, scratch_operands = 1 : i64, tpu.core_type = #tpu.core_type<tc>} {
    %c0 = arith.constant 0 : index
    %c0_0 = arith.constant 0 : index
    %c0_1 = arith.constant 0 : index
    %c0_2 = arith.constant 0 : index
    %c0_3 = arith.constant 0 : index
    %c0_4 = arith.constant 0 : index
    %0 = vector.load %arg0[%c0, %c0_0, %c0_1, %c0_2, %c0_3, %c0_4] : memref<2x2x4x4x4x128xbf16, #tpu.memory_space<vmem>>, vector<2x2x4x4x4x128xbf16>
    %1 = vector.shape_cast %0 : vector<2x2x4x4x4x128xbf16> to vector<256x128xbf16>
    %c0_5 = arith.constant 0 : index
    %c0_6 = arith.constant 0 : index
    %2 = vector.load %arg1[%c0_5, %c0_6] : memref<128x128xbf16, #tpu.memory_space<vmem>>, vector<128x128xbf16>
    %cst = arith.constant dense<0.000000e+00> : vector<256x128xf32>
    %3 = tpu.matmul %1, %2, %cst {dimension_numbers = #tpu.dot_dimension_numbers<[1], [0], [0], [1], [0, 0, 1, 1], [], []>} : vector<256x128xbf16>, vector<128x128xbf16>, vector<256x128xf32> -> vector<256x128xf32>
    %c0_7 = arith.constant 0 : index
    %c0_8 = arith.constant 0 : index
    %4 = vector.load %arg4[%c0_7, %c0_8] : memref<1x128xf32, #tpu.memory_space<vmem>>, vector<1x128xf32>
    %5 = vector.broadcast %4 : vector<1x128xf32> to vector<256x128xf32>
    %6 = arith.addf %3, %5 : vector<256x128xf32>
    %cst_9 = arith.constant 0.000000e+00 : f32
    %7 = vector.broadcast %cst_9 : f32 to vector<256x128xf32>
    %8 = arith.maximumf %6, %7 : vector<256x128xf32>
    %9 = vector.shape_cast %8 : vector<256x128xf32> to vector<2x2x4x4x4x128xf32>
    %cst_10 = arith.constant 0.000000e+00 : f32
    %10 = vector.broadcast %cst_10 : f32 to vector<2x2x1x5x5x128xf32>
    %c0_11 = arith.constant 0 : index
    %c0_12 = arith.constant 0 : index
    %c0_13 = arith.constant 0 : index
    %c0_14 = arith.constant 0 : index
    %c0_15 = arith.constant 0 : index
    %c0_16 = arith.constant 0 : index
    %11 = vector.load %arg8[%c0_11, %c0_12, %c0_13, %c0_14, %c0_15, %c0_16] : memref<2x2x6x5x5x128xf32, #tpu.memory_space<vmem>>, vector<2x2x1x5x5x128xf32>
    tpu.vector_store %arg8[%c0_11, %c0_12, %c0_13, %c0_14, %c0_15, %c0_16], %10 {strides = array<i32>} : memref<2x2x6x5x5x128xf32, #tpu.memory_space<vmem>>, vector<2x2x1x5x5x128xf32>,
    %cst_17 = arith.constant 0.000000e+00 : f32
    %12 = vector.broadcast %cst_17 : f32 to vector<2x2x1x5x5x128xf32>
    %c0_18 = arith.constant 0 : index
    %c0_19 = arith.constant 0 : index
    %c5 = arith.constant 5 : index
    %c0_20 = arith.constant 0 : index
    %c0_21 = arith.constant 0 : index
    %c0_22 = arith.constant 0 : index
    %13 = vector.load %arg8[%c0_18, %c0_19, %c5, %c0_20, %c0_21, %c0_22] : memref<2x2x6x5x5x128xf32, #tpu.memory_space<vmem>>, vector<2x2x1x5x5x128xf32>
    tpu.vector_store %arg8[%c0_18, %c0_19, %c5, %c0_20, %c0_21, %c0_22], %12 {strides = array<i32>} : memref<2x2x6x5x5x128xf32, #tpu.memory_space<vmem>>, vector<2x2x1x5x5x128xf32>,
    %cst_23 = arith.constant 0.000000e+00 : f32
    %14 = vector.broadcast %cst_23 : f32 to vector<1x2x6x1x5x128xf32>
    %c0_24 = arith.constant 0 : index
    %c0_25 = arith.constant 0 : index
    %c0_26 = arith.constant 0 : index
    %c0_27 = arith.constant 0 : index
    %c0_28 = arith.constant 0 : index
    %c0_29 = arith.constant 0 : index
    %15 = vector.load %arg8[%c0_24, %c0_25, %c0_26, %c0_27, %c0_28, %c0_29] : memref<2x2x6x5x5x128xf32, #tpu.memory_space<vmem>>, vector<1x2x6x1x5x128xf32>
    tpu.vector_store %arg8[%c0_24, %c0_25, %c0_26, %c0_27, %c0_28, %c0_29], %14 {strides = array<i32>} : memref<2x2x6x5x5x128xf32, #tpu.memory_space<vmem>>, vector<1x2x6x1x5x128xf32>,
    %cst_30 = arith.constant 0.000000e+00 : f32
    %16 = vector.broadcast %cst_30 : f32 to vector<2x1x6x5x1x128xf32>
    %c0_31 = arith.constant 0 : index
    %c0_32 = arith.constant 0 : index
    %c0_33 = arith.constant 0 : index
    %c0_34 = arith.constant 0 : index
    %c0_35 = arith.constant 0 : index
    %c0_36 = arith.constant 0 : index
    %17 = vector.load %arg8[%c0_31, %c0_32, %c0_33, %c0_34, %c0_35, %c0_36] : memref<2x2x6x5x5x128xf32, #tpu.memory_space<vmem>>, vector<2x1x6x5x1x128xf32>
    tpu.vector_store %arg8[%c0_31, %c0_32, %c0_33, %c0_34, %c0_35, %c0_36], %16 {strides = array<i32>} : memref<2x2x6x5x5x128xf32, #tpu.memory_space<vmem>>, vector<2x1x6x5x1x128xf32>,
    %18 = vector.extract_strided_slice %9 {offsets = [0, 0, 0, 0, 0, 0], sizes = [1, 1, 4, 4, 4, 128], strides = [1, 1, 1, 1, 1, 1]} : vector<2x2x4x4x4x128xf32> to vector<1x1x4x4x4x128xf32>
    %c1 = arith.constant 1 : index
    %c1_37 = arith.constant 1 : index
    %c1_38 = arith.constant 1 : index
    %c0_39 = arith.constant 0 : index
    %c0_40 = arith.constant 0 : index
    %c0_41 = arith.constant 0 : index
    %19 = vector.load %arg8[%c1, %c1_37, %c1_38, %c0_39, %c0_40, %c0_41] : memref<2x2x6x5x5x128xf32, #tpu.memory_space<vmem>>, vector<1x1x4x4x4x128xf32>
    tpu.vector_store %arg8[%c1, %c1_37, %c1_38, %c0_39, %c0_40, %c0_41], %18 {strides = array<i32>} : memref<2x2x6x5x5x128xf32, #tpu.memory_space<vmem>>, vector<1x1x4x4x4x128xf32>,
    %20 = vector.extract_strided_slice %9 {offsets = [0, 1, 0, 0, 0, 0], sizes = [1, 1, 4, 4, 4, 128], strides = [1, 1, 1, 1, 1, 1]} : vector<2x2x4x4x4x128xf32> to vector<1x1x4x4x4x128xf32>
    %c1_42 = arith.constant 1 : index
    %c0_43 = arith.constant 0 : index
    %c1_44 = arith.constant 1 : index
    %c0_45 = arith.constant 0 : index
    %c1_46 = arith.constant 1 : index
    %c0_47 = arith.constant 0 : index
    %21 = vector.load %arg8[%c1_42, %c0_43, %c1_44, %c0_45, %c1_46, %c0_47] : memref<2x2x6x5x5x128xf32, #tpu.memory_space<vmem>>, vector<1x1x4x4x4x128xf32>
    tpu.vector_store %arg8[%c1_42, %c0_43, %c1_44, %c0_45, %c1_46, %c0_47], %20 {strides = array<i32>} : memref<2x2x6x5x5x128xf32, #tpu.memory_space<vmem>>, vector<1x1x4x4x4x128xf32>,
    %22 = vector.extract_strided_slice %9 {offsets = [1, 0, 0, 0, 0, 0], sizes = [1, 1, 4, 4, 4, 128], strides = [1, 1, 1, 1, 1, 1]} : vector<2x2x4x4x4x128xf32> to vector<1x1x4x4x4x128xf32>
    %c0_48 = arith.constant 0 : index
    %c1_49 = arith.constant 1 : index
    %c1_50 = arith.constant 1 : index
    %c1_51 = arith.constant 1 : index
    %c0_52 = arith.constant 0 : index
    %c0_53 = arith.constant 0 : index
    %23 = vector.load %arg8[%c0_48, %c1_49, %c1_50, %c1_51, %c0_52, %c0_53] : memref<2x2x6x5x5x128xf32, #tpu.memory_space<vmem>>, vector<1x1x4x4x4x128xf32>
    tpu.vector_store %arg8[%c0_48, %c1_49, %c1_50, %c1_51, %c0_52, %c0_53], %22 {strides = array<i32>} : memref<2x2x6x5x5x128xf32, #tpu.memory_space<vmem>>, vector<1x1x4x4x4x128xf32>,
    %24 = vector.extract_strided_slice %9 {offsets = [1, 1, 0, 0, 0, 0], sizes = [1, 1, 4, 4, 4, 128], strides = [1, 1, 1, 1, 1, 1]} : vector<2x2x4x4x4x128xf32> to vector<1x1x4x4x4x128xf32>
    %c0_54 = arith.constant 0 : index
    %c0_55 = arith.constant 0 : index
    %c1_56 = arith.constant 1 : index
    %c1_57 = arith.constant 1 : index
    %c1_58 = arith.constant 1 : index
    %c0_59 = arith.constant 0 : index
    %25 = vector.load %arg8[%c0_54, %c0_55, %c1_56, %c1_57, %c1_58, %c0_59] : memref<2x2x6x5x5x128xf32, #tpu.memory_space<vmem>>, vector<1x1x4x4x4x128xf32>
    tpu.vector_store %arg8[%c0_54, %c0_55, %c1_56, %c1_57, %c1_58, %c0_59], %24 {strides = array<i32>} : memref<2x2x6x5x5x128xf32, #tpu.memory_space<vmem>>, vector<1x1x4x4x4x128xf32>,
    %c0_60 = arith.constant 0 : index
    %c0_61 = arith.constant 0 : index
    %c0_62 = arith.constant 0 : index
    %c0_63 = arith.constant 0 : index
    %c0_64 = arith.constant 0 : index
    %c0_65 = arith.constant 0 : index
    %26 = vector.load %arg8[%c0_60, %c0_61, %c0_62, %c0_63, %c0_64, %c0_65] : memref<2x2x6x5x5x128xf32, #tpu.memory_space<vmem>>, vector<1x1x4x4x4x128xf32>
    %27 = vector.shape_cast %26 : vector<1x1x4x4x4x128xf32> to vector<64x128xf32>
    %c0_66 = arith.constant 0 : index
    %c0_67 = arith.constant 0 : index
    %c1_68 = arith.constant 1 : index
    %c0_69 = arith.constant 0 : index
    %c0_70 = arith.constant 0 : index
    %c0_71 = arith.constant 0 : index
    %28 = vector.load %arg8[%c0_66, %c0_67, %c1_68, %c0_69, %c0_70, %c0_71] : memref<2x2x6x5x5x128xf32, #tpu.memory_space<vmem>>, vector<1x1x4x4x4x128xf32>
    %29 = vector.shape_cast %28 : vector<1x1x4x4x4x128xf32> to vector<64x128xf32>
    %c0_72 = arith.constant 0 : index
    %c0_73 = arith.constant 0 : index
    %c2 = arith.constant 2 : index
    %c0_74 = arith.constant 0 : index
    %c0_75 = arith.constant 0 : index
    %c0_76 = arith.constant 0 : index
    %30 = vector.load %arg8[%c0_72, %c0_73, %c2, %c0_74, %c0_75, %c0_76] : memref<2x2x6x5x5x128xf32, #tpu.memory_space<vmem>>, vector<1x1x4x4x4x128xf32>
    %31 = vector.shape_cast %30 : vector<1x1x4x4x4x128xf32> to vector<64x128xf32>
    %32 = tpu.concatenate %27, %29, %31 in 1 : vector<64x128xf32>, vector<64x128xf32>, vector<64x128xf32> -> vector<64x384xf32>
    %33 = arith.truncf %32 : vector<64x384xf32> to vector<64x384xbf16>
    %c0_77 = arith.constant 0 : index
    %c0_78 = arith.constant 0 : index
    %c0_79 = arith.constant 0 : index
    %34 = vector.load %arg2[%c0_77, %c0_78, %c0_79] : memref<9x384x128xbf16, #tpu.memory_space<vmem>>, vector<1x384x128xbf16>
    %35 = vector.shape_cast %34 : vector<1x384x128xbf16> to vector<384x128xbf16>
    %cst_80 = arith.constant dense<0.000000e+00> : vector<64x128xf32>
    %36 = tpu.matmul %33, %35, %cst_80 {dimension_numbers = #tpu.dot_dimension_numbers<[1], [0], [0], [1], [0, 0, 1, 1], [], []>} : vector<64x384xbf16>, vector<384x128xbf16>, vector<64x128xf32> -> vector<64x128xf32>
    %c0_81 = arith.constant 0 : index
    %c1_82 = arith.constant 1 : index
    %c0_83 = arith.constant 0 : index
    %c0_84 = arith.constant 0 : index
    %c0_85 = arith.constant 0 : index
    %c0_86 = arith.constant 0 : index
    %37 = vector.load %arg8[%c0_81, %c1_82, %c0_83, %c0_84, %c0_85, %c0_86] : memref<2x2x6x5x5x128xf32, #tpu.memory_space<vmem>>, vector<1x1x4x4x4x128xf32>
    %38 = vector.shape_cast %37 : vector<1x1x4x4x4x128xf32> to vector<64x128xf32>
    %c0_87 = arith.constant 0 : index
    %c1_88 = arith.constant 1 : index
    %c1_89 = arith.constant 1 : index
    %c0_90 = arith.constant 0 : index
    %c0_91 = arith.constant 0 : index
    %c0_92 = arith.constant 0 : index
    %39 = vector.load %arg8[%c0_87, %c1_88, %c1_89, %c0_90, %c0_91, %c0_92] : memref<2x2x6x5x5x128xf32, #tpu.memory_space<vmem>>, vector<1x1x4x4x4x128xf32>
    %40 = vector.shape_cast %39 : vector<1x1x4x4x4x128xf32> to vector<64x128xf32>
    %c0_93 = arith.constant 0 : index
    %c1_94 = arith.constant 1 : index
    %c2_95 = arith.constant 2 : index
    %c0_96 = arith.constant 0 : index
    %c0_97 = arith.constant 0 : index
    %c0_98 = arith.constant 0 : index
    %41 = vector.load %arg8[%c0_93, %c1_94, %c2_95, %c0_96, %c0_97, %c0_98] : memref<2x2x6x5x5x128xf32, #tpu.memory_space<vmem>>, vector<1x1x4x4x4x128xf32>
    %42 = vector.shape_cast %41 : vector<1x1x4x4x4x128xf32> to vector<64x128xf32>
    %43 = tpu.concatenate %38, %40, %42 in 1 : vector<64x128xf32>, vector<64x128xf32>, vector<64x128xf32> -> vector<64x384xf32>
    %44 = arith.truncf %43 : vector<64x384xf32> to vector<64x384xbf16>
    %c1_99 = arith.constant 1 : index
    %c0_100 = arith.constant 0 : index
    %c0_101 = arith.constant 0 : index
    %45 = vector.load %arg2[%c1_99, %c0_100, %c0_101] : memref<9x384x128xbf16, #tpu.memory_space<vmem>>, vector<1x384x128xbf16>
    %46 = vector.shape_cast %45 : vector<1x384x128xbf16> to vector<384x128xbf16>
    %cst_102 = arith.constant dense<0.000000e+00> : vector<64x128xf32>
    %47 = tpu.matmul %44, %46, %cst_102 {dimension_numbers = #tpu.dot_dimension_numbers<[1], [0], [0], [1], [0, 0, 1, 1], [], []>} : vector<64x384xbf16>, vector<384x128xbf16>, vector<64x128xf32> -> vector<64x128xf32>
    %48 = arith.addf %36, %47 : vector<64x128xf32>
    %c0_103 = arith.constant 0 : index
    %c0_104 = arith.constant 0 : index
    %c0_105 = arith.constant 0 : index
    %c0_106 = arith.constant 0 : index
    %c1_107 = arith.constant 1 : index
    %c0_108 = arith.constant 0 : index
    %49 = vector.load %arg8[%c0_103, %c0_104, %c0_105, %c0_106, %c1_107, %c0_108] : memref<2x2x6x5x5x128xf32, #tpu.memory_space<vmem>>, vector<1x1x4x4x4x128xf32>
    %50 = vector.shape_cast %49 : vector<1x1x4x4x4x128xf32> to vector<64x128xf32>
    %c0_109 = arith.constant 0 : index
    %c0_110 = arith.constant 0 : index
    %c1_111 = arith.constant 1 : index
    %c0_112 = arith.constant 0 : index
    %c1_113 = arith.constant 1 : index
    %c0_114 = arith.constant 0 : index
    %51 = vector.load %arg8[%c0_109, %c0_110, %c1_111, %c0_112, %c1_113, %c0_114] : memref<2x2x6x5x5x128xf32, #tpu.memory_space<vmem>>, vector<1x1x4x4x4x128xf32>
    %52 = vector.shape_cast %51 : vector<1x1x4x4x4x128xf32> to vector<64x128xf32>
    %c0_115 = arith.constant 0 : index
    %c0_116 = arith.constant 0 : index
    %c2_117 = arith.constant 2 : index
    %c0_118 = arith.constant 0 : index
    %c1_119 = arith.constant 1 : index
    %c0_120 = arith.constant 0 : index
    %53 = vector.load %arg8[%c0_115, %c0_116, %c2_117, %c0_118, %c1_119, %c0_120] : memref<2x2x6x5x5x128xf32, #tpu.memory_space<vmem>>, vector<1x1x4x4x4x128xf32>
    %54 = vector.shape_cast %53 : vector<1x1x4x4x4x128xf32> to vector<64x128xf32>
    %55 = tpu.concatenate %50, %52, %54 in 1 : vector<64x128xf32>, vector<64x128xf32>, vector<64x128xf32> -> vector<64x384xf32>
    %56 = arith.truncf %55 : vector<64x384xf32> to vector<64x384xbf16>
    %c2_121 = arith.constant 2 : index
    %c0_122 = arith.constant 0 : index
    %c0_123 = arith.constant 0 : index
    %57 = vector.load %arg2[%c2_121, %c0_122, %c0_123] : memref<9x384x128xbf16, #tpu.memory_space<vmem>>, vector<1x384x128xbf16>
    %58 = vector.shape_cast %57 : vector<1x384x128xbf16> to vector<384x128xbf16>
    %cst_124 = arith.constant dense<0.000000e+00> : vector<64x128xf32>
    %59 = tpu.matmul %56, %58, %cst_124 {dimension_numbers = #tpu.dot_dimension_numbers<[1], [0], [0], [1], [0, 0, 1, 1], [], []>} : vector<64x384xbf16>, vector<384x128xbf16>, vector<64x128xf32> -> vector<64x128xf32>
    %60 = arith.addf %48, %59 : vector<64x128xf32>
    %c1_125 = arith.constant 1 : index
    %c0_126 = arith.constant 0 : index
    %c0_127 = arith.constant 0 : index
    %c0_128 = arith.constant 0 : index
    %c0_129 = arith.constant 0 : index
    %c0_130 = arith.constant 0 : index
    %61 = vector.load %arg8[%c1_125, %c0_126, %c0_127, %c0_128, %c0_129, %c0_130] : memref<2x2x6x5x5x128xf32, #tpu.memory_space<vmem>>, vector<1x1x4x4x4x128xf32>
    %62 = vector.shape_cast %61 : vector<1x1x4x4x4x128xf32> to vector<64x128xf32>
    %c1_131 = arith.constant 1 : index
    %c0_132 = arith.constant 0 : index
    %c1_133 = arith.constant 1 : index
    %c0_134 = arith.constant 0 : index
    %c0_135 = arith.constant 0 : index
    %c0_136 = arith.constant 0 : index
    %63 = vector.load %arg8[%c1_131, %c0_132, %c1_133, %c0_134, %c0_135, %c0_136] : memref<2x2x6x5x5x128xf32, #tpu.memory_space<vmem>>, vector<1x1x4x4x4x128xf32>
    %64 = vector.shape_cast %63 : vector<1x1x4x4x4x128xf32> to vector<64x128xf32>
    %c1_137 = arith.constant 1 : index
    %c0_138 = arith.constant 0 : index
    %c2_139 = arith.constant 2 : index
    %c0_140 = arith.constant 0 : index
    %c0_141 = arith.constant 0 : index
    %c0_142 = arith.constant 0 : index
    %65 = vector.load %arg8[%c1_137, %c0_138, %c2_139, %c0_140, %c0_141, %c0_142] : memref<2x2x6x5x5x128xf32, #tpu.memory_space<vmem>>, vector<1x1x4x4x4x128xf32>
    %66 = vector.shape_cast %65 : vector<1x1x4x4x4x128xf32> to vector<64x128xf32>
    %67 = tpu.concatenate %62, %64, %66 in 1 : vector<64x128xf32>, vector<64x128xf32>, vector<64x128xf32> -> vector<64x384xf32>
    %68 = arith.truncf %67 : vector<64x384xf32> to vector<64x384xbf16>
    %c3 = arith.constant 3 : index
    %c0_143 = arith.constant 0 : index
    %c0_144 = arith.constant 0 : index
    %69 = vector.load %arg2[%c3, %c0_143, %c0_144] : memref<9x384x128xbf16, #tpu.memory_space<vmem>>, vector<1x384x128xbf16>
    %70 = vector.shape_cast %69 : vector<1x384x128xbf16> to vector<384x128xbf16>
    %cst_145 = arith.constant dense<0.000000e+00> : vector<64x128xf32>
    %71 = tpu.matmul %68, %70, %cst_145 {dimension_numbers = #tpu.dot_dimension_numbers<[1], [0], [0], [1], [0, 0, 1, 1], [], []>} : vector<64x384xbf16>, vector<384x128xbf16>, vector<64x128xf32> -> vector<64x128xf32>
    %72 = arith.addf %60, %71 : vector<64x128xf32>
    %c1_146 = arith.constant 1 : index
    %c1_147 = arith.constant 1 : index
    %c0_148 = arith.constant 0 : index
    %c0_149 = arith.constant 0 : index
    %c0_150 = arith.constant 0 : index
    %c0_151 = arith.constant 0 : index
    %73 = vector.load %arg8[%c1_146, %c1_147, %c0_148, %c0_149, %c0_150, %c0_151] : memref<2x2x6x5x5x128xf32, #tpu.memory_space<vmem>>, vector<1x1x4x4x4x128xf32>
    %74 = vector.shape_cast %73 : vector<1x1x4x4x4x128xf32> to vector<64x128xf32>
    %c1_152 = arith.constant 1 : index
    %c1_153 = arith.constant 1 : index
    %c1_154 = arith.constant 1 : index
    %c0_155 = arith.constant 0 : index
    %c0_156 = arith.constant 0 : index
    %c0_157 = arith.constant 0 : index
    %75 = vector.load %arg8[%c1_152, %c1_153, %c1_154, %c0_155, %c0_156, %c0_157] : memref<2x2x6x5x5x128xf32, #tpu.memory_space<vmem>>, vector<1x1x4x4x4x128xf32>
    %76 = vector.shape_cast %75 : vector<1x1x4x4x4x128xf32> to vector<64x128xf32>
    %c1_158 = arith.constant 1 : index
    %c1_159 = arith.constant 1 : index
    %c2_160 = arith.constant 2 : index
    %c0_161 = arith.constant 0 : index
    %c0_162 = arith.constant 0 : index
    %c0_163 = arith.constant 0 : index
    %77 = vector.load %arg8[%c1_158, %c1_159, %c2_160, %c0_161, %c0_162, %c0_163] : memref<2x2x6x5x5x128xf32, #tpu.memory_space<vmem>>, vector<1x1x4x4x4x128xf32>
    %78 = vector.shape_cast %77 : vector<1x1x4x4x4x128xf32> to vector<64x128xf32>
    %79 = tpu.concatenate %74, %76, %78 in 1 : vector<64x128xf32>, vector<64x128xf32>, vector<64x128xf32> -> vector<64x384xf32>
    %80 = arith.truncf %79 : vector<64x384xf32> to vector<64x384xbf16>
    %c4 = arith.constant 4 : index
    %c0_164 = arith.constant 0 : index
    %c0_165 = arith.constant 0 : index
    %81 = vector.load %arg2[%c4, %c0_164, %c0_165] : memref<9x384x128xbf16, #tpu.memory_space<vmem>>, vector<1x384x128xbf16>
    %82 = vector.shape_cast %81 : vector<1x384x128xbf16> to vector<384x128xbf16>
    %cst_166 = arith.constant dense<0.000000e+00> : vector<64x128xf32>
    %83 = tpu.matmul %80, %82, %cst_166 {dimension_numbers = #tpu.dot_dimension_numbers<[1], [0], [0], [1], [0, 0, 1, 1], [], []>} : vector<64x384xbf16>, vector<384x128xbf16>, vector<64x128xf32> -> vector<64x128xf32>
    %84 = arith.addf %72, %83 : vector<64x128xf32>
    %c1_167 = arith.constant 1 : index
    %c0_168 = arith.constant 0 : index
    %c0_169 = arith.constant 0 : index
    %c0_170 = arith.constant 0 : index
    %c1_171 = arith.constant 1 : index
    %c0_172 = arith.constant 0 : index
    %85 = vector.load %arg8[%c1_167, %c0_168, %c0_169, %c0_170, %c1_171, %c0_172] : memref<2x2x6x5x5x128xf32, #tpu.memory_space<vmem>>, vector<1x1x4x4x4x128xf32>
    %86 = vector.shape_cast %85 : vector<1x1x4x4x4x128xf32> to vector<64x128xf32>
    %c1_173 = arith.constant 1 : index
    %c0_174 = arith.constant 0 : index
    %c1_175 = arith.constant 1 : index
    %c0_176 = arith.constant 0 : index
    %c1_177 = arith.constant 1 : index
    %c0_178 = arith.constant 0 : index
    %87 = vector.load %arg8[%c1_173, %c0_174, %c1_175, %c0_176, %c1_177, %c0_178] : memref<2x2x6x5x5x128xf32, #tpu.memory_space<vmem>>, vector<1x1x4x4x4x128xf32>
    %88 = vector.shape_cast %87 : vector<1x1x4x4x4x128xf32> to vector<64x128xf32>
    %c1_179 = arith.constant 1 : index
    %c0_180 = arith.constant 0 : index
    %c2_181 = arith.constant 2 : index
    %c0_182 = arith.constant 0 : index
    %c1_183 = arith.constant 1 : index
    %c0_184 = arith.constant 0 : index
    %89 = vector.load %arg8[%c1_179, %c0_180, %c2_181, %c0_182, %c1_183, %c0_184] : memref<2x2x6x5x5x128xf32, #tpu.memory_space<vmem>>, vector<1x1x4x4x4x128xf32>
    %90 = vector.shape_cast %89 : vector<1x1x4x4x4x128xf32> to vector<64x128xf32>
    %91 = tpu.concatenate %86, %88, %90 in 1 : vector<64x128xf32>, vector<64x128xf32>, vector<64x128xf32> -> vector<64x384xf32>
    %92 = arith.truncf %91 : vector<64x384xf32> to vector<64x384xbf16>
    %c5_185 = arith.constant 5 : index
    %c0_186 = arith.constant 0 : index
    %c0_187 = arith.constant 0 : index
    %93 = vector.load %arg2[%c5_185, %c0_186, %c0_187] : memref<9x384x128xbf16, #tpu.memory_space<vmem>>, vector<1x384x128xbf16>
    %94 = vector.shape_cast %93 : vector<1x384x128xbf16> to vector<384x128xbf16>
    %cst_188 = arith.constant dense<0.000000e+00> : vector<64x128xf32>
    %95 = tpu.matmul %92, %94, %cst_188 {dimension_numbers = #tpu.dot_dimension_numbers<[1], [0], [0], [1], [0, 0, 1, 1], [], []>} : vector<64x384xbf16>, vector<384x128xbf16>, vector<64x128xf32> -> vector<64x128xf32>
    %96 = arith.addf %84, %95 : vector<64x128xf32>
    %c0_189 = arith.constant 0 : index
    %c0_190 = arith.constant 0 : index
    %c0_191 = arith.constant 0 : index
    %c1_192 = arith.constant 1 : index
    %c0_193 = arith.constant 0 : index
    %c0_194 = arith.constant 0 : index
    %97 = vector.load %arg8[%c0_189, %c0_190, %c0_191, %c1_192, %c0_193, %c0_194] : memref<2x2x6x5x5x128xf32, #tpu.memory_space<vmem>>, vector<1x1x4x4x4x128xf32>
    %98 = vector.shape_cast %97 : vector<1x1x4x4x4x128xf32> to vector<64x128xf32>
    %c0_195 = arith.constant 0 : index
    %c0_196 = arith.constant 0 : index
    %c1_197 = arith.constant 1 : index
    %c1_198 = arith.constant 1 : index
    %c0_199 = arith.constant 0 : index
    %c0_200 = arith.constant 0 : index
    %99 = vector.load %arg8[%c0_195, %c0_196, %c1_197, %c1_198, %c0_199, %c0_200] : memref<2x2x6x5x5x128xf32, #tpu.memory_space<vmem>>, vector<1x1x4x4x4x128xf32>
    %100 = vector.shape_cast %99 : vector<1x1x4x4x4x128xf32> to vector<64x128xf32>
    %c0_201 = arith.constant 0 : index
    %c0_202 = arith.constant 0 : index
    %c2_203 = arith.constant 2 : index
    %c1_204 = arith.constant 1 : index
    %c0_205 = arith.constant 0 : index
    %c0_206 = arith.constant 0 : index
    %101 = vector.load %arg8[%c0_201, %c0_202, %c2_203, %c1_204, %c0_205, %c0_206] : memref<2x2x6x5x5x128xf32, #tpu.memory_space<vmem>>, vector<1x1x4x4x4x128xf32>
    %102 = vector.shape_cast %101 : vector<1x1x4x4x4x128xf32> to vector<64x128xf32>
    %103 = tpu.concatenate %98, %100, %102 in 1 : vector<64x128xf32>, vector<64x128xf32>, vector<64x128xf32> -> vector<64x384xf32>
    %104 = arith.truncf %103 : vector<64x384xf32> to vector<64x384xbf16>
    %c6 = arith.constant 6 : index
    %c0_207 = arith.constant 0 : index
    %c0_208 = arith.constant 0 : index
    %105 = vector.load %arg2[%c6, %c0_207, %c0_208] : memref<9x384x128xbf16, #tpu.memory_space<vmem>>, vector<1x384x128xbf16>
    %106 = vector.shape_cast %105 : vector<1x384x128xbf16> to vector<384x128xbf16>
    %cst_209 = arith.constant dense<0.000000e+00> : vector<64x128xf32>
    %107 = tpu.matmul %104, %106, %cst_209 {dimension_numbers = #tpu.dot_dimension_numbers<[1], [0], [0], [1], [0, 0, 1, 1], [], []>} : vector<64x384xbf16>, vector<384x128xbf16>, vector<64x128xf32> -> vector<64x128xf32>
    %108 = arith.addf %96, %107 : vector<64x128xf32>
    %c0_210 = arith.constant 0 : index
    %c1_211 = arith.constant 1 : index
    %c0_212 = arith.constant 0 : index
    %c1_213 = arith.constant 1 : index
    %c0_214 = arith.constant 0 : index
    %c0_215 = arith.constant 0 : index
    %109 = vector.load %arg8[%c0_210, %c1_211, %c0_212, %c1_213, %c0_214, %c0_215] : memref<2x2x6x5x5x128xf32, #tpu.memory_space<vmem>>, vector<1x1x4x4x4x128xf32>
    %110 = vector.shape_cast %109 : vector<1x1x4x4x4x128xf32> to vector<64x128xf32>
    %c0_216 = arith.constant 0 : index
    %c1_217 = arith.constant 1 : index
    %c1_218 = arith.constant 1 : index
    %c1_219 = arith.constant 1 : index
    %c0_220 = arith.constant 0 : index
    %c0_221 = arith.constant 0 : index
    %111 = vector.load %arg8[%c0_216, %c1_217, %c1_218, %c1_219, %c0_220, %c0_221] : memref<2x2x6x5x5x128xf32, #tpu.memory_space<vmem>>, vector<1x1x4x4x4x128xf32>
    %112 = vector.shape_cast %111 : vector<1x1x4x4x4x128xf32> to vector<64x128xf32>
    %c0_222 = arith.constant 0 : index
    %c1_223 = arith.constant 1 : index
    %c2_224 = arith.constant 2 : index
    %c1_225 = arith.constant 1 : index
    %c0_226 = arith.constant 0 : index
    %c0_227 = arith.constant 0 : index
    %113 = vector.load %arg8[%c0_222, %c1_223, %c2_224, %c1_225, %c0_226, %c0_227] : memref<2x2x6x5x5x128xf32, #tpu.memory_space<vmem>>, vector<1x1x4x4x4x128xf32>
    %114 = vector.shape_cast %113 : vector<1x1x4x4x4x128xf32> to vector<64x128xf32>
    %115 = tpu.concatenate %110, %112, %114 in 1 : vector<64x128xf32>, vector<64x128xf32>, vector<64x128xf32> -> vector<64x384xf32>
    %116 = arith.truncf %115 : vector<64x384xf32> to vector<64x384xbf16>
    %c7 = arith.constant 7 : index
    %c0_228 = arith.constant 0 : index
    %c0_229 = arith.constant 0 : index
    %117 = vector.load %arg2[%c7, %c0_228, %c0_229] : memref<9x384x128xbf16, #tpu.memory_space<vmem>>, vector<1x384x128xbf16>
    %118 = vector.shape_cast %117 : vector<1x384x128xbf16> to vector<384x128xbf16>
    %cst_230 = arith.constant dense<0.000000e+00> : vector<64x128xf32>
    %119 = tpu.matmul %116, %118, %cst_230 {dimension_numbers = #tpu.dot_dimension_numbers<[1], [0], [0], [1], [0, 0, 1, 1], [], []>} : vector<64x384xbf16>, vector<384x128xbf16>, vector<64x128xf32> -> vector<64x128xf32>
    %120 = arith.addf %108, %119 : vector<64x128xf32>
    %c0_231 = arith.constant 0 : index
    %c0_232 = arith.constant 0 : index
    %c0_233 = arith.constant 0 : index
    %c1_234 = arith.constant 1 : index
    %c1_235 = arith.constant 1 : index
    %c0_236 = arith.constant 0 : index
    %121 = vector.load %arg8[%c0_231, %c0_232, %c0_233, %c1_234, %c1_235, %c0_236] : memref<2x2x6x5x5x128xf32, #tpu.memory_space<vmem>>, vector<1x1x4x4x4x128xf32>
    %122 = vector.shape_cast %121 : vector<1x1x4x4x4x128xf32> to vector<64x128xf32>
    %c0_237 = arith.constant 0 : index
    %c0_238 = arith.constant 0 : index
    %c1_239 = arith.constant 1 : index
    %c1_240 = arith.constant 1 : index
    %c1_241 = arith.constant 1 : index
    %c0_242 = arith.constant 0 : index
    %123 = vector.load %arg8[%c0_237, %c0_238, %c1_239, %c1_240, %c1_241, %c0_242] : memref<2x2x6x5x5x128xf32, #tpu.memory_space<vmem>>, vector<1x1x4x4x4x128xf32>
    %124 = vector.shape_cast %123 : vector<1x1x4x4x4x128xf32> to vector<64x128xf32>
    %c0_243 = arith.constant 0 : index
    %c0_244 = arith.constant 0 : index
    %c2_245 = arith.constant 2 : index
    %c1_246 = arith.constant 1 : index
    %c1_247 = arith.constant 1 : index
    %c0_248 = arith.constant 0 : index
    %125 = vector.load %arg8[%c0_243, %c0_244, %c2_245, %c1_246, %c1_247, %c0_248] : memref<2x2x6x5x5x128xf32, #tpu.memory_space<vmem>>, vector<1x1x4x4x4x128xf32>
    %126 = vector.shape_cast %125 : vector<1x1x4x4x4x128xf32> to vector<64x128xf32>
    %127 = tpu.concatenate %122, %124, %126 in 1 : vector<64x128xf32>, vector<64x128xf32>, vector<64x128xf32> -> vector<64x384xf32>
    %128 = arith.truncf %127 : vector<64x384xf32> to vector<64x384xbf16>
    %c8 = arith.constant 8 : index
    %c0_249 = arith.constant 0 : index
    %c0_250 = arith.constant 0 : index
    %129 = vector.load %arg2[%c8, %c0_249, %c0_250] : memref<9x384x128xbf16, #tpu.memory_space<vmem>>, vector<1x384x128xbf16>
    %130 = vector.shape_cast %129 : vector<1x384x128xbf16> to vector<384x128xbf16>
    %cst_251 = arith.constant dense<0.000000e+00> : vector<64x128xf32>
    %131 = tpu.matmul %128, %130, %cst_251 {dimension_numbers = #tpu.dot_dimension_numbers<[1], [0], [0], [1], [0, 0, 1, 1], [], []>} : vector<64x384xbf16>, vector<384x128xbf16>, vector<64x128xf32> -> vector<64x128xf32>
    %132 = arith.addf %120, %131 : vector<64x128xf32>
    %c0_252 = arith.constant 0 : index
    %c0_253 = arith.constant 0 : index
    %133 = vector.load %arg5[%c0_252, %c0_253] : memref<1x128xf32, #tpu.memory_space<vmem>>, vector<1x128xf32>
    %134 = vector.broadcast %133 : vector<1x128xf32> to vector<64x128xf32>
    %135 = arith.addf %132, %134 : vector<64x128xf32>
    %cst_254 = arith.constant 0.000000e+00 : f32
    %136 = vector.broadcast %cst_254 : f32 to vector<64x128xf32>
    %137 = arith.maximumf %135, %136 : vector<64x128xf32>
    %138 = arith.truncf %137 : vector<64x128xf32> to vector<64x128xbf16>
    %c0_255 = arith.constant 0 : index
    %c0_256 = arith.constant 0 : index
    %c0_257 = arith.constant 0 : index
    %c0_258 = arith.constant 0 : index
    %c0_259 = arith.constant 0 : index
    %c0_260 = arith.constant 0 : index
    %139 = vector.load %arg0[%c0_255, %c0_256, %c0_257, %c0_258, %c0_259, %c0_260] : memref<2x2x4x4x4x128xbf16, #tpu.memory_space<vmem>>, vector<1x1x4x4x4x128xbf16>
    %140 = vector.shape_cast %139 : vector<1x1x4x4x4x128xbf16> to vector<64x128xbf16>
    %141 = tpu.concatenate %138, %140 in 1 : vector<64x128xbf16>, vector<64x128xbf16> -> vector<64x256xbf16>
    %c0_261 = arith.constant 0 : index
    %c0_262 = arith.constant 0 : index
    %142 = vector.load %arg3[%c0_261, %c0_262] : memref<256x128xbf16, #tpu.memory_space<vmem>>, vector<256x128xbf16>
    %cst_263 = arith.constant dense<0.000000e+00> : vector<64x128xf32>
    %143 = tpu.matmul %141, %142, %cst_263 {dimension_numbers = #tpu.dot_dimension_numbers<[1], [0], [0], [1], [0, 0, 1, 1], [], []>} : vector<64x256xbf16>, vector<256x128xbf16>, vector<64x128xf32> -> vector<64x128xf32>
    %c0_264 = arith.constant 0 : index
    %c0_265 = arith.constant 0 : index
    %144 = vector.load %arg6[%c0_264, %c0_265] : memref<1x128xf32, #tpu.memory_space<vmem>>, vector<1x128xf32>
    %145 = vector.broadcast %144 : vector<1x128xf32> to vector<64x128xf32>
    %146 = arith.addf %143, %145 : vector<64x128xf32>
    %cst_266 = arith.constant 0.000000e+00 : f32
    %147 = vector.broadcast %cst_266 : f32 to vector<64x128xf32>
    %148 = arith.maximumf %146, %147 : vector<64x128xf32>
    %c0_267 = arith.constant 0 : index
    %c0_268 = arith.constant 0 : index
    %149 = vector.load %arg7[%c0_267, %c0_268] : memref<64x128xf32, #tpu.memory_space<vmem>>, vector<64x128xf32>
    tpu.vector_store %arg7[%c0_267, %c0_268], %148 {strides = array<i32>} : memref<64x128xf32, #tpu.memory_space<vmem>>, vector<64x128xf32>,
    return
  }
}

</mosaic_0001>

<bundles_post_ra>
// kernel: tpu_custom_call.1
= control target key start
LH: loop header
LB: loop body
LE: loop exit
PB: predicated region body
PF: predicated region fallthrough
CT: control target
= control target key end

     0   :  { %12 = vsyncpa [#allocation4], 0  ;;  %s7940_s0 = inlined_call_operand.hbm [shape: bf16[2,2,4,4,4,128], index: 0, kind: input, shape index: {}]   ;;  %s7941_s1 = inlined_call_operand.hbm [shape: bf16[128,128], index: 1, kind: input, shape index: {}]   ;;  %s7942_s2 = inlined_call_operand.hbm [shape: bf16[9,384,128], index: 2, kind: input, shape index: {}]   ;;  %s7943_s3 = inlined_call_operand.hbm [shape: bf16[256,128], index: 3, kind: input, shape index: {}]   ;;  %s7944_s4 = inlined_call_operand.vmem [shape: f32[1,128], index: 4, kind: input, shape index: {}]   ;;  %s7945_s5 = inlined_call_operand.vmem [shape: f32[1,128], index: 5, kind: input, shape index: {}]   ;;  %s7946_s6 = inlined_call_operand.vmem [shape: f32[1,128], index: 6, kind: input, shape index: {}]   ;;  %s7947_s7 = inlined_call_operand.hbm [shape: f32[64,128], index: 7, kind: output, shape index: {}]  }
   0x1   :  { %13 = vsyncpa [#allocation7], 0 }
   0x2   :  { %14 = vsyncpa [#allocation10], 0 }
   0x3   :  { %15 = vsyncpa [#allocation5], 0  ;;  %s7563_s24 = smov [#allocation6]   ;;  %s7445_s28 = scalar_lea.hbm %s7941_s1, 1024 }
   0x4   :  { %s33_s25 = sshll.u32 %s7563_s24, 4  ;;  %p7446_p0 = scmp.ne.s32.totalorder %s7941_s1, %s7445_s28  ;;  %s34_s25 = int_to_ptr.vmem [resolvable:$true] %s33_s25 }
   0x5   :  { %p7449_p1 = scmp.lt.u32.totalorder %s7445_s28, %s7941_s1 }
   0x7   :  { %p7451_p2 = pnand %p7449_p1, %p7446_p0 }
   0x9   :  { %7454 = shalt.err (!%p7451_p2)
}
   0xa   :  { %s7455_s10 = scalar_lea.vmem %s34_s25, 1024  ;;  %p7460_p4 = scmp.lt.s32.totalorder %s34_s25, %s34_s25 }
   0xb   :  { %p7456_p3 = scmp.ne.s32.totalorder %s34_s25, %s7455_s10  ;;  %p7461_p5 = scmp.lt.s32.totalorder %s7455_s10, %s7455_s10 }
   0xd   :  { %p7462_p6 = por %p7461_p5, %p7460_p4 }
   0xf   :  { %p7463_p7 = pnand %p7462_p6, %p7456_p3 }
  0x11   :  { %7466 = shalt.err (!%p7463_p7)
}
  0x12   :  { %s7564_s11 = smov 64   ;;  %s7565_s12 = smov 4  }
  0x13   :  { %39 = dma.hbm_to_vmem [thread:$0]  %s7941_s1, 1024, %s34_s25, [#allocation7], %s7564_s11, %s7564_s11, %s7565_s12  }
  0x14   :  { %s7566_s15 = smov [#allocation3]   ;;  %s7467_s19 = scalar_lea.hbm %s7940_s0, 2048 }
  0x15   :  { %s21_s16 = sshll.u32 %s7566_s15, 4  ;;  %p7468_p8 = scmp.ne.s32.totalorder %s7940_s0, %s7467_s19  ;;  %s22_s16 = int_to_ptr.vmem [resolvable:$true] %s21_s16 }
  0x16   :  { %p7471_p9 = scmp.lt.u32.totalorder %s7467_s19, %s7940_s0 }
  0x18   :  { %p7473_p10 = pnand %p7471_p9, %p7468_p8 }
  0x1a   :  { %7476 = shalt.err (!%p7473_p10)
}
  0x1b   :  { %s7477_s24 = scalar_lea.vmem %s22_s16, 2048  ;;  %p7482_p12 = scmp.lt.s32.totalorder %s22_s16, %s22_s16 }
  0x1c   :  { %p7478_p11 = scmp.ne.s32.totalorder %s22_s16, %s7477_s24  ;;  %p7483_p13 = scmp.lt.s32.totalorder %s7477_s24, %s7477_s24 }
  0x1e   :  { %p7484_p0 = por %p7483_p13, %p7482_p12 }
  0x20   :  { %p7485_p1 = pnand %p7484_p0, %p7478_p11 }
  0x22   :  { %7488 = shalt.err (!%p7485_p1)
}
  0x23   :  { %s7567_s1 = smov 32   ;;  %s7568_s25 = smov 2  }
  0x24   :  { %27 = dma.hbm_to_vmem [thread:$0]  %s7940_s0, 2048, %s22_s16, [#allocation4], %s7567_s1, %s7567_s1, %s7568_s25  }
  0x25   :  { %s7569_s28 = smov [#allocation8]   ;;  %s7570_s30 = smov [#allocation9]  }
  0x26   :  { %s45_s29 = sshll.u32 %s7569_s28, 4  ;;  %s57_s8 = sshll.u32 %s7570_s30, 4  ;;  %s46_s29 = int_to_ptr.vmem [resolvable:$true] %s45_s29  ;;  %s7643_s8 = int_to_ptr.vmem [resolvable:$true] %s57_s8 }
  0x27   :  { %s7489_s13 = scalar_lea.hbm %s7942_s2, 27648 }
  0x28   :  { %p7490_p2 = scmp.ne.s32.totalorder %s7942_s2, %s7489_s13  ;;  %p7493_p3 = scmp.lt.u32.totalorder %s7489_s13, %s7942_s2 }
  0x2a   :  { %p7495_p4 = pnand %p7493_p3, %p7490_p2 }
  0x2c   :  { %7498 = shalt.err (!%p7495_p4)
}
  0x2d   :  { %s7499_s0 = scalar_lea.vmem %s46_s29, 27648  ;;  %p7504_p6 = scmp.lt.s32.totalorder %s46_s29, %s46_s29 }
  0x2e   :  { %p7500_p5 = scmp.ne.s32.totalorder %s46_s29, %s7499_s0  ;;  %p7505_p7 = scmp.lt.s32.totalorder %s7499_s0, %s7499_s0 }
  0x30   :  { %p7506_p8 = por %p7505_p7, %p7504_p6 }
  0x32   :  { %p7507_p9 = pnand %p7506_p8, %p7500_p5 }
  0x34   :  { %7510 = shalt.err (!%p7507_p9)
}
  0x35   :  { %51 = dma.hbm_to_vmem [thread:$0]  %s7942_s2, 27648, %s46_s29, [#allocation7], %s7564_s11, %s7564_s11, %s7565_s12  }
  0x36   :  { %s7511_s22 = scalar_lea.hbm %s7943_s3, 2048 }
  0x37   :  { %p7512_p10 = scmp.ne.s32.totalorder %s7943_s3, %s7511_s22  ;;  %p7515_p11 = scmp.lt.u32.totalorder %s7511_s22, %s7943_s3 }
  0x39   :  { %p7517_p12 = pnand %p7515_p11, %p7512_p10 }
  0x3b   :  { %7520 = shalt.err (!%p7517_p12)
}
  0x3c   :  { %s7521_s26 = scalar_lea.vmem %s7643_s8, 2048  ;;  %p7526_p0 = scmp.lt.s32.totalorder %s7643_s8, %s7643_s8 }
  0x3d   :  { %p7522_p13 = scmp.ne.s32.totalorder %s7643_s8, %s7521_s26  ;;  %p7527_p1 = scmp.lt.s32.totalorder %s7521_s26, %s7521_s26 }
  0x3f   :  { %p7528_p2 = por %p7527_p1, %p7526_p0 }
  0x41   :  { %p7529_p3 = pnand %p7528_p2, %p7522_p13 }
  0x43   :  { %7532 = shalt.err (!%p7529_p3)
}
  0x44   :  { %63 = dma.hbm_to_vmem [thread:$0]  %s7943_s3, 2048, %s7643_s8, [#allocation10], %s7564_s11, %s7564_s11, %s7565_s12  }
  0x45   :  { %7555 = dma.done.wait [#allocation4], 2048  }
  0x46   :  { %7556 = vsyncadd [#allocation4], 4294965248 }
  0x47   :  { %7557 = dma.done.wait [#allocation7], 28672  }
  0x48   :  { %7558 = vsyncadd [#allocation7], 4294938624 }
  0x49   :  { %7559 = dma.done.wait [#allocation10], 2048  }
  0x4a   :  { %7560 = vsyncadd [#allocation10], 4294965248  ;;  %v7571_v0 = vmov 0.0   ;;  %v7572_v1 = vmov 1983009808   ;;  %v239_v3 = vlaneseq  ;;  %v6989_v4 = vld [vmem:[#allocation6] sm:$0xff]  }
  0x4b   :  { %859 = vst [vmem:[#allocation2] sm:$0x1f] %v7571_v0  ;;  %860 = vst [vmem:[#allocation2 + $0x8] sm:$0x1f] %v7571_v0  ;;  %v237_v2 = vunpack.c.l.s4 %v7572_v1  ;;  %v6990_v5 = vld [vmem:[#allocation6 + $0x8] sm:$0xff]   ;;  %6824 = vmatprep.subr.bf16.mxu1 %v6989_v4  ;;  %6560 = vmatprep.subr.bf16.mxu0 %v6989_v4  ;;  %v6991_v8 = vld [vmem:[#allocation6 + $0x10] sm:$0xff]  }
  0x4c   :  { %861 = vst [vmem:[#allocation2 + $0x10] sm:$0x1f] %v7571_v0  ;;  %862 = vst [vmem:[#allocation2 + $0x18] sm:$0x1f] %v7571_v0  ;;  %6832 = vmatpush3.bf16.msra.mxu1 %v6989_v4  ;;  %v240_v7 = vshrl.u32 %v239_v3, 7  ;;  %6561 = vmatpush3.bf16.msra.mxu0 %v6989_v4  ;;  %v6992_v9 = vld [vmem:[#allocation6 + $0x18] sm:$0xff]  }
  0x4d   :  { %863 = vst [vmem:[#allocation2 + $0x20] sm:$0x1f] %v7571_v0  ;;  %864 = vst [vmem:[#allocation2 + $0xf0] sm:$0x1f] %v7571_v0  ;;  %v238_v6 = vunpack.c.0.s8 %v237_v2  ;;  %6825 = vmatprep.subr.bf16.mxu1 %v6990_v5  ;;  %6562 = vmatprep.subr.bf16.mxu0 %v6990_v5  ;;  %v115_v11 = vld [vmem:[#allocation3 + $0x40] sm:$0x3] }
  0x4e   :  { %865 = vst [vmem:[#allocation2 + $0xf8] sm:$0x1f] %v7571_v0  ;;  %866 = vst [vmem:[#allocation2 + $0x100] sm:$0x1f] %v7571_v0  ;;  %v116_v12 = vld [vmem:[#allocation3 + $0x42] sm:$0x3] }
  0x4f   :  { %867 = vst [vmem:[#allocation2 + $0x108] sm:$0x1f] %v7571_v0  ;;  %868 = vst [vmem:[#allocation2 + $0x110] sm:$0x1f] %v7571_v0  ;;  %v7782_v10 = vsub.s32 %v238_v6, %v240_v7  ;;  %v117_v13 = vld [vmem:[#allocation3 + $0x44] sm:$0x3]  ;;  %v370_v15 = vcombine.low %v115_v11, %v116_v12 }
  0x50   :  { %869 = vst [vmem:[#allocation2 + $0x1e0] sm:$0x1f] %v7571_v0  ;;  %870 = vst [vmem:[#allocation2 + $0x1e8] sm:$0x1f] %v7571_v0  ;;  %6833 = vmatpush3.bf16.msra.mxu1 %v6990_v5  ;;  %6563 = vmatpush3.bf16.msra.mxu0 %v6990_v5  ;;  %v118_v14 = vld [vmem:[#allocation3 + $0x46] sm:$0x3] }
  0x51   :  { %871 = vst [vmem:[#allocation2 + $0x1f0] sm:$0x1f] %v7571_v0  ;;  %872 = vst [vmem:[#allocation2 + $0x1f8] sm:$0x1f] %v7571_v0  ;;  %6826 = vmatprep.subr.bf16.mxu1 %v6991_v8  ;;  %6564 = vmatprep.subr.bf16.mxu0 %v6991_v8  ;;  %v371_v16 = vcombine.low %v117_v13, %v118_v14  ;;  %v378_v17 = vrot.slane %v370_v15, %v7782_v10  ;;  %v6993_v18 = vld [vmem:[#allocation6 + $0x20] sm:$0xff]   ;;  %v6994_v21 = vld [vmem:[#allocation6 + $0x28] sm:$0xff]  }
  0x52   :  { %874 = vst [vmem:[#allocation2 + $0x2d0] sm:$0x1f] %v7571_v0  ;;  %875 = vst [vmem:[#allocation2 + $0x2d8] sm:$0x1f] %v7571_v0  ;;  %v119_v22 = vld [vmem:[#allocation3 + $0x48] sm:$0x3] }
  0x53   :  { %876 = vst [vmem:[#allocation2 + $0x2e0] sm:$0x1f] %v7571_v0  ;;  %877 = vst [vmem:[#allocation2 + $0x2e8] sm:$0x1f] %v7571_v0  ;;  %v385_v19 = vrot.slane %v371_v16, %v7782_v10  ;;  %v120_v23 = vld [vmem:[#allocation3 + $0x4a] sm:$0x3] }
  0x54   :  { %880 = vst [vmem:[#allocation2 + $0xc8] sm:$0x1f] %v7571_v0  ;;  %881 = vst [vmem:[#allocation2 + $0xd0] sm:$0x1f] %v7571_v0  ;;  %6834 = vmatpush3.bf16.msra.mxu1 %v6991_v8  ;;  %6565 = vmatpush3.bf16.msra.mxu0 %v6991_v8  ;;  %v121_v24 = vld [vmem:[#allocation3 + $0x4c] sm:$0x3]  ;;  %v387_v42 = vcombine.low %v119_v22, %v120_v23 }
  0x55   :  { %882 = vst [vmem:[#allocation2 + $0xd8] sm:$0x1f] %v7571_v0  ;;  %883 = vst [vmem:[#allocation2 + $0xe0] sm:$0x1f] %v7571_v0  ;;  %6827 = vmatprep.subr.bf16.mxu1 %v6992_v9  ;;  %6566 = vmatprep.subr.bf16.mxu0 %v6992_v9  ;;  %v386_v20 = vcombine.low %v378_v17, %v385_v19  ;;  %v122_v25 = vld [vmem:[#allocation3 + $0x4e] sm:$0x3] }
  0x56   :  { %884 = vst [vmem:[#allocation2 + $0xe8] sm:$0x1f] %v7571_v0  ;;  %885 = vst [vmem:[#allocation2 + $0x1b8] sm:$0x1f] %v7571_v0  ;;  %v7786_v26 = vld [vmem:[#allocation6 + $0x30] sm:$0xff]   ;;  %v388_v43 = vcombine.low %v121_v24, %v122_v25  ;;  %v6996_v51 = vld [vmem:[#allocation6 + $0x38] sm:$0xff]   ;;  %v395_v61 = vrot.slane %v387_v42, %v7782_v10 }
  0x57   :  { %886 = vst [vmem:[#allocation2 + $0x1c0] sm:$0x1f] %v7571_v0  ;;  %887 = vst [vmem:[#allocation2 + $0x1c8] sm:$0x1f] %v7571_v0  ;;  %6592 = vmatprep.mubr.bf16.mxu1 %v386_v20  ;;  %v123_v27 = vld [vmem:[#allocation3 + $0x50] sm:$0x3] }
  0x58   :  { %888 = vst [vmem:[#allocation2 + $0x1d0] sm:$0x1f] %v7571_v0  ;;  %889 = vst [vmem:[#allocation2 + $0x1d8] sm:$0x1f] %v7571_v0  ;;  %6835 = vmatpush3.bf16.msra.mxu1 %v6992_v9  ;;  %6567 = vmatpush3.bf16.msra.mxu0 %v6992_v9  ;;  %v124_v28 = vld [vmem:[#allocation3 + $0x52] sm:$0x3]  ;;  %v402_v62 = vrot.slane %v388_v43, %v7782_v10 }
  0x59   :  { %890 = vst [vmem:[#allocation2 + $0x2a8] sm:$0x1f] %v7571_v0  ;;  %891 = vst [vmem:[#allocation2 + $0x2b0] sm:$0x1f] %v7571_v0  ;;  %6828 = vmatprep.subr.bf16.mxu1 %v6993_v18  ;;  %v125_v29 = vld [vmem:[#allocation3 + $0x54] sm:$0x3]  ;;  %6568 = vmatprep.subr.bf16.mxu0 %v6993_v18  ;;  %v404_v49 = vcombine.low %v123_v27, %v124_v28 }
  0x5a   :  { %892 = vst [vmem:[#allocation2 + $0x2b8] sm:$0x1f] %v7571_v0  ;;  %893 = vst [vmem:[#allocation2 + $0x2c0] sm:$0x1f] %v7571_v0  ;;  %v83_v30 = vld [vmem:[#allocation3] sm:$0x3] }
  0x5b   :  { %895 = vst [vmem:[#allocation2 + $0x398] sm:$0x1f] %v7571_v0  ;;  %896 = vst [vmem:[#allocation2 + $0x3a0] sm:$0x1f] %v7571_v0  ;;  %v84_v31 = vld [vmem:[#allocation3 + $0x2] sm:$0x3]  ;;  %v412_v3 = vrot.slane %v404_v49, %v7782_v10 }
  0x5c   :  { %897 = vst [vmem:[#allocation2 + $0x3a8] sm:$0x1f] %v7571_v0  ;;  %898 = vst [vmem:[#allocation2 + $0x3b0] sm:$0x1f] %v7571_v0  ;;  %6836 = vmatpush3.bf16.msra.mxu1 %v6993_v18  ;;  %v85_v32 = vld [vmem:[#allocation3 + $0x4] sm:$0x3]  ;;  %v234_v35 = vcombine.low %v83_v30, %v84_v31  ;;  %6569 = vmatpush3.bf16.msra.mxu0 %v6993_v18  ;;  %v403_v18 = vcombine.low %v395_v61, %v402_v62 }
  0x5d   :  { %901 = vst [vmem:[#allocation2 + $0x28] sm:$0x1f] %v7571_v0  ;;  %902 = vst [vmem:[#allocation2 + $0x50] sm:$0x1f] %v7571_v0  ;;  %v86_v33 = vld [vmem:[#allocation3 + $0x6] sm:$0x3]  ;;  %6829 = vmatprep.subr.bf16.mxu1 %v6994_v21  ;;  %6570 = vmatprep.subr.bf16.mxu0 %v6994_v21 }
  0x5e   :  { %903 = vst [vmem:[#allocation2 + $0x78] sm:$0x1f] %v7571_v0  ;;  %904 = vst [vmem:[#allocation2 + $0xa0] sm:$0x1f] %v7571_v0  ;;  %v126_v34 = vld [vmem:[#allocation3 + $0x56] sm:$0x3]  ;;  %v235_v36 = vcombine.low %v85_v32, %v86_v33  ;;  %v242_v44 = vrot.slane %v234_v35, %v7782_v10 }
  0x5f   :  { %907 = vst [vmem:[#allocation2 + $0x118] sm:$0x1f] %v7571_v0  ;;  %908 = vst [vmem:[#allocation2 + $0x140] sm:$0x1f] %v7571_v0  ;;  %v87_v37 = vld [vmem:[#allocation3 + $0x8] sm:$0x3]  ;;  %v405_v50 = vcombine.low %v125_v29, %v126_v34 }
  0x60   :  { %909 = vst [vmem:[#allocation2 + $0x168] sm:$0x1f] %v7571_v0  ;;  %910 = vst [vmem:[#allocation2 + $0x190] sm:$0x1f] %v7571_v0  ;;  %v88_v38 = vld [vmem:[#allocation3 + $0xa] sm:$0x3]  ;;  %v249_v45 = vrot.slane %v235_v36, %v7782_v10  ;;  %6837 = vmatpush3.bf16.msra.mxu1 %v6994_v21  ;;  %6571 = vmatpush3.bf16.msra.mxu0 %v6994_v21 }
  0x61   :  { %918 = vst [vmem:[#allocation2 + $0x30] sm:$0x1] %v7571_v0  ;;  %919 = vst [vmem:[#allocation2 + $0x38] sm:$0x1] %v7571_v0  ;;  %v89_v39 = vld [vmem:[#allocation3 + $0xc] sm:$0x3]  ;;  %6830 = vmatprep.subr.bf16.mxu1 %v7786_v26  ;;  %v251_v53 = vcombine.low %v87_v37, %v88_v38  ;;  %6572 = vmatprep.subr.bf16.mxu0 %v7786_v26  ;;  %v419_v4 = vrot.slane %v405_v50, %v7782_v10 }
  0x62   :  { %920 = vst [vmem:[#allocation2 + $0x40] sm:$0x1] %v7571_v0  ;;  %921 = vst [vmem:[#allocation2 + $0x48] sm:$0x1] %v7571_v0  ;;  %v90_v40 = vld [vmem:[#allocation3 + $0xe] sm:$0x3]  ;;  %v250_v52 = vcombine.low %v242_v44, %v249_v45 }
  0x63   :  { %923 = vst [vmem:[#allocation2 + $0x58] sm:$0x1] %v7571_v0  ;;  %924 = vst [vmem:[#allocation2 + $0x60] sm:$0x1] %v7571_v0  ;;  %v91_v41 = vld [vmem:[#allocation3 + $0x10] sm:$0x3]  ;;  %v252_v54 = vcombine.low %v89_v39, %v90_v40  ;;  %v259_v9 = vrot.slane %v251_v53, %v7782_v10  ;;  %v420_v22 = vcombine.low %v412_v3, %v419_v4 }
  0x64   :  { %925 = vst [vmem:[#allocation2 + $0x68] sm:$0x1] %v7571_v0  ;;  %926 = vst [vmem:[#allocation2 + $0x70] sm:$0x1] %v7571_v0  ;;  %v92_v46 = vld [vmem:[#allocation3 + $0x12] sm:$0x3]  ;;  %6576 = vmatprep.mubr.bf16.mxu0 %v250_v52  ;;  %6838 = vmatpush3.bf16.msra.mxu1 %v7786_v26 }
  0x65   :  { %928 = vst [vmem:[#allocation2 + $0x80] sm:$0x1] %v7571_v0  ;;  %929 = vst [vmem:[#allocation2 + $0x88] sm:$0x1] %v7571_v0  ;;  %v93_v47 = vld [vmem:[#allocation3 + $0x14] sm:$0x3]  ;;  %v268_v59 = vcombine.low %v91_v41, %v92_v46  ;;  %6831 = vmatprep.subr.bf16.mxu1 %v6996_v51  ;;  %v266_v11 = vrot.slane %v252_v54, %v7782_v10  ;;  %6573 = vmatpush3.bf16.msra.mxu0 %v7786_v26 }
  0x66   :  { %930 = vst [vmem:[#allocation2 + $0x90] sm:$0x1] %v7571_v0  ;;  %931 = vst [vmem:[#allocation2 + $0x98] sm:$0x1] %v7571_v0  ;;  %v94_v48 = vld [vmem:[#allocation3 + $0x16] sm:$0x3]  ;;  %6574 = vmatprep.subr.bf16.mxu0 %v6996_v51 }
  0x67   :  { %933 = vst [vmem:[#allocation2 + $0xa8] sm:$0x1] %v7571_v0  ;;  %934 = vst [vmem:[#allocation2 + $0xb0] sm:$0x1] %v7571_v0  ;;  %v127_v55 = vld [vmem:[#allocation3 + $0x58] sm:$0x3]  ;;  %v269_v60 = vcombine.low %v93_v47, %v94_v48  ;;  %v276_v15 = vrot.slane %v268_v59, %v7782_v10  ;;  %v267_v27 = vcombine.low %v259_v9, %v266_v11 }
  0x68   :  { %935 = vst [vmem:[#allocation2 + $0xb8] sm:$0x1] %v7571_v0  ;;  %936 = vst [vmem:[#allocation2 + $0xc0] sm:$0x1] %v7571_v0  ;;  %v128_v56 = vld [vmem:[#allocation3 + $0x5a] sm:$0x3]  ;;  %6839 = vmatpush3.bf16.msra.mxu1 %v6996_v51 }
  0x69   :  { %947 = vst [vmem:[#allocation2 + $0x208] sm:$0x1] %v7571_v0  ;;  %948 = vst [vmem:[#allocation2 + $0x210] sm:$0x1] %v7571_v0  ;;  %v129_v57 = vld [vmem:[#allocation3 + $0x5c] sm:$0x3]  ;;  %v283_v16 = vrot.slane %v269_v60, %v7782_v10  ;;  %v421_v19 = vcombine.low %v127_v55, %v128_v56  ;;  %6575 = vmatpush3.bf16.msra.mxu0 %v6996_v51 }
  0x6a   :  { %949 = vst [vmem:[#allocation2 + $0x218] sm:$0x1] %v7571_v0  ;;  %950 = vst [vmem:[#allocation2 + $0x220] sm:$0x1] %v7571_v0  ;;  %v130_v58 = vld [vmem:[#allocation3 + $0x5e] sm:$0x3] }
  0x6b   :  { %952 = vst [vmem:[#allocation2 + $0x230] sm:$0x1] %v7571_v0  ;;  %953 = vst [vmem:[#allocation2 + $0x238] sm:$0x1] %v7571_v0  ;;  %v131_v63 = vld [vmem:[#allocation3 + $0x60] sm:$0x3]  ;;  %v422_v20 = vcombine.low %v129_v57, %v130_v58  ;;  %v284_v34 = vcombine.low %v276_v15, %v283_v16  ;;  %6593 = vmatmul.mubr.bf16.vlgmr.msra.gmra.mrb[0].mxu1 %v403_v18  ;;  %v429_v37 = vrot.slane %v421_v19, %v7782_v10 }
  0x6c   :  { %954 = vst [vmem:[#allocation2 + $0x240] sm:$0x1] %v7571_v0  ;;  %955 = vst [vmem:[#allocation2 + $0x248] sm:$0x1] %v7571_v0  ;;  %v133_v1 = vld [vmem:[#allocation3 + $0x64] sm:$0x3]  ;;  %6596 = vmatprep.mubr.bf16.mxu1 %v420_v22  ;;  %6577 = vmatmul.mubr.bf16.vlgmr.msra.gmra.mrb[0].mxu0 %v267_v27 }
  0x6d   :  { %957 = vst [vmem:[#allocation2 + $0x258] sm:$0x1] %v7571_v0  ;;  %958 = vst [vmem:[#allocation2 + $0x260] sm:$0x1] %v7571_v0  ;;  %v134_v2 = vld [vmem:[#allocation3 + $0x66] sm:$0x3]  ;;  %v436_v38 = vrot.slane %v422_v20, %v7782_v10  ;;  %6580 = vmatprep.mubr.bf16.mxu0 %v284_v34 }
  0x6e   :  { %959 = vst [vmem:[#allocation2 + $0x268] sm:$0x1] %v7571_v0  ;;  %960 = vst [vmem:[#allocation2 + $0x270] sm:$0x1] %v7571_v0  ;;  %v95_v5 = vld [vmem:[#allocation3 + $0x18] sm:$0x3]  ;;  %v439_v24 = vcombine.low %v133_v1, %v134_v2 }
  0x6f   :  { %962 = vst [vmem:[#allocation2 + $0x280] sm:$0x1] %v7571_v0  ;;  %963 = vst [vmem:[#allocation2 + $0x288] sm:$0x1] %v7571_v0  ;;  %v96_v6 = vld [vmem:[#allocation3 + $0x1a] sm:$0x3]  ;;  %v437_v60 = vcombine.low %v429_v37, %v436_v38 }
  0x70   :  { %964 = vst [vmem:[#allocation2 + $0x290] sm:$0x1] %v7571_v0  ;;  %965 = vst [vmem:[#allocation2 + $0x298] sm:$0x1] %v7571_v0  ;;  %v97_v7 = vld [vmem:[#allocation3 + $0x1c] sm:$0x3]  ;;  %v285_v28 = vcombine.low %v95_v5, %v96_v6  ;;  %v453_v44 = vrot.slane %v439_v24, %v7782_v10 }
  0x71   :  { %900 = vst [vmem:[#allocation2] sm:$0x1f] %v7571_v0  ;;  %905 = vst [vmem:[#allocation2 + $0xc8] sm:$0x1f] %v7571_v0  ;;  %v98_v8 = vld [vmem:[#allocation3 + $0x1e] sm:$0x3] }
  0x72   :  { %906 = vst [vmem:[#allocation2 + $0xf0] sm:$0x1f] %v7571_v0  ;;  %911 = vst [vmem:[#allocation2 + $0x1b8] sm:$0x1f] %v7571_v0  ;;  %v99_v12 = vld [vmem:[#allocation3 + $0x20] sm:$0x3]  ;;  %v286_v29 = vcombine.low %v97_v7, %v98_v8  ;;  %v293_v51 = vrot.slane %v285_v28, %v7782_v10 }
  0x73   :  { %913 = vst [vmem:[#allocation2 + $0x8] sm:$0x1] %v7571_v0  ;;  %914 = vst [vmem:[#allocation2 + $0x10] sm:$0x1] %v7571_v0  ;;  %v100_v13 = vld [vmem:[#allocation3 + $0x22] sm:$0x3]  ;;  %6597 = vmatmul.mubr.bf16.gmra.mrb[4].mxu1 %v437_v60 }
  0x74   :  { %915 = vst [vmem:[#allocation2 + $0x18] sm:$0x1] %v7571_v0  ;;  %916 = vst [vmem:[#allocation2 + $0x20] sm:$0x1] %v7571_v0  ;;  %v101_v14 = vld [vmem:[#allocation3 + $0x24] sm:$0x3]  ;;  %v302_v35 = vcombine.low %v99_v12, %v100_v13  ;;  %v300_v52 = vrot.slane %v286_v29, %v7782_v10 }
  0x75   :  { %917 = vst [vmem:[#allocation2 + $0x28] sm:$0x1] %v7571_v0  ;;  %922 = vst [vmem:[#allocation2 + $0x50] sm:$0x1] %v7571_v0  ;;  %v102_v17 = vld [vmem:[#allocation3 + $0x26] sm:$0x3] }
  0x76   :  { %927 = vst [vmem:[#allocation2 + $0x78] sm:$0x1] %v7571_v0  ;;  %932 = vst [vmem:[#allocation2 + $0xa0] sm:$0x1] %v7571_v0  ;;  %v6997_v21 = vld [vmem:[#allocation8 + $0x100] sm:$0xff]   ;;  %v6999_v26 = vld [vmem:[#allocation8 + $0x108] sm:$0xff]   ;;  %v303_v36 = vcombine.low %v101_v14, %v102_v17  ;;  %v310_v57 = vrot.slane %v302_v35, %v7782_v10  ;;  %v301_v2 = vcombine.low %v293_v51, %v300_v52 }
  0x77   :  { %938 = vst [vmem:[#allocation2 + $0xd0] sm:$0x1] %v7571_v0  ;;  %939 = vst [vmem:[#allocation2 + $0xd8] sm:$0x1] %v7571_v0  ;;  %v6998_v25 = vld [vmem:[#allocation8 + $0xc0] sm:$0xff]   ;;  %6052 = vmatprep.subr.bf16.mxu1 %v6997_v21  ;;  %v7000_v49 = vld [vmem:[#allocation8 + $0xc8] sm:$0xff]  }
  0x78   :  { %940 = vst [vmem:[#allocation2 + $0xe0] sm:$0x1] %v7571_v0  ;;  %941 = vst [vmem:[#allocation2 + $0xe8] sm:$0x1] %v7571_v0  ;;  %v135_v30 = vld [vmem:[#allocation3 + $0x68] sm:$0x3]  ;;  %6053 = vmatpush3.bf16.msra.mxu1 %v6998_v25  ;;  %v317_v58 = vrot.slane %v303_v36, %v7782_v10  ;;  %6581 = vmatmul.mubr.bf16.gmra.mrb[4].mxu0 %v301_v2 }
  0x79   :  { %942 = vst [vmem:[#allocation2 + $0x1e0] sm:$0x1] %v7571_v0  ;;  %943 = vst [vmem:[#allocation2 + $0x1e8] sm:$0x1] %v7571_v0  ;;  %v136_v31 = vld [vmem:[#allocation3 + $0x6a] sm:$0x3]  ;;  %6054 = vmatprep.subr.bf16.mxu1 %v6999_v26 }
  0x7a   :  { %944 = vst [vmem:[#allocation2 + $0x1f0] sm:$0x1] %v7571_v0  ;;  %945 = vst [vmem:[#allocation2 + $0x1f8] sm:$0x1] %v7571_v0  ;;  %v137_v32 = vld [vmem:[#allocation3 + $0x6c] sm:$0x3]  ;;  %v455_v61 = vcombine.low %v135_v30, %v136_v31  ;;  %v318_v9 = vcombine.low %v310_v57, %v317_v58 }
  0x7b   :  { %967 = vst [vmem:[#allocation2 + $0x2a8] sm:$0x1] %v7571_v0  ;;  %968 = vst [vmem:[#allocation2 + $0x2b0] sm:$0x1] %v7571_v0  ;;  %v138_v33 = vld [vmem:[#allocation3 + $0x6e] sm:$0x3] }
  0x7c   :  { %969 = vst [vmem:[#allocation2 + $0x2b8] sm:$0x1] %v7571_v0  ;;  %970 = vst [vmem:[#allocation2 + $0x2c0] sm:$0x1] %v7571_v0  ;;  %v139_v39 = vld [vmem:[#allocation3 + $0x70] sm:$0x3]  ;;  %v456_v62 = vcombine.low %v137_v32, %v138_v33  ;;  %6055 = vmatpush3.bf16.msra.mxu1 %v7000_v49  ;;  %v463_v13 = vrot.slane %v455_v61, %v7782_v10  ;;  %6584 = vmatprep.mubr.bf16.mxu0 %v318_v9 }
  0x7d   :  { %912 = vst [vmem:[#allocation2] sm:$0x1] %v7571_v0  ;;  %937 = vst [vmem:[#allocation2 + $0xc8] sm:$0x1] %v7571_v0  ;;  %v132_v0 = vld [vmem:[#allocation3 + $0x62] sm:$0x3] }
  0x7e   :  { %v438_v23 = vcombine.low %v131_v63, %v132_v0  ;;  %v140_v40 = vld [vmem:[#allocation3 + $0x72] sm:$0x3]  ;;  %v141_v41 = vld [vmem:[#allocation3 + $0x74] sm:$0x3]  ;;  %v142_v42 = vld [vmem:[#allocation3 + $0x76] sm:$0x3]  ;;  %v470_v14 = vrot.slane %v456_v62, %v7782_v10 }
  0x7f   :  { %v103_v45 = vld [vmem:[#allocation3 + $0x28] sm:$0x3]  ;;  %v104_v46 = vld [vmem:[#allocation3 + $0x2a] sm:$0x3]  ;;  %v105_v47 = vld [vmem:[#allocation3 + $0x2c] sm:$0x3]  ;;  %v472_v0 = vcombine.low %v139_v39, %v140_v40  ;;  %v473_v1 = vcombine.low %v141_v41, %v142_v42 }
  0x80   :  { %v446_v43 = vrot.slane %v438_v23, %v7782_v10  ;;  %v106_v48 = vld [vmem:[#allocation3 + $0x2e] sm:$0x3]  ;;  %v7001_v50 = vld [vmem:[#allocation8 + $0x110] sm:$0xff]   ;;  %v319_v3 = vcombine.low %v103_v45, %v104_v46  ;;  %v143_v5 = vld [vmem:[#allocation3 + $0x78] sm:$0x3]  ;;  %v471_v25 = vcombine.low %v463_v13, %v470_v14 }
  0x81   :  { %v107_v53 = vld [vmem:[#allocation3 + $0x30] sm:$0x3]  ;;  %v108_v54 = vld [vmem:[#allocation3 + $0x32] sm:$0x3]  ;;  %v109_v55 = vld [vmem:[#allocation3 + $0x34] sm:$0x3]  ;;  %v320_v4 = vcombine.low %v105_v47, %v106_v48  ;;  %6056 = vmatprep.subr.bf16.mxu1 %v7001_v50  ;;  %v480_v15 = vrot.slane %v472_v0, %v7782_v10  ;;  %v487_v16 = vrot.slane %v473_v1, %v7782_v10 }
  0x82   :  { %v110_v56 = vld [vmem:[#allocation3 + $0x36] sm:$0x3]  ;;  %v454_v63 = vcombine.low %v446_v43, %v453_v44  ;;  %v144_v6 = vld [vmem:[#allocation3 + $0x7a] sm:$0x3]  ;;  %v145_v7 = vld [vmem:[#allocation3 + $0x7c] sm:$0x3]  ;;  %v336_v11 = vcombine.low %v107_v53, %v108_v54  ;;  %v327_v21 = vrot.slane %v319_v3, %v7782_v10 }
  0x83   :  { %v7002_v59 = vld [vmem:[#allocation8 + $0xd0] sm:$0xff]   ;;  %v146_v8 = vld [vmem:[#allocation3 + $0x7e] sm:$0x3]  ;;  %v337_v12 = vcombine.low %v109_v55, %v110_v56  ;;  %v111_v17 = vld [vmem:[#allocation3 + $0x38] sm:$0x3]  ;;  %v334_v22 = vrot.slane %v320_v4, %v7782_v10  ;;  %v489_v27 = vcombine.low %v143_v5, %v144_v6  ;;  %v488_v29 = vcombine.low %v480_v15, %v487_v16 }
  0x84   :  { %6600 = vmatprep.mubr.bf16.mxu1 %v454_v63  ;;  %v112_v18 = vld [vmem:[#allocation3 + $0x3a] sm:$0x3]  ;;  %v113_v19 = vld [vmem:[#allocation3 + $0x3c] sm:$0x3]  ;;  %v114_v20 = vld [vmem:[#allocation3 + $0x3e] sm:$0x3]  ;;  %6057 = vmatpush3.bf16.msra.mxu1 %v7002_v59  ;;  %v344_v23 = vrot.slane %v336_v11, %v7782_v10  ;;  %v490_v28 = vcombine.low %v145_v7, %v146_v8 }
  0x85   :  { %v351_v24 = vrot.slane %v337_v12, %v7782_v10  ;;  %v335_v26 = vcombine.low %v327_v21, %v334_v22  ;;  %v353_v30 = vcombine.low %v111_v17, %v112_v18  ;;  %v354_v31 = vcombine.low %v113_v19, %v114_v20  ;;  %6601 = vmatmul.mubr.bf16.gmra.mrb[8].mxu1 %v471_v25  ;;  %v7003_v39 = vld [vmem:[#allocation8 + $0x118] sm:$0xff]   ;;  %v7005_v41 = vld [vmem:[#allocation8 + $0x120] sm:$0xff]   ;;  %v7009_v45 = vld [vmem:[#allocation8 + $0x128] sm:$0xff]  }
  0x86   :  { %v497_v33 = vrot.slane %v489_v27, %v7782_v10  ;;  %v504_v34 = vrot.slane %v490_v28, %v7782_v10  ;;  %6604 = vmatprep.mubr.bf16.mxu1 %v488_v29  ;;  %v7004_v40 = vld [vmem:[#allocation8 + $0xd8] sm:$0xff]   ;;  %6058 = vmatprep.subr.bf16.mxu1 %v7003_v39  ;;  %v7006_v42 = vld [vmem:[#allocation8 + $0xe0] sm:$0xff]   ;;  %v7010_v46 = vld [vmem:[#allocation8 + $0xe8] sm:$0xff]  }
  0x87   :  { %v352_v32 = vcombine.low %v344_v23, %v351_v24  ;;  %6585 = vmatmul.mubr.bf16.gmra.mrb[8].mxu0 %v335_v26  ;;  %v361_v35 = vrot.slane %v353_v30, %v7782_v10  ;;  %v368_v36 = vrot.slane %v354_v31, %v7782_v10  ;;  %v7007_v43 = vld [vmem:[#allocation8 + $0x40] sm:$0xff]   ;;  %v7011_v47 = vld [vmem:[#allocation8 + $0x48] sm:$0xff]   ;;  %v7013_v49 = vld [vmem:[#allocation8 + $0x130] sm:$0xff]  }
  0x88   :  { %v505_v37 = vcombine.low %v497_v33, %v504_v34  ;;  %6059 = vmatpush3.bf16.msra.mxu1 %v7004_v40  ;;  %v7008_v44 = vld [vmem:[#allocation8] sm:$0xff]   ;;  %6104 = vmatprep.subr.bf16.mxu0 %v7007_v43  ;;  %v7012_v48 = vld [vmem:[#allocation8 + $0x8] sm:$0xff]   ;;  %v7014_v50 = vld [vmem:[#allocation8 + $0xf0] sm:$0xff]  }
  0x89   :  { %6588 = vmatprep.mubr.bf16.mxu0 %v352_v32  ;;  %v369_v38 = vcombine.low %v361_v35, %v368_v36  ;;  %6060 = vmatprep.subr.bf16.mxu1 %v7005_v41  ;;  %v7015_v51 = vld [vmem:[#allocation8 + $0x50] sm:$0xff]   ;;  %v7017_v53 = vld [vmem:[#allocation8 + $0x138] sm:$0xff]   ;;  %v7822_v57 = vld [vmem:[#allocation8 + $0x140] sm:$0xff]  }
  0x8a   :  { %6105 = vmatpush3.bf16.msra.mxu0 %v7008_v44  ;;  %v7016_v52 = vld [vmem:[#allocation8 + $0x10] sm:$0xff]   ;;  %v7018_v54 = vld [vmem:[#allocation8 + $0xf8] sm:$0xff]   ;;  %v7026_v58 = vld [vmem:[#allocation8 + $0x60] sm:$0xff]  }
  0x8b   :  { %6106 = vmatprep.subr.bf16.mxu0 %v7011_v47  ;;  %v7019_v55 = vld [vmem:[#allocation8 + $0x58] sm:$0xff]   ;;  %v7029_v59 = vld [vmem:[#allocation8 + $0x20] sm:$0xff]   ;;  %v7031_v60 = vld [vmem:[#allocation8 + $0x68] sm:$0xff]  }
  0x8c   :  { %6061 = vmatpush3.bf16.msra.mxu1 %v7006_v42  ;;  %v7020_v56 = vld [vmem:[#allocation8 + $0x18] sm:$0xff]   ;;  %v7032_v61 = vld [vmem:[#allocation8 + $0x28] sm:$0xff]   ;;  %v7036_v62 = vld [vmem:[#allocation8 + $0x70] sm:$0xff]  }
  0x8d   :  { %6605 = vmatmul.mubr.bf16.gmra.mrb[12].mxu1 %v505_v37  ;;  %6062 = vmatprep.subr.bf16.mxu1 %v7009_v45  ;;  %v7037_v63 = vld [vmem:[#allocation8 + $0x30] sm:$0xff]   ;;  %v7041_v0 = vld [vmem:[#allocation8 + $0x78] sm:$0xff]   ;;  %v7050_v2 = vld [vmem:[#allocation8 + $0x1c0] sm:$0xff]  }
  0x8e   :  { %6107 = vmatpush3.bf16.msra.mxu0 %v7012_v48  ;;  %v7042_v1 = vld [vmem:[#allocation8 + $0x38] sm:$0xff]   ;;  %v7828_v3 = vld [vmem:[%s7944_s4] ss:$0 sm:$0xff] }
  0x8f   :  { %6589 = vmatmul.mubr.bf16.gmra.mrb[12].mxu0 %v369_v38  ;;  %6108 = vmatprep.subr.bf16.mxu0 %v7015_v51  ;;  %v7025_v51 = vld [vmem:[#allocation2 + $0x100] ss:$8 sps:$4 sm:$0xff]  }
  0x90   :  { %6063 = vmatpush3.bf16.msra.mxu1 %v7010_v46  ;;  %v7024_v46 = vld [vmem:[#allocation2 + $0xf0] ss:$8 sps:$4 sm:$0xff]  }
  0x91   :  { %6064 = vmatprep.subr.bf16.mxu1 %v7013_v49 }
  0x92   :  { %6109 = vmatpush3.bf16.msra.mxu0 %v7016_v52 }
  0x93   :  { %6110 = vmatprep.subr.bf16.mxu0 %v7019_v55 }
  0x94   :  { %6065 = vmatpush3.bf16.msra.mxu1 %v7014_v50 }
  0x95   :  { %6066 = vmatprep.subr.bf16.mxu1 %v7017_v53 }
  0x96   :  { %6111 = vmatpush3.bf16.msra.mxu0 %v7020_v56 }
  0x97   :  { %6112 = vmatprep.subr.bf16.mxu0 %v7026_v58 }
  0x98   :  { %6067 = vmatpush3.bf16.msra.mxu1 %v7018_v54 }
  0x99   :  { %6608 = vmatprep.subr.bf16.mxu1 %v7822_v57 }
  0x9a   :  { %6113 = vmatpush3.bf16.msra.mxu0 %v7029_v59 }
  0x9b   :  { %6114 = vmatprep.subr.bf16.mxu0 %v7031_v60 }
  0x9e   :  { %6115 = vmatpush3.bf16.msra.mxu0 %v7032_v61 }
  0x9f   :  { %6116 = vmatprep.subr.bf16.mxu0 %v7036_v62 }
  0xa2   :  { %6117 = vmatpush3.bf16.msra.mxu0 %v7037_v63 }
  0xa3   :  { %6118 = vmatprep.subr.bf16.mxu0 %v7041_v0 }
  0xa6   :  { %6119 = vmatpush3.bf16.msra.mxu0 %v7042_v1 }
  0xa7   :  { %6156 = vmatprep.subr.bf16.mxu0 %v7050_v2 }
 0x13e   :  { %v6594_v4 = vpop.f32.mrb[0].mxu1 }
 0x13f   :  { %v677_v5 = vadd.f32 %v6594_v4, %v7828_v3  ;;  %v668_v6 = vpop.f32.mrb[1].mxu1  ;;  %v6578_v9 = vpop.f32.mrb[0].mxu0 }
 0x140   :  { %v669_v7 = vadd.f32 %v7828_v3, %v668_v6  ;;  %v6595_v8 = vpop.f32.mrb[2].mxu1  ;;  %v613_v14 = vadd.f32 %v6578_v9, %v7828_v3  ;;  %v604_v15 = vpop.f32.mrb[1].mxu0  ;;  %v1393_v6 = vpack.c.bf16 %v7025_v51, %v7024_v46 }
 0x141   :  { %v749_v11 = vmax.f32 %v677_v5, 0.0  ;;  %v680_v12 = vadd.f32 %v6595_v8, %v7828_v3  ;;  %v671_v13 = vpop.f32.mrb[3].mxu1  ;;  %v605_v18 = vadd.f32 %v7828_v3, %v604_v15  ;;  %v6579_v19 = vpop.f32.mrb[2].mxu0 }
 0x142   :  { %v747_v16 = vmax.f32 %v669_v7, 0.0  ;;  %v672_v17 = vadd.f32 %v7828_v3, %v671_v13  ;;  %v733_v22 = vmax.f32 %v613_v14, 0.0  ;;  %v616_v23 = vadd.f32 %v6579_v19, %v7828_v3  ;;  %v607_v24 = vpop.f32.mrb[3].mxu0 }
 0x143   :  { %v813_v20 = vcombine.high %v749_v11, %v749_v11  ;;  %1011 = vst [vmem:[#allocation2 + $0x148] sm:$0xf] %v749_v11  ;;  %v750_v21 = vmax.f32 %v680_v12, 0.0  ;;  %v731_v28 = vmax.f32 %v605_v18, 0.0  ;;  %v608_v29 = vadd.f32 %v7828_v3, %v607_v24 }
 0x144   :  { %v811_v25 = vcombine.high %v747_v16, %v747_v16  ;;  %1007 = vst [vmem:[#allocation2 + $0x120] sm:$0xf] %v747_v16  ;;  %v748_v27 = vmax.f32 %v672_v17, 0.0  ;;  %v797_v30 = vcombine.high %v733_v22, %v733_v22  ;;  %977 = vst [vmem:[#allocation2 + $0x320] sm:$0xf] %v733_v22  ;;  %v734_v31 = vmax.f32 %v616_v23, 0.0 }
 0x145   :  { %1012 = vst [vmem:[#allocation2 + $0x150] sm:$0xf] %v813_v20  ;;  %v814_v26 = vcombine.high %v750_v21, %v750_v21  ;;  %1013 = vst [vmem:[#allocation2 + $0x158] sm:$0xf] %v750_v21  ;;  %v795_v34 = vcombine.high %v731_v28, %v731_v28  ;;  %v732_v35 = vmax.f32 %v608_v29, 0.0  ;;  %v7030_v17 = vld [vmem:[#allocation8 + $0x148] sm:$0xff]  }
 0x146   :  { %1008 = vst [vmem:[#allocation2 + $0x128] sm:$0xf] %v811_v25  ;;  %v812_v32 = vcombine.high %v748_v27, %v748_v27  ;;  %1009 = vst [vmem:[#allocation2 + $0x130] sm:$0xf] %v748_v27  ;;  %v6598_v33 = vpop.f32.mrb[4].mxu1  ;;  %v798_v38 = vcombine.high %v734_v31, %v734_v31  ;;  %v7033_v29 = vld [vmem:[#allocation8 + $0x150] sm:$0xff]  }
 0x147   :  { %973 = vst [vmem:[#allocation2 + $0x2f8] sm:$0xf] %v731_v28  ;;  %1014 = vst [vmem:[#allocation2 + $0x160] sm:$0xf] %v814_v26  ;;  %v693_v36 = vadd.f32 %v6598_v33, %v7828_v3  ;;  %v684_v37 = vpop.f32.mrb[5].mxu1  ;;  %v796_v41 = vcombine.high %v732_v35, %v732_v35 }
 0x148   :  { %978 = vst [vmem:[#allocation2 + $0x328] sm:$0xf] %v797_v30  ;;  %979 = vst [vmem:[#allocation2 + $0x330] sm:$0xf] %v734_v31  ;;  %v685_v39 = vadd.f32 %v7828_v3, %v684_v37  ;;  %v6599_v40 = vpop.f32.mrb[6].mxu1 }
 0x149   :  { %1010 = vst [vmem:[#allocation2 + $0x138] sm:$0xf] %v812_v32  ;;  %974 = vst [vmem:[#allocation2 + $0x300] sm:$0xf] %v795_v34  ;;  %v753_v43 = vmax.f32 %v693_v36, 0.0  ;;  %v696_v44 = vadd.f32 %v6599_v40, %v7828_v3  ;;  %v687_v45 = vpop.f32.mrb[7].mxu1 }
 0x14a   :  { %975 = vst [vmem:[#allocation2 + $0x308] sm:$0xf] %v732_v35  ;;  %980 = vst [vmem:[#allocation2 + $0x338] sm:$0xf] %v798_v38  ;;  %v751_v49 = vmax.f32 %v685_v39, 0.0  ;;  %v688_v50 = vadd.f32 %v7828_v3, %v687_v45 }
 0x14b   :  { %v6582_v42 = vpop.f32.mrb[4].mxu0  ;;  %976 = vst [vmem:[#allocation2 + $0x310] sm:$0xf] %v796_v41  ;;  %v817_v54 = vcombine.high %v753_v43, %v753_v43  ;;  %1019 = vst [vmem:[#allocation2 + $0x198] sm:$0xf] %v753_v43  ;;  %v754_v55 = vmax.f32 %v696_v44, 0.0 }
 0x14c   :  { %v629_v47 = vadd.f32 %v6582_v42, %v7828_v3  ;;  %v620_v48 = vpop.f32.mrb[5].mxu0  ;;  %v7021_v56 = vld [vmem:[#allocation2 + $0x118] ss:$8 sps:$4 sm:$0xff]   ;;  %v815_v60 = vcombine.high %v751_v49, %v751_v49  ;;  %1015 = vst [vmem:[#allocation2 + $0x170] sm:$0xf] %v751_v49  ;;  %v752_v61 = vmax.f32 %v688_v50, 0.0 }
 0x14d   :  { %v621_v52 = vadd.f32 %v7828_v3, %v620_v48  ;;  %v6583_v53 = vpop.f32.mrb[6].mxu0  ;;  %1020 = vst [vmem:[#allocation2 + $0x1a0] sm:$0xf] %v817_v54  ;;  %v818_v63 = vcombine.high %v754_v55, %v754_v55  ;;  %1021 = vst [vmem:[#allocation2 + $0x1a8] sm:$0xf] %v754_v55 }
 0x14e   :  { %v737_v58 = vmax.f32 %v629_v47, 0.0  ;;  %v632_v59 = vadd.f32 %v6583_v53, %v7828_v3  ;;  %v7022_v0 = vld [vmem:[#allocation2 + $0x128] ss:$8 sps:$4 sm:$0xff]   ;;  %1016 = vst [vmem:[#allocation2 + $0x178] sm:$0xf] %v815_v60  ;;  %v816_v4 = vcombine.high %v752_v61, %v752_v61  ;;  %v623_v14 = vpop.f32.mrb[7].mxu0 }
 0x14f   :  { %v735_v62 = vmax.f32 %v621_v52, 0.0  ;;  %v7027_v1 = vld [vmem:[#allocation2 + $0x140] ss:$8 sps:$4 sm:$0xff]   ;;  %1017 = vst [vmem:[#allocation2 + $0x180] sm:$0xf] %v752_v61  ;;  %v1394_v13 = vpack.c.bf16 %v7022_v0, %v7021_v56  ;;  %v624_v19 = vadd.f32 %v7828_v3, %v623_v14  ;;  %v7038_v47 = vld [vmem:[#allocation8 + $0x158] sm:$0xff]  }
 0x150   :  { %v801_v2 = vcombine.high %v737_v58, %v737_v58  ;;  %985 = vst [vmem:[#allocation2 + $0x370] sm:$0xf] %v737_v58  ;;  %v7028_v7 = vld [vmem:[#allocation2 + $0x150] ss:$8 sps:$4 sm:$0xff]   ;;  %v738_v9 = vmax.f32 %v632_v59, 0.0 }
 0x151   :  { %v799_v8 = vcombine.high %v735_v62, %v735_v62  ;;  %981 = vst [vmem:[#allocation2 + $0x348] sm:$0xf] %v735_v62  ;;  %1022 = vst [vmem:[#allocation2 + $0x1b0] sm:$0xf] %v818_v63  ;;  %1630 = vmatprep.mubr.bf16.mxu1 %v1394_v13  ;;  %v1397_v24 = vpack.c.bf16 %v7028_v7, %v7027_v1  ;;  %v736_v26 = vmax.f32 %v624_v19, 0.0  ;;  %v7043_v1 = vld [vmem:[#allocation8 + $0x160] sm:$0xff]  }
 0x152   :  { %986 = vst [vmem:[#allocation2 + $0x378] sm:$0xf] %v801_v2  ;;  %1018 = vst [vmem:[#allocation2 + $0x188] sm:$0xf] %v816_v4  ;;  %v802_v18 = vcombine.high %v738_v9, %v738_v9  ;;  %1631 = vmatmul.mubr.bf16.vlgmr.msra.gmra.mrb[16].mxu1 %v1393_v6  ;;  %v7034_v36 = vld [vmem:[#allocation2 + $0x118] ss:$8 sps:$4 sm:$0xff]  }
 0x153   :  { %982 = vst [vmem:[#allocation2 + $0x350] sm:$0xf] %v799_v8  ;;  %987 = vst [vmem:[#allocation2 + $0x380] sm:$0xf] %v738_v9  ;;  %6609 = vmatpush3.bf16.msra.mxu1 %v7822_v57  ;;  %1638 = vmatprep.mubr.bf16.mxu1 %v1397_v24  ;;  %v7039_v32 = vld [vmem:[#allocation2 + $0x168] ss:$8 sps:$4 sm:$0xff]   ;;  %v800_v38 = vcombine.high %v736_v26, %v736_v26 }
 0x154   :  { %988 = vst [vmem:[#allocation2 + $0x388] sm:$0xf] %v802_v18  ;;  %6610 = vmatprep.subr.bf16.mxu1 %v7030_v17  ;;  %v7035_v37 = vld [vmem:[#allocation2 + $0x128] ss:$8 sps:$4 sm:$0xff]   ;;  %983 = vst [vmem:[#allocation2 + $0x358] sm:$0xf] %v736_v26 }
 0x155   :  { %984 = vst [vmem:[#allocation2 + $0x360] sm:$0xf] %v800_v38  ;;  %v1396_v52 = vpack.c.bf16 %v7035_v37, %v7034_v36  ;;  %v7048_v55 = vld [vmem:[#allocation2] ss:$8 sps:$4 sm:$0xff]   ;;  %v7049_v61 = vld [vmem:[#allocation2 + $0x10] ss:$8 sps:$4 sm:$0xff]  }
 0x156   :  { %v7040_v41 = vld [vmem:[#allocation2 + $0x178] ss:$8 sps:$4 sm:$0xff]   ;;  %v7055_v26 = vld [vmem:[#allocation8 + $0x1c8] sm:$0xff]   ;;  %v7064_v38 = vld [vmem:[#allocation8 + $0x1d0] sm:$0xff]  }
 0x157   :  { %6611 = vmatpush3.bf16.msra.mxu1 %v7030_v17  ;;  %v1400_v49 = vpack.c.bf16 %v7040_v41, %v7039_v32  ;;  %v7047_v2 = vld [vmem:[#allocation2 + $0x150] ss:$8 sps:$4 sm:$0xff]  }
 0x158   :  { %v6602_v5 = vpop.f32.mrb[8].mxu1  ;;  %6612 = vmatprep.subr.bf16.mxu1 %v7033_v29  ;;  %v7051_v9 = vld [vmem:[#allocation2 + $0x190] ss:$8 sps:$4 sm:$0xff]  }
 0x159   :  { %v709_v11 = vadd.f32 %v6602_v5, %v7828_v3  ;;  %v700_v12 = vpop.f32.mrb[9].mxu1  ;;  %v7060_v36 = vld [vmem:[#allocation2 + $0x168] ss:$8 sps:$4 sm:$0xff]   ;;  %v7061_v37 = vld [vmem:[#allocation2 + $0x178] ss:$8 sps:$4 sm:$0xff]  }
 0x15a   :  { %v701_v15 = vadd.f32 %v7828_v3, %v700_v12  ;;  %v6603_v16 = vpop.f32.mrb[10].mxu1  ;;  %v6586_v20 = vpop.f32.mrb[8].mxu0  ;;  %1639 = vmatmul.mubr.bf16.gmra.mrb[20].mxu1 %v1396_v52  ;;  %v7074_v52 = vld [vmem:[#allocation2 + $0x168] ss:$8 sps:$4 sm:$0xff]  }
 0x15b   :  { %v757_v21 = vmax.f32 %v709_v11, 0.0  ;;  %v712_v22 = vadd.f32 %v6603_v16, %v7828_v3  ;;  %v703_v23 = vpop.f32.mrb[11].mxu1  ;;  %v645_v25 = vadd.f32 %v6586_v20, %v7828_v3  ;;  %v636_v39 = vpop.f32.mrb[9].mxu0  ;;  %6613 = vmatpush3.bf16.msra.mxu1 %v7033_v29  ;;  %1646 = vmatprep.mubr.bf16.mxu1 %v1400_v49  ;;  %v7052_v11 = vld [vmem:[#allocation2 + $0x1a0] ss:$8 sps:$4 sm:$0xff]  }
 0x15c   :  { %v755_v27 = vmax.f32 %v701_v15, 0.0  ;;  %v704_v28 = vadd.f32 %v7828_v3, %v703_v23  ;;  %v637_v57 = vadd.f32 %v7828_v3, %v636_v39  ;;  %v6587_v45 = vpop.f32.mrb[10].mxu0  ;;  %6614 = vmatprep.subr.bf16.mxu1 %v7038_v47  ;;  %v7053_v23 = vld [vmem:[#allocation8 + $0x180] sm:$0xff]   ;;  %v7066_v39 = vld [vmem:[#allocation2 + $0x150] ss:$8 sps:$4 sm:$0xff]  }
 0x15d   :  { %v821_v30 = vcombine.high %v757_v21, %v757_v21  ;;  %1028 = vst [vmem:[#allocation2 + $0x59] sm:$0xf] %v757_v21  ;;  %v758_v31 = vmax.f32 %v712_v22, 0.0  ;;  %v741_v33 = vmax.f32 %v645_v25, 0.0  ;;  %v648_v51 = vadd.f32 %v6587_v45, %v7828_v3  ;;  %v639_v56 = vpop.f32.mrb[11].mxu0  ;;  %v7068_v45 = vld [vmem:[#allocation8 + $0x178] sm:$0xff]  }
 0x15e   :  { %v819_v34 = vcombine.high %v755_v27, %v755_v27  ;;  %1024 = vst [vmem:[#allocation2 + $0x31] sm:$0xf] %v755_v27  ;;  %v756_v35 = vmax.f32 %v704_v28, 0.0  ;;  %v739_v50 = vmax.f32 %v637_v57, 0.0  ;;  %v640_v5 = vadd.f32 %v7828_v3, %v639_v56  ;;  %v7046_v21 = vld [vmem:[#allocation2 + $0x140] ss:$8 sps:$4 sm:$0xff]  }
 0x15f   :  { %1029 = vst [vmem:[#allocation2 + $0x61] sm:$0xf] %v821_v30  ;;  %v822_v40 = vcombine.high %v758_v31, %v758_v31  ;;  %1030 = vst [vmem:[#allocation2 + $0x69] sm:$0xf] %v758_v31  ;;  %v805_v42 = vcombine.high %v741_v33, %v741_v33  ;;  %v742_v4 = vmax.f32 %v648_v51, 0.0  ;;  %v1186_v22 = vpack.c.bf16 %v7049_v61, %v7048_v55  ;;  %v7054_v28 = vld [vmem:[#allocation8 + $0x168] sm:$0xff]  }
 0x160   :  { %994 = vst [vmem:[#allocation2 + $0x231] sm:$0xf] %v741_v33  ;;  %1025 = vst [vmem:[#allocation2 + $0x39] sm:$0xf] %v819_v34  ;;  %v820_v43 = vcombine.high %v756_v35, %v756_v35  ;;  %v6606_v44 = vpop.f32.mrb[12].mxu1  ;;  %v803_v62 = vcombine.high %v739_v50, %v739_v50  ;;  %v740_v17 = vmax.f32 %v640_v5, 0.0  ;;  %6615 = vmatpush3.bf16.msra.mxu1 %v7038_v47 }
 0x161   :  { %1026 = vst [vmem:[#allocation2 + $0x41] sm:$0xf] %v756_v35  ;;  %1031 = vst [vmem:[#allocation2 + $0x71] sm:$0xf] %v822_v40  ;;  %v725_v46 = vadd.f32 %v6606_v44, %v7828_v3  ;;  %v716_v48 = vpop.f32.mrb[13].mxu1  ;;  %v806_v16 = vcombine.high %v742_v4, %v742_v4  ;;  %6616 = vmatprep.subr.bf16.mxu1 %v7043_v1  ;;  %v1399_v29 = vpack.c.bf16 %v7047_v2, %v7046_v21  ;;  %v7056_v34 = vld [vmem:[#allocation8 + $0x188] sm:$0xff]  }
 0x162   :  { %995 = vst [vmem:[#allocation2 + $0x239] sm:$0xf] %v805_v42  ;;  %1027 = vst [vmem:[#allocation2 + $0x49] sm:$0xf] %v820_v43  ;;  %v717_v53 = vadd.f32 %v7828_v3, %v716_v48  ;;  %v6607_v54 = vpop.f32.mrb[14].mxu1  ;;  %v7859_v13 = vpop.f32.mrb[12].mxu0  ;;  %v804_v25 = vcombine.high %v740_v17, %v740_v17  ;;  %v1403_v30 = vpack.c.bf16 %v7052_v11, %v7051_v9 }
 0x163   :  { %v761_v58 = vmax.f32 %v725_v46, 0.0  ;;  %v728_v59 = vadd.f32 %v6607_v54, %v7828_v3  ;;  %v719_v60 = vpop.f32.mrb[15].mxu1  ;;  %990 = vst [vmem:[#allocation2 + $0x209] sm:$0xf] %v739_v50  ;;  %991 = vst [vmem:[#allocation2 + $0x211] sm:$0xf] %v803_v62  ;;  %1647 = vmatmul.mubr.bf16.gmra.mrb[24].mxu1 %v1399_v29  ;;  %v1402_v44 = vpack.c.bf16 %v7061_v37, %v7060_v36 }
 0x164   :  { %v759_v63 = vmax.f32 %v717_v53, 0.0  ;;  %v720_v0 = vadd.f32 %v7828_v3, %v719_v60  ;;  %v7058_v12 = vld [vmem:[#allocation2 + $0x50] ss:$8 sps:$4 sm:$0xff]   ;;  %996 = vst [vmem:[#allocation2 + $0x241] sm:$0xf] %v742_v4  ;;  %6617 = vmatpush3.bf16.msra.mxu1 %v7043_v1  ;;  %1654 = vmatprep.mubr.bf16.mxu1 %v1403_v30  ;;  %v7073_v51 = vld [vmem:[#allocation8 + $0x80] sm:$0xff]  }
 0x165   :  { %v825_v6 = vcombine.high %v761_v58, %v761_v58  ;;  %1036 = vst [vmem:[#allocation2 + $0xa9] sm:$0xf] %v761_v58  ;;  %v762_v7 = vmax.f32 %v728_v59, 0.0  ;;  %v7044_v8 = vld [vmem:[#allocation2 + $0x28] ss:$8 sps:$4 sm:$0xff]   ;;  %6618 = vmatprep.subr.bf16.mxu1 %v7054_v28  ;;  %v7069_v46 = vld [vmem:[#allocation8 + $0x1d8] sm:$0xff]  }
 0x166   :  { %v823_v14 = vcombine.high %v759_v63, %v759_v63  ;;  %1032 = vst [vmem:[#allocation2 + $0x81] sm:$0xf] %v759_v63  ;;  %v760_v15 = vmax.f32 %v720_v0, 0.0  ;;  %v7059_v24 = vld [vmem:[#allocation2 + $0x60] ss:$8 sps:$4 sm:$0xff]   ;;  %v7057_v35 = vld [vmem:[#allocation8 + $0x170] sm:$0xff]  }
 0x167   :  { %1037 = vst [vmem:[#allocation2 + $0xb1] sm:$0xf] %v825_v6  ;;  %v826_v18 = vcombine.high %v762_v7, %v762_v7  ;;  %1038 = vst [vmem:[#allocation2 + $0xb9] sm:$0xf] %v762_v7  ;;  %v1190_v31 = vpack.c.bf16 %v7059_v24, %v7058_v12  ;;  %v7062_v32 = vld [vmem:[#allocation2 + $0x28] ss:$8 sps:$4 sm:$0xff]  }
 0x168   :  { %v7045_v19 = vld [vmem:[#allocation2 + $0x38] ss:$8 sps:$4 sm:$0xff]   ;;  %1033 = vst [vmem:[#allocation2 + $0x89] sm:$0xf] %v823_v14  ;;  %v824_v20 = vcombine.high %v760_v15, %v760_v15  ;;  %1034 = vst [vmem:[#allocation2 + $0x91] sm:$0xf] %v760_v15  ;;  %6619 = vmatpush3.bf16.msra.mxu1 %v7054_v28 }
 0x169   :  { %997 = vst [vmem:[#allocation2 + $0x249] sm:$0xf] %v806_v16  ;;  %992 = vst [vmem:[#allocation2 + $0x219] sm:$0xf] %v740_v17  ;;  %v1187_v27 = vpack.c.bf16 %v7045_v19, %v7044_v8  ;;  %v7063_v33 = vld [vmem:[#allocation2 + $0x38] ss:$8 sps:$4 sm:$0xff]   ;;  %6620 = vmatprep.subr.bf16.mxu1 %v7057_v35 }
 0x16a   :  { %1039 = vst [vmem:[#allocation2 + $0xc1] sm:$0xf] %v826_v18  ;;  %1035 = vst [vmem:[#allocation2 + $0x99] sm:$0xf] %v824_v20  ;;  %v1189_v42 = vpack.c.bf16 %v7063_v33, %v7062_v32  ;;  %v7065_v57 = vld [vmem:[#allocation2 + $0x140] ss:$8 sps:$4 sm:$0xff]  }
 0x16b   :  { %993 = vst [vmem:[#allocation2 + $0x221] sm:$0xf] %v804_v25  ;;  %1904 = vmatprep.mubr.bf16.mxu0 %v1187_v27  ;;  %v7067_v43 = vld [vmem:[#allocation8 + $0x190] sm:$0xff]   ;;  %v1395_v47 = vpack.c.bf16 %v7066_v39, %v7065_v57  ;;  %1655 = vmatmul.mubr.bf16.gmra.mrb[28].mxu1 %v1402_v44  ;;  %v7070_v50 = vld [vmem:[#allocation8 + $0x198] sm:$0xff]   ;;  %v7077_v54 = vld [vmem:[#allocation2 + $0x60] ss:$8 sps:$4 sm:$0xff]  }
 0x16c   :  { %1905 = vmatmul.mubr.bf16.vlgmr.msra.gmra.mrb[16].mxu0 %v1186_v22  ;;  %v7076_v49 = vld [vmem:[#allocation2 + $0x50] ss:$8 sps:$4 sm:$0xff]   ;;  %6621 = vmatpush3.bf16.msra.mxu1 %v7057_v35  ;;  %v7078_v55 = vld [vmem:[#allocation8 + $0x1e0] sm:$0xff]   ;;  %v7082_v63 = vld [vmem:[#allocation8 + $0x88] sm:$0xff]  }
 0x16d   :  { %6157 = vmatpush3.bf16.msra.mxu0 %v7053_v23  ;;  %v7071_v40 = vld [vmem:[#allocation2 + $0x78] ss:$8 sps:$4 sm:$0xff]   ;;  %1912 = vmatprep.mubr.bf16.mxu0 %v1190_v31  ;;  %v1192_v61 = vpack.c.bf16 %v7077_v54, %v7076_v49  ;;  %v7083_v0 = vld [vmem:[#allocation8 + $0x1e8] sm:$0xff]   ;;  %v7087_v9 = vld [vmem:[#allocation8 + $0x90] sm:$0xff]  }
 0x16e   :  { %6158 = vmatprep.subr.bf16.mxu0 %v7055_v26  ;;  %v7075_v53 = vld [vmem:[#allocation2 + $0x178] ss:$8 sps:$4 sm:$0xff]   ;;  %6624 = vmatprep.mubr.bf16.mxu1 %v1395_v47  ;;  %v7104_v5 = vld [vmem:[#allocation2 + $0x1c8] ss:$8 sps:$4 sm:$0xff]   ;;  %v661_v26 = vadd.f32 %v7859_v13, %v7828_v3 }
 0x16f   :  { %v7072_v41 = vld [vmem:[#allocation2 + $0x88] ss:$8 sps:$4 sm:$0xff]   ;;  %6622 = vmatprep.subr.bf16.mxu1 %v7068_v45  ;;  %v7081_v62 = vld [vmem:[#allocation8 + $0x1a0] sm:$0xff]   ;;  %v1398_v1 = vpack.c.bf16 %v7075_v53, %v7074_v52  ;;  %v7092_v22 = vld [vmem:[#allocation8 + $0x98] sm:$0xff]  }
 0x170   :  { %v1193_v48 = vpack.c.bf16 %v7072_v41, %v7071_v40  ;;  %v7079_v56 = vld [vmem:[#allocation2 + $0x190] ss:$8 sps:$4 sm:$0xff]   ;;  %v7080_v58 = vld [vmem:[#allocation2 + $0x1a0] ss:$8 sps:$4 sm:$0xff]   ;;  %6623 = vmatpush3.bf16.msra.mxu1 %v7068_v45  ;;  %v745_v33 = vmax.f32 %v661_v26, 0.0 }
 0x171   :  { %6159 = vmatpush3.bf16.msra.mxu0 %v7056_v34  ;;  %v7085_v59 = vld [vmem:[#allocation2 + $0xa0] ss:$8 sps:$4 sm:$0xff]   ;;  %v7086_v60 = vld [vmem:[#allocation2 + $0xb0] ss:$8 sps:$4 sm:$0xff]   ;;  %6632 = vmatprep.subr.bf16.mxu1 %v7073_v51  ;;  %v1401_v6 = vpack.c.bf16 %v7080_v58, %v7079_v56  ;;  %v652_v34 = vpop.f32.mrb[13].mxu0 }
 0x172   :  { %6160 = vmatprep.subr.bf16.mxu0 %v7064_v38  ;;  %v7088_v2 = vld [vmem:[#allocation2 + $0x78] ss:$8 sps:$4 sm:$0xff]   ;;  %v1196_v7 = vpack.c.bf16 %v7086_v60, %v7085_v59  ;;  %v7084_v8 = vld [vmem:[#allocation8 + $0x1a8] sm:$0xff]   ;;  %v7090_v15 = vld [vmem:[#allocation8 + $0x1f0] sm:$0xff]   ;;  %v653_v36 = vadd.f32 %v7828_v3, %v652_v34  ;;  %v6591_v37 = vpop.f32.mrb[14].mxu0  ;;  %v809_v39 = vcombine.high %v745_v33, %v745_v33 }
 0x173   :  { %v7103_v4 = vld [vmem:[#allocation2 + $0x1b8] ss:$8 sps:$4 sm:$0xff]   ;;  %6625 = vmatmul.mubr.bf16.vlgmr.msra.gmra.mrb[32].mxu1 %v1398_v1  ;;  %v7089_v11 = vld [vmem:[#allocation2 + $0x88] ss:$8 sps:$4 sm:$0xff]   ;;  %1002 = vst [vmem:[#allocation2 + $0x281] sm:$0xf] %v745_v33  ;;  %v664_v40 = vadd.f32 %v6591_v37, %v7828_v3 }
 0x174   :  { %1913 = vmatmul.mubr.bf16.gmra.mrb[20].mxu0 %v1189_v42  ;;  %v7096_v12 = vld [vmem:[#allocation2 + $0x29] ss:$8 sps:$4 sm:$0xff]   ;;  %6633 = vmatpush3.bf16.msra.mxu1 %v7073_v51  ;;  %v7097_v14 = vld [vmem:[#allocation2 + $0x39] ss:$8 sps:$4 sm:$0xff]   ;;  %v1195_v18 = vpack.c.bf16 %v7089_v11, %v7088_v2  ;;  %v1404_v19 = vpack.c.bf16 %v7104_v5, %v7103_v4  ;;  %v655_v41 = vpop.f32.mrb[15].mxu0 }
 0x175   :  { %6161 = vmatpush3.bf16.msra.mxu0 %v7067_v43  ;;  %1920 = vmatprep.mubr.bf16.mxu0 %v1193_v48  ;;  %v7106_v16 = vld [vmem:[#allocation2 + $0x50] ss:$8 sps:$4 sm:$0xff]   ;;  %v7107_v17 = vld [vmem:[#allocation2 + $0x60] ss:$8 sps:$4 sm:$0xff]   ;;  %v2147_v21 = vpack.c.bf16 %v7097_v14, %v7096_v12  ;;  %v743_v43 = vmax.f32 %v653_v36, 0.0  ;;  %v656_v44 = vadd.f32 %v7828_v3, %v655_v41  ;;  %v746_v47 = vmax.f32 %v664_v40, 0.0 }
 0x176   :  { %6162 = vmatprep.subr.bf16.mxu0 %v7069_v46  ;;  %6628 = vmatprep.mubr.bf16.mxu1 %v1401_v6  ;;  %v7091_v20 = vld [vmem:[#allocation8 + $0x1b0] sm:$0xff]   ;;  %v7093_v23 = vld [vmem:[#allocation8 + $0x1f8] sm:$0xff]   ;;  %v1188_v24 = vpack.c.bf16 %v7107_v17, %v7106_v16  ;;  %v7095_v27 = vld [vmem:[#allocation8 + $0xa0] sm:$0xff]   ;;  %1003 = vst [vmem:[#allocation2 + $0x289] sm:$0xf] %v809_v39 }
 0x177   :  { %6634 = vmatprep.subr.bf16.mxu1 %v7082_v63  ;;  %v7094_v25 = vld [vmem:[#allocation8 + $0x1b8] sm:$0xff]   ;;  %v7098_v28 = vld [vmem:[#allocation2 + $0x1] ss:$8 sps:$4 sm:$0xff]   ;;  %v7111_v46 = vld [vmem:[#allocation8 + $0xb0] sm:$0xff]   ;;  %v807_v51 = vcombine.high %v743_v43, %v743_v43  ;;  %998 = vst [vmem:[#allocation2 + $0x259] sm:$0xf] %v743_v43  ;;  %v810_v54 = vcombine.high %v746_v47, %v746_v47 }
 0x178   :  { %6635 = vmatpush3.bf16.msra.mxu1 %v7082_v63  ;;  %v7099_v29 = vld [vmem:[#allocation2 + $0x11] ss:$8 sps:$4 sm:$0xff]   ;;  %v7100_v30 = vld [vmem:[#allocation8 + $0x280] sm:$0xff]   ;;  %v7102_v13 = vld [vmem:[#allocation8 + $0xa8] sm:$0xff]   ;;  %v744_v52 = vmax.f32 %v656_v44, 0.0 }
 0x179   :  { %6163 = vmatpush3.bf16.msra.mxu0 %v7070_v50  ;;  %6636 = vmatprep.subr.bf16.mxu1 %v7087_v9  ;;  %v7108_v31 = vld [vmem:[#allocation2 + $0x51] ss:$8 sps:$4 sm:$0xff]   ;;  %v7109_v32 = vld [vmem:[#allocation2 + $0x61] ss:$8 sps:$4 sm:$0xff]   ;;  %v2146_v35 = vpack.c.bf16 %v7099_v29, %v7098_v28  ;;  %1004 = vst [vmem:[#allocation2 + $0x291] sm:$0xf] %v746_v47 }
 0x17a   :  { %6164 = vmatprep.subr.bf16.mxu0 %v7078_v55  ;;  %v7101_v38 = vld [vmem:[#allocation8 + $0x240] sm:$0xff]   ;;  %v7105_v42 = vld [vmem:[#allocation8 + $0x288] sm:$0xff]   ;;  %v2150_v57 = vpack.c.bf16 %v7109_v32, %v7108_v31  ;;  %v7114_v50 = vld [vmem:[#allocation8 + $0x290] sm:$0xff]   ;;  %999 = vst [vmem:[#allocation2 + $0x261] sm:$0xf] %v807_v51  ;;  %v808_v55 = vcombine.high %v744_v52, %v744_v52 }
 0x17b   :  { %6629 = vmatmul.mubr.bf16.gmra.mrb[36].mxu1 %v1404_v19  ;;  %v7110_v45 = vld [vmem:[#allocation8 + $0x248] sm:$0xff]   ;;  %v7113_v49 = vld [vmem:[#allocation2 + $0x39] ss:$8 sps:$4 sm:$0xff]   ;;  %1000 = vst [vmem:[#allocation2 + $0x269] sm:$0xf] %v744_v52  ;;  %v7115_v56 = vld [vmem:[#allocation8 + $0x250] sm:$0xff]  }
 0x17c   :  { %1921 = vmatmul.mubr.bf16.gmra.mrb[24].mxu0 %v1192_v61  ;;  %6637 = vmatpush3.bf16.msra.mxu1 %v7087_v9  ;;  %v7112_v48 = vld [vmem:[#allocation2 + $0x29] ss:$8 sps:$4 sm:$0xff]   ;;  %v7118_v53 = vld [vmem:[#allocation2 + $0x79] ss:$8 sps:$4 sm:$0xff]   ;;  %1005 = vst [vmem:[#allocation2 + $0x299] sm:$0xf] %v810_v54 }
 0x17d   :  { %6165 = vmatpush3.bf16.msra.mxu0 %v7081_v62  ;;  %1928 = vmatprep.mubr.bf16.mxu0 %v1196_v7  ;;  %v7119_v3 = vld [vmem:[#allocation2 + $0x89] ss:$8 sps:$4 sm:$0xff]   ;;  %v7116_v58 = vld [vmem:[#allocation8 + $0xb8] sm:$0xff]   ;;  %1001 = vst [vmem:[#allocation2 + $0x271] sm:$0xf] %v808_v55  ;;  %v2149_v59 = vpack.c.bf16 %v7113_v49, %v7112_v48  ;;  %v7123_v1 = vld [vmem:[#allocation8 + $0x200] sm:$0xff]  }
 0x17e   :  { %6166 = vmatprep.subr.bf16.mxu0 %v7083_v0  ;;  %6638 = vmatprep.subr.bf16.mxu1 %v7092_v22  ;;  %v7117_v60 = vld [vmem:[#allocation8 + $0x298] sm:$0xff]   ;;  %v2153_v61 = vpack.c.bf16 %v7119_v3, %v7118_v53  ;;  %v7122_v0 = vld [vmem:[#allocation2 + $0x88] ss:$8 sps:$4 sm:$0xff]   ;;  %v7128_v7 = vld [vmem:[#allocation8 + $0x2a0] sm:$0xff]  }
 0x17f   :  { %6648 = vmatprep.mubr.bf16.mxu1 %v1188_v24  ;;  %v7120_v62 = vld [vmem:[#allocation8 + $0x258] sm:$0xff]   ;;  %v7124_v2 = vld [vmem:[#allocation2 + $0xa0] ss:$8 sps:$4 sm:$0xff]   ;;  %v7142_v28 = vld [vmem:[#allocation8 + $0x2b0] sm:$0xff]  }
 0x180   :  { %6639 = vmatpush3.bf16.msra.mxu1 %v7092_v22  ;;  %v7121_v63 = vld [vmem:[#allocation2 + $0x78] ss:$8 sps:$4 sm:$0xff]   ;;  %v7132_v12 = vld [vmem:[#allocation8 + $0x208] sm:$0xff]   ;;  %v7137_v22 = vld [vmem:[#allocation8 + $0x210] sm:$0xff]  }
 0x181   :  { %6167 = vmatpush3.bf16.msra.mxu0 %v7084_v8  ;;  %6640 = vmatprep.subr.bf16.mxu1 %v7095_v27  ;;  %v7125_v4 = vld [vmem:[#allocation2 + $0xb0] ss:$8 sps:$4 sm:$0xff]   ;;  %v7127_v6 = vld [vmem:[#allocation2 + $0x61] ss:$8 sps:$4 sm:$0xff]   ;;  %v1191_v14 = vpack.c.bf16 %v7122_v0, %v7121_v63 }
 0x182   :  { %6168 = vmatprep.subr.bf16.mxu0 %v7090_v15  ;;  %v7126_v5 = vld [vmem:[#allocation2 + $0x51] ss:$8 sps:$4 sm:$0xff]   ;;  %v7129_v8 = vld [vmem:[#allocation2 + $0xa1] ss:$8 sps:$4 sm:$0xff]   ;;  %v1194_v16 = vpack.c.bf16 %v7125_v4, %v7124_v2 }
 0x183   :  { %v7130_v9 = vld [vmem:[#allocation2 + $0xb1] ss:$8 sps:$4 sm:$0xff]   ;;  %v7131_v11 = vld [vmem:[#allocation8 + $0x260] sm:$0xff]   ;;  %v7133_v15 = vld [vmem:[#allocation8 + $0x2a8] sm:$0xff]   ;;  %v2152_v17 = vpack.c.bf16 %v7127_v6, %v7126_v5 }
 0x184   :  { %1929 = vmatmul.mubr.bf16.gmra.mrb[28].mxu0 %v1195_v18  ;;  %6641 = vmatpush3.bf16.msra.mxu1 %v7095_v27  ;;  %v7135_v18 = vld [vmem:[#allocation2 + $0xc8] ss:$8 sps:$4 sm:$0xff]   ;;  %v7136_v19 = vld [vmem:[#allocation2 + $0xd8] ss:$8 sps:$4 sm:$0xff]  }
 0x185   :  { %2383 = vmatprep.mubr.bf16.mxu0 %v2147_v21  ;;  %6169 = vmatpush3.bf16.msra.mxu0 %v7091_v20  ;;  %v2156_v20 = vpack.c.bf16 %v7130_v9, %v7129_v8  ;;  %v7134_v21 = vld [vmem:[#allocation8 + $0x268] sm:$0xff]   ;;  %v7149_v27 = vld [vmem:[#allocation2 + $0x218] ss:$8 sps:$4 sm:$0xff]   ;;  %v7143_v31 = vld [vmem:[#allocation8 + $0x270] sm:$0xff]  }
 0x186   :  { %6170 = vmatprep.subr.bf16.mxu0 %v7093_v23  ;;  %6642 = vmatprep.subr.bf16.mxu1 %v7102_v13  ;;  %v7138_v23 = vld [vmem:[#allocation2 + $0x79] ss:$8 sps:$4 sm:$0xff]   ;;  %v7139_v24 = vld [vmem:[#allocation2 + $0x89] ss:$8 sps:$4 sm:$0xff]  }
 0x187   :  { %v7140_v29 = vld [vmem:[#allocation2 + $0x51] ss:$8 sps:$4 sm:$0xff]   ;;  %v7141_v26 = vld [vmem:[#allocation2 + $0x61] ss:$8 sps:$4 sm:$0xff]   ;;  %v2155_v33 = vpack.c.bf16 %v7139_v24, %v7138_v23 }
 0x188   :  { %6643 = vmatpush3.bf16.msra.mxu1 %v7102_v13  ;;  %v2148_v34 = vpack.c.bf16 %v7141_v26, %v7140_v29  ;;  %v7145_v36 = vld [vmem:[#allocation8 + $0x2b8] sm:$0xff]   ;;  %v7150_v13 = vld [vmem:[#allocation2 + $0x1e0] ss:$8 sps:$4 sm:$0xff]   ;;  %v7162_v51 = vld [vmem:[#allocation8 + $0x350] sm:$0xff]  }
 0x189   :  { %6171 = vmatpush3.bf16.msra.mxu0 %v7094_v25  ;;  %6644 = vmatprep.subr.bf16.mxu1 %v7111_v46  ;;  %v7148_v25 = vld [vmem:[#allocation2 + $0x208] ss:$8 sps:$4 sm:$0xff]   ;;  %v7146_v37 = vld [vmem:[#allocation8 + $0x278] sm:$0xff]   ;;  %v7152_v40 = vld [vmem:[#allocation8 + $0x340] sm:$0xff]  }
 0x18a   :  { %6208 = vmatprep.subr.bf16.mxu0 %v7100_v30  ;;  %v1197_v30 = vpack.c.bf16 %v7136_v19, %v7135_v18  ;;  %v2636_v32 = vpack.c.bf16 %v7149_v27, %v7148_v25  ;;  %v7151_v39 = vld [vmem:[#allocation2 + $0x1f0] ss:$8 sps:$4 sm:$0xff]   ;;  %v7153_v43 = vld [vmem:[#allocation8 + $0x300] sm:$0xff]   ;;  %v7154_v44 = vld [vmem:[#allocation8 + $0x228] sm:$0xff]  }
 0x18b   :  { %v7158_v41 = vld [vmem:[#allocation2 + $0x230] ss:$8 sps:$4 sm:$0xff]   ;;  %v7156_v49 = vld [vmem:[#allocation8 + $0x308] sm:$0xff]   ;;  %v7171_v0 = vld [vmem:[#allocation8 + $0x2c0] sm:$0xff]  }
 0x18c   :  { %2384 = vmatmul.mubr.bf16.vlgmr.msra.gmra.mrb[32].mxu0 %v2146_v35  ;;  %6645 = vmatpush3.bf16.msra.mxu1 %v7111_v46  ;;  %v7144_v35 = vld [vmem:[#allocation8 + $0x218] sm:$0xff]   ;;  %v7160_v47 = vld [vmem:[#allocation2 + $0x208] ss:$8 sps:$4 sm:$0xff]   ;;  %v7176_v4 = vld [vmem:[#allocation8 + $0x360] sm:$0xff]  }
 0x18d   :  { %6209 = vmatpush3.bf16.msra.mxu0 %v7101_v38  ;;  %2391 = vmatprep.mubr.bf16.mxu0 %v2150_v57  ;;  %v7147_v38 = vld [vmem:[#allocation8 + $0x220] sm:$0xff]   ;;  %v2635_v57 = vpack.c.bf16 %v7151_v39, %v7150_v13  ;;  %v7170_v53 = vld [vmem:[#allocation2 + $0x268] ss:$8 sps:$4 sm:$0xff]   ;;  %v7164_v55 = vld [vmem:[#allocation8 + $0x238] sm:$0xff]  }
 0x18e   :  { %6210 = vmatprep.subr.bf16.mxu0 %v7105_v42  ;;  %6646 = vmatprep.subr.bf16.mxu1 %v7116_v58  ;;  %v7159_v42 = vld [vmem:[#allocation2 + $0x240] ss:$8 sps:$4 sm:$0xff]   ;;  %v7163_v3 = vld [vmem:[#allocation8 + $0x310] sm:$0xff]  }
 0x18f   :  { %v2639_v46 = vpack.c.bf16 %v7159_v42, %v7158_v41  ;;  %v7161_v48 = vld [vmem:[#allocation2 + $0x218] ss:$8 sps:$4 sm:$0xff]   ;;  %v7168_v63 = vld [vmem:[#allocation2 + $0x89] ss:$8 sps:$4 sm:$0xff]  }
 0x190   :  { %6647 = vmatpush3.bf16.msra.mxu1 %v7116_v58  ;;  %v7169_v52 = vld [vmem:[#allocation2 + $0x258] ss:$8 sps:$4 sm:$0xff]   ;;  %v2638_v54 = vpack.c.bf16 %v7161_v48, %v7160_v47  ;;  %v7178_v9 = vld [vmem:[#allocation8 + $0x2c8] sm:$0xff]   ;;  %v7183_v23 = vld [vmem:[#allocation8 + $0x2d0] sm:$0xff]  }
 0x191   :  { %6211 = vmatpush3.bf16.msra.mxu0 %v7110_v45  ;;  %6656 = vmatprep.subr.bf16.mxu1 %v7123_v1  ;;  %v7155_v45 = vld [vmem:[#allocation8 + $0x348] sm:$0xff]   ;;  %v2642_v58 = vpack.c.bf16 %v7170_v53, %v7169_v52  ;;  %v7173_v2 = vld [vmem:[#allocation2 + $0xb1] ss:$8 sps:$4 sm:$0xff]   ;;  %v7177_v5 = vld [vmem:[#allocation8 + $0x320] sm:$0xff]  }
 0x192   :  { %6212 = vmatprep.subr.bf16.mxu0 %v7114_v50  ;;  %v7157_v50 = vld [vmem:[#allocation8 + $0x230] sm:$0xff]   ;;  %v7181_v6 = vld [vmem:[#allocation2 + $0x280] ss:$8 sps:$4 sm:$0xff]   ;;  %v7214_v53 = vld [vmem:[#allocation8 + $0x2f8] sm:$0xff]  }
 0x193   :  { %6649 = vmatmul.mubr.bf16.vlgmr.msra.gmra.mrb[32].mxu1 %v1191_v14  ;;  %v7200_v14 = vld [vmem:[#allocation2 + $0xc9] ss:$8 sps:$4 sm:$0xff]   ;;  %v7201_v18 = vld [vmem:[#allocation2 + $0xd9] ss:$8 sps:$4 sm:$0xff]  }
 0x194   :  { %2392 = vmatmul.mubr.bf16.gmra.mrb[36].mxu0 %v2149_v59  ;;  %6652 = vmatprep.mubr.bf16.mxu1 %v1194_v16  ;;  %v7166_v59 = vld [vmem:[#allocation8 + $0x318] sm:$0xff]   ;;  %v7186_v24 = vld [vmem:[#allocation8 + $0x370] sm:$0xff]   ;;  %v2157_v25 = vpack.c.bf16 %v7201_v18, %v7200_v14  ;;  %v7197_v13 = vld [vmem:[#allocation2 + $0x320] ss:$8 sps:$4 sm:$0xff]  }
 0x195   :  { %6213 = vmatpush3.bf16.msra.mxu0 %v7115_v56  ;;  %2399 = vmatprep.mubr.bf16.mxu0 %v2153_v61  ;;  %v7165_v56 = vld [vmem:[#allocation8 + $0x358] sm:$0xff]   ;;  %v7175_v61 = vld [vmem:[#allocation2 + $0x240] ss:$8 sps:$4 sm:$0xff]   ;;  %v7210_v48 = vld [vmem:[#allocation8 + $0x410] sm:$0xff]  }
 0x196   :  { %6214 = vmatprep.subr.bf16.mxu0 %v7117_v60  ;;  %6657 = vmatpush3.bf16.msra.mxu1 %v7123_v1  ;;  %v7174_v60 = vld [vmem:[#allocation2 + $0x230] ss:$8 sps:$4 sm:$0xff]   ;;  %v7172_v1 = vld [vmem:[#allocation2 + $0xa1] ss:$8 sps:$4 sm:$0xff]  }
 0x197   :  { %6658 = vmatprep.subr.bf16.mxu1 %v7132_v12  ;;  %v2641_v8 = vpack.c.bf16 %v7175_v61, %v7174_v60  ;;  %v7184_v16 = vld [vmem:[#allocation2 + $0x258] ss:$8 sps:$4 sm:$0xff]   ;;  %v7189_v26 = vld [vmem:[#allocation2 + $0x308] ss:$8 sps:$4 sm:$0xff]  }
 0x198   :  { %v7188_v29 = vld [vmem:[#allocation2 + $0x2f8] ss:$8 sps:$4 sm:$0xff]   ;;  %v7202_v42 = vld [vmem:[#allocation8 + $0x2e8] sm:$0xff]   ;;  %v7213_v52 = vld [vmem:[#allocation8 + $0x3d0] sm:$0xff]  }
 0x199   :  { %6215 = vmatpush3.bf16.msra.mxu0 %v7120_v62  ;;  %v7167_v62 = vld [vmem:[#allocation2 + $0x79] ss:$8 sps:$4 sm:$0xff]   ;;  %v7209_v47 = vld [vmem:[#allocation2 + $0x308] ss:$8 sps:$4 sm:$0xff]  }
 0x19a   :  { %6216 = vmatprep.subr.bf16.mxu0 %v7128_v7  ;;  %6659 = vmatpush3.bf16.msra.mxu1 %v7132_v12  ;;  %v7182_v7 = vld [vmem:[#allocation2 + $0x290] ss:$8 sps:$4 sm:$0xff]   ;;  %v7179_v12 = vld [vmem:[#allocation8 + $0x368] sm:$0xff]   ;;  %v7199_v41 = vld [vmem:[#allocation8 + $0x3c0] sm:$0xff]  }
 0x19b   :  { %6660 = vmatprep.subr.bf16.mxu1 %v7137_v22  ;;  %6653 = vmatmul.mubr.bf16.gmra.mrb[36].mxu1 %v1197_v30  ;;  %v2645_v19 = vpack.c.bf16 %v7182_v7, %v7181_v6  ;;  %v7198_v39 = vld [vmem:[#allocation2 + $0x330] ss:$8 sps:$4 sm:$0xff]   ;;  %v7222_v60 = vld [vmem:[#allocation2 + $0x320] ss:$8 sps:$4 sm:$0xff]  }
 0x19c   :  { %2400 = vmatmul.mubr.bf16.gmra.mrb[40].mxu0 %v2152_v17  ;;  %6672 = vmatprep.mubr.bf16.mxu1 %v2148_v34  ;;  %v7185_v17 = vld [vmem:[#allocation2 + $0x268] ss:$8 sps:$4 sm:$0xff]   ;;  %v7235_v18 = vld [vmem:[#allocation2 + $0x358] ss:$8 sps:$4 sm:$0xff]  }
 0x19d   :  { %2407 = vmatprep.mubr.bf16.mxu0 %v2156_v20  ;;  %6217 = vmatpush3.bf16.msra.mxu0 %v7131_v11  ;;  %v2151_v11 = vpack.c.bf16 %v7168_v63, %v7167_v62  ;;  %v7203_v20 = vld [vmem:[#allocation2 + $0x230] ss:$8 sps:$4 sm:$0xff]   ;;  %v2644_v27 = vpack.c.bf16 %v7185_v17, %v7184_v16  ;;  %v7220_v62 = vld [vmem:[#allocation2 + $0x280] ss:$8 sps:$4 sm:$0xff]  }
 0x19e   :  { %6218 = vmatprep.subr.bf16.mxu0 %v7133_v15  ;;  %6661 = vmatpush3.bf16.msra.mxu1 %v7137_v22  ;;  %v2154_v15 = vpack.c.bf16 %v7173_v2, %v7172_v1  ;;  %v7180_v22 = vld [vmem:[#allocation8 + $0x328] sm:$0xff]   ;;  %v7194_v34 = vld [vmem:[#allocation2 + $0x2d0] ss:$8 sps:$4 sm:$0xff]  }
 0x19f   :  { %6662 = vmatprep.subr.bf16.mxu1 %v7144_v35  ;;  %v7223_v61 = vld [vmem:[#allocation2 + $0x330] ss:$8 sps:$4 sm:$0xff]   ;;  %v7226_v2 = vld [vmem:[#allocation2 + $0x380] ss:$8 sps:$4 sm:$0xff]  }
 0x1a0   :  { %v7221_v63 = vld [vmem:[#allocation2 + $0x290] ss:$8 sps:$4 sm:$0xff]   ;;  %v3130_v7 = vpack.c.bf16 %v7223_v61, %v7222_v60  ;;  %v7271_v60 = vld [vmem:[#allocation2 + $0x241] ss:$8 sps:$4 sm:$0xff]  }
 0x1a1   :  { %6219 = vmatpush3.bf16.msra.mxu0 %v7134_v21  ;;  %v7204_v21 = vld [vmem:[#allocation2 + $0x240] ss:$8 sps:$4 sm:$0xff]   ;;  %v7225_v1 = vld [vmem:[#allocation2 + $0x370] ss:$8 sps:$4 sm:$0xff]  }
 0x1a2   :  { %6220 = vmatprep.subr.bf16.mxu0 %v7142_v28  ;;  %6663 = vmatpush3.bf16.msra.mxu1 %v7144_v35  ;;  %v7187_v28 = vld [vmem:[#allocation8 + $0x330] sm:$0xff]   ;;  %v2637_v30 = vpack.c.bf16 %v7204_v21, %v7203_v20  ;;  %v7195_v35 = vld [vmem:[#allocation2 + $0x2e0] ss:$8 sps:$4 sm:$0xff]   ;;  %v3134_v14 = vpack.c.bf16 %v7226_v2, %v7225_v1 }
 0x1a3   :  { %6664 = vmatprep.subr.bf16.mxu1 %v7147_v38  ;;  %v7233_v16 = vld [vmem:[#allocation8 + $0x390] sm:$0xff]   ;;  %v7272_v61 = vld [vmem:[#allocation8 + $0x4e0] sm:$0xff]   ;;  %v7276_v2 = vld [vmem:[#allocation8 + $0x448] sm:$0xff]  }
 0x1a4   :  { %2408 = vmatmul.mubr.bf16.gmra.mrb[44].mxu0 %v2155_v33  ;;  %v7192_v33 = vld [vmem:[#allocation8 + $0x338] sm:$0xff]   ;;  %v7234_v17 = vld [vmem:[#allocation2 + $0x348] ss:$8 sps:$4 sm:$0xff]   ;;  %v7275_v1 = vld [vmem:[#allocation8 + $0x4a0] sm:$0xff]  }
 0x1a5   :  { %2872 = vmatprep.mubr.bf16.mxu0 %v2636_v32  ;;  %6221 = vmatpush3.bf16.msra.mxu0 %v7143_v31  ;;  %v7190_v31 = vld [vmem:[#allocation8 + $0x2d8] sm:$0xff]   ;;  %v7238_v21 = vld [vmem:[#allocation8 + $0x430] sm:$0xff]  }
 0x1a6   :  { %6222 = vmatprep.subr.bf16.mxu0 %v7145_v36  ;;  %6665 = vmatpush3.bf16.msra.mxu1 %v7147_v38  ;;  %v7191_v32 = vld [vmem:[#allocation8 + $0x378] sm:$0xff]   ;;  %v3125_v36 = vpack.c.bf16 %v7189_v26, %v7188_v29  ;;  %v7196_v38 = vld [vmem:[#allocation8 + $0x400] sm:$0xff]  }
 0x1a7   :  { %6666 = vmatprep.subr.bf16.mxu1 %v7154_v44  ;;  %v7237_v20 = vld [vmem:[#allocation2 + $0x330] ss:$8 sps:$4 sm:$0xff]  }
 0x1a8   :  { %v7243_v29 = vld [vmem:[#allocation8 + $0x438] sm:$0xff]  }
 0x1a9   :  { %6223 = vmatpush3.bf16.msra.mxu0 %v7146_v37  ;;  %v7193_v37 = vld [vmem:[#allocation8 + $0x2e0] sm:$0xff]  }
 0x1aa   :  { %6260 = vmatprep.subr.bf16.mxu0 %v7152_v40  ;;  %6667 = vmatpush3.bf16.msra.mxu1 %v7154_v44  ;;  %v3124_v40 = vpack.c.bf16 %v7195_v35, %v7194_v34  ;;  %v7206_v44 = vld [vmem:[#allocation8 + $0x3c8] sm:$0xff]   ;;  %v7245_v34 = vld [vmem:[#allocation8 + $0x3a0] sm:$0xff]  }
 0x1ab   :  { %6668 = vmatprep.subr.bf16.mxu1 %v7157_v50  ;;  %v7248_v35 = vld [vmem:[#allocation8 + $0x4c0] sm:$0xff]  }
 0x1ac   :  { %2873 = vmatmul.mubr.bf16.vlgmr.msra.gmra.mrb[48].mxu0 %v2635_v57  ;;  %v3128_v57 = vpack.c.bf16 %v7198_v39, %v7197_v13  ;;  %v7251_v13 = vld [vmem:[#allocation8 + $0x480] sm:$0xff]   ;;  %v7252_v39 = vld [vmem:[#allocation8 + $0x3a8] sm:$0xff]  }
 0x1ad   :  { %6261 = vmatpush3.bf16.msra.mxu0 %v7153_v43  ;;  %2880 = vmatprep.mubr.bf16.mxu0 %v2639_v46  ;;  %v7205_v43 = vld [vmem:[#allocation8 + $0x408] sm:$0xff]   ;;  %v7208_v46 = vld [vmem:[#allocation2 + $0x2f8] ss:$8 sps:$4 sm:$0xff]  }
 0x1ae   :  { %6262 = vmatprep.subr.bf16.mxu0 %v7155_v45  ;;  %6669 = vmatpush3.bf16.msra.mxu1 %v7157_v50  ;;  %v7207_v45 = vld [vmem:[#allocation8 + $0x2f0] sm:$0xff]   ;;  %v7212_v50 = vld [vmem:[#allocation2 + $0x358] ss:$8 sps:$4 sm:$0xff]  }
 0x1af   :  { %6670 = vmatprep.subr.bf16.mxu1 %v7164_v55 }
 0x1b1   :  { %6263 = vmatpush3.bf16.msra.mxu0 %v7156_v49  ;;  %v7211_v49 = vld [vmem:[#allocation2 + $0x348] ss:$8 sps:$4 sm:$0xff]  }
 0x1b2   :  { %6264 = vmatprep.subr.bf16.mxu0 %v7162_v51  ;;  %6671 = vmatpush3.bf16.msra.mxu1 %v7164_v55  ;;  %v3127_v51 = vpack.c.bf16 %v7209_v47, %v7208_v46  ;;  %v7216_v55 = vld [vmem:[#allocation8 + $0x3d8] sm:$0xff]   ;;  %v7260_v47 = vld [vmem:[#allocation2 + $0x269] ss:$8 sps:$4 sm:$0xff]  }
 0x1b3   :  { %6680 = vmatprep.subr.bf16.mxu1 %v7171_v0  ;;  %v7259_v46 = vld [vmem:[#allocation2 + $0x259] ss:$8 sps:$4 sm:$0xff]  }
 0x1b4   :  { %2881 = vmatmul.mubr.bf16.gmra.mrb[52].mxu0 %v2638_v54  ;;  %v3131_v54 = vpack.c.bf16 %v7212_v50, %v7211_v49  ;;  %v7262_v49 = vld [vmem:[#allocation8 + $0x3b8] sm:$0xff]  }
 0x1b5   :  { %6265 = vmatpush3.bf16.msra.mxu0 %v7163_v3  ;;  %2888 = vmatprep.mubr.bf16.mxu0 %v2642_v58  ;;  %v7215_v3 = vld [vmem:[#allocation8 + $0x418] sm:$0xff]   ;;  %v7218_v58 = vld [vmem:[#allocation2 + $0x268] ss:$8 sps:$4 sm:$0xff]  }
 0x1b6   :  { %6266 = vmatprep.subr.bf16.mxu0 %v7165_v56  ;;  %6673 = vmatmul.mubr.bf16.vlgmr.msra.gmra.mrb[32].mxu1 %v2151_v11  ;;  %v7217_v56 = vld [vmem:[#allocation2 + $0x258] ss:$8 sps:$4 sm:$0xff]   ;;  %v2643_v11 = vpack.c.bf16 %v7221_v63, %v7220_v62 }
 0x1b7   :  { %6676 = vmatprep.mubr.bf16.mxu1 %v2154_v15  ;;  %6681 = vmatpush3.bf16.msra.mxu1 %v7171_v0  ;;  %v7224_v0 = vld [vmem:[#allocation8 + $0x420] sm:$0xff]   ;;  %v2640_v6 = vpack.c.bf16 %v7218_v58, %v7217_v56  ;;  %v7230_v15 = vld [vmem:[#allocation8 + $0x3e8] sm:$0xff]   ;;  %v7263_v50 = vld [vmem:[#allocation8 + $0x4d8] sm:$0xff]  }
 0x1b8   :  { %6682 = vmatprep.subr.bf16.mxu1 %v7178_v9  ;;  %v7268_v56 = vld [vmem:[#allocation2 + $0x370] ss:$8 sps:$4 sm:$0xff]   ;;  %v7269_v58 = vld [vmem:[#allocation2 + $0x380] ss:$8 sps:$4 sm:$0xff]  }
 0x1b9   :  { %6267 = vmatpush3.bf16.msra.mxu0 %v7166_v59  ;;  %v7219_v59 = vld [vmem:[#allocation8 + $0x380] sm:$0xff]   ;;  %v7274_v63 = vld [vmem:[#allocation2 + $0x291] ss:$8 sps:$4 sm:$0xff]  }
 0x1ba   :  { %6268 = vmatprep.subr.bf16.mxu0 %v7176_v4  ;;  %v7227_v4 = vld [vmem:[#allocation8 + $0x3e0] sm:$0xff]  }
 0x1bb   :  { %6683 = vmatpush3.bf16.msra.mxu1 %v7178_v9  ;;  %v7231_v9 = vld [vmem:[#allocation2 + $0x2a8] ss:$8 sps:$4 sm:$0xff]  }
 0x1bc   :  { %2889 = vmatmul.mubr.bf16.gmra.mrb[56].mxu0 %v2641_v8  ;;  %6684 = vmatprep.subr.bf16.mxu1 %v7183_v23  ;;  %v7229_v8 = vld [vmem:[#allocation8 + $0x428] sm:$0xff]  }
 0x1bd   :  { %6269 = vmatpush3.bf16.msra.mxu0 %v7177_v5  ;;  %2896 = vmatprep.mubr.bf16.mxu0 %v2645_v19  ;;  %v7228_v5 = vld [vmem:[#allocation8 + $0x388] sm:$0xff]  }
 0x1be   :  { %6270 = vmatprep.subr.bf16.mxu0 %v7179_v12  ;;  %6677 = vmatmul.mubr.bf16.gmra.mrb[36].mxu1 %v2157_v25  ;;  %v7232_v12 = vld [vmem:[#allocation2 + $0x2b8] ss:$8 sps:$4 sm:$0xff]  }
 0x1bf   :  { %6696 = vmatprep.mubr.bf16.mxu1 %v2637_v30  ;;  %6685 = vmatpush3.bf16.msra.mxu1 %v7183_v23  ;;  %v7236_v19 = vld [vmem:[#allocation2 + $0x320] ss:$8 sps:$4 sm:$0xff]   ;;  %v7239_v23 = vld [vmem:[#allocation8 + $0x3f0] sm:$0xff]  }
 0x1c0   :  { %6686 = vmatprep.subr.bf16.mxu1 %v7190_v31  ;;  %v7241_v25 = vld [vmem:[#allocation2 + $0x219] ss:$8 sps:$4 sm:$0xff]   ;;  %v3126_v26 = vpack.c.bf16 %v7237_v20, %v7236_v19 }
 0x1c1   :  { %6271 = vmatpush3.bf16.msra.mxu0 %v7180_v22  ;;  %v2646_v22 = vpack.c.bf16 %v7232_v12, %v7231_v9  ;;  %v7273_v62 = vld [vmem:[#allocation2 + $0x281] ss:$8 sps:$4 sm:$0xff]   ;;  %v7281_v12 = vld [vmem:[#allocation8 + $0x450] sm:$0xff]  }
 0x1c2   :  { %6272 = vmatprep.subr.bf16.mxu0 %v7186_v24  ;;  %v7240_v24 = vld [vmem:[#allocation2 + $0x209] ss:$8 sps:$4 sm:$0xff]   ;;  %v3621_v9 = vpack.c.bf16 %v7274_v63, %v7273_v62 }
 0x1c3   :  { %6687 = vmatpush3.bf16.msra.mxu1 %v7190_v31  ;;  %v3612_v30 = vpack.c.bf16 %v7241_v25, %v7240_v24  ;;  %v7244_v31 = vld [vmem:[#allocation8 + $0x3f8] sm:$0xff]   ;;  %v7324_v62 = vld [vmem:[#allocation8 + $0x508] sm:$0xff]  }
 0x1c4   :  { %2897 = vmatmul.mubr.bf16.gmra.mrb[60].mxu0 %v2644_v27  ;;  %6688 = vmatprep.subr.bf16.mxu1 %v7193_v37  ;;  %v3133_v27 = vpack.c.bf16 %v7235_v18, %v7234_v17  ;;  %v7285_v17 = vld [vmem:[#allocation2 + $0x241] ss:$8 sps:$4 sm:$0xff]   ;;  %v7286_v18 = vld [vmem:[#allocation8 + $0x4f0] sm:$0xff]  }
 0x1c5   :  { %6273 = vmatpush3.bf16.msra.mxu0 %v7187_v28  ;;  %3361 = vmatprep.mubr.bf16.mxu0 %v3125_v36  ;;  %v7242_v28 = vld [vmem:[#allocation8 + $0x398] sm:$0xff]  }
 0x1c6   :  { %6274 = vmatprep.subr.bf16.mxu0 %v7191_v32  ;;  %v7246_v32 = vld [vmem:[#allocation2 + $0x1e1] ss:$8 sps:$4 sm:$0xff]   ;;  %v7249_v36 = vld [vmem:[#allocation2 + $0x231] ss:$8 sps:$4 sm:$0xff]  }
 0x1c7   :  { %6689 = vmatpush3.bf16.msra.mxu1 %v7193_v37  ;;  %v7250_v37 = vld [vmem:[#allocation2 + $0x241] ss:$8 sps:$4 sm:$0xff]   ;;  %v7288_v19 = vld [vmem:[#allocation2 + $0x30] ss:$8 sps:$4 sm:$0xff]  }
 0x1c8   :  { %6690 = vmatprep.subr.bf16.mxu1 %v7202_v42 }
 0x1c9   :  { %6275 = vmatpush3.bf16.msra.mxu0 %v7192_v33  ;;  %v7247_v33 = vld [vmem:[#allocation2 + $0x1f1] ss:$8 sps:$4 sm:$0xff]  }
 0x1ca   :  { %6312 = vmatprep.subr.bf16.mxu0 %v7196_v38  ;;  %v3611_v38 = vpack.c.bf16 %v7247_v33, %v7246_v32  ;;  %v7296_v32 = vld [vmem:[#allocation8 + $0x580] sm:$0xff]  }
 0x1cb   :  { %6691 = vmatpush3.bf16.msra.mxu1 %v7202_v42  ;;  %v7254_v42 = vld [vmem:[#allocation8 + $0x488] sm:$0xff]   ;;  %v7297_v33 = vld [vmem:[#allocation2 + $0x58] ss:$8 sps:$4 sm:$0xff]  }
 0x1cc   :  { %3362 = vmatmul.mubr.bf16.vlgmr.msra.gmra.mrb[64].mxu0 %v3124_v40  ;;  %6692 = vmatprep.subr.bf16.mxu1 %v7207_v45  ;;  %v7253_v40 = vld [vmem:[#allocation8 + $0x4c8] sm:$0xff]  }
 0x1cd   :  { %3369 = vmatprep.mubr.bf16.mxu0 %v3128_v57  ;;  %6313 = vmatpush3.bf16.msra.mxu0 %v7199_v41  ;;  %v3615_v41 = vpack.c.bf16 %v7250_v37, %v7249_v36  ;;  %v7255_v57 = vld [vmem:[#allocation8 + $0x3b0] sm:$0xff]   ;;  %v7299_v36 = vld [vmem:[#allocation8 + $0x540] sm:$0xff]   ;;  %v7300_v37 = vld [vmem:[#allocation8 + $0x468] sm:$0xff]  }
 0x1ce   :  { %6314 = vmatprep.subr.bf16.mxu0 %v7205_v43  ;;  %v7256_v43 = vld [vmem:[#allocation2 + $0x209] ss:$8 sps:$4 sm:$0xff]  }
 0x1cf   :  { %6693 = vmatpush3.bf16.msra.mxu1 %v7207_v45  ;;  %v7258_v45 = vld [vmem:[#allocation8 + $0x4d0] sm:$0xff]  }
 0x1d0   :  { %6694 = vmatprep.subr.bf16.mxu1 %v7214_v53 }
 0x1d1   :  { %6315 = vmatpush3.bf16.msra.mxu0 %v7206_v44  ;;  %v7257_v44 = vld [vmem:[#allocation2 + $0x219] ss:$8 sps:$4 sm:$0xff]  }
 0x1d2   :  { %6316 = vmatprep.subr.bf16.mxu0 %v7210_v48  ;;  %v7261_v48 = vld [vmem:[#allocation8 + $0x490] sm:$0xff]  }
 0x1d3   :  { %6695 = vmatpush3.bf16.msra.mxu1 %v7214_v53  ;;  %v7264_v53 = vld [vmem:[#allocation8 + $0x498] sm:$0xff]  }
 0x1d4   :  { %3370 = vmatmul.mubr.bf16.gmra.mrb[68].mxu0 %v3127_v51  ;;  %6704 = vmatprep.subr.bf16.mxu1 %v7219_v59  ;;  %v3614_v51 = vpack.c.bf16 %v7257_v44, %v7256_v43  ;;  %v7307_v43 = vld [vmem:[#allocation2 + $0x80] ss:$8 sps:$4 sm:$0xff]   ;;  %v7308_v44 = vld [vmem:[#allocation2 + $0x90] ss:$8 sps:$4 sm:$0xff]  }
 0x1d5   :  { %3377 = vmatprep.mubr.bf16.mxu0 %v3131_v54  ;;  %6317 = vmatpush3.bf16.msra.mxu0 %v7213_v52  ;;  %v3618_v52 = vpack.c.bf16 %v7260_v47, %v7259_v46  ;;  %v7265_v54 = vld [vmem:[#allocation2 + $0x348] ss:$8 sps:$4 sm:$0xff]   ;;  %v7310_v46 = vld [vmem:[#allocation8 + $0x478] sm:$0xff]  }
 0x1d6   :  { %6318 = vmatprep.subr.bf16.mxu0 %v7215_v3  ;;  %6697 = vmatmul.mubr.bf16.vlgmr.msra.gmra.mrb[32].mxu1 %v2640_v6  ;;  %v7266_v3 = vld [vmem:[#allocation2 + $0x358] ss:$8 sps:$4 sm:$0xff]   ;;  %v7277_v6 = vld [vmem:[#allocation8 + $0x4e8] sm:$0xff]  }
 0x1d7   :  { %6700 = vmatprep.mubr.bf16.mxu1 %v2643_v11  ;;  %6705 = vmatpush3.bf16.msra.mxu1 %v7219_v59  ;;  %v7270_v59 = vld [vmem:[#allocation2 + $0x231] ss:$8 sps:$4 sm:$0xff]   ;;  %v7278_v11 = vld [vmem:[#allocation8 + $0x4a8] sm:$0xff]  }
 0x1d8   :  { %6706 = vmatprep.subr.bf16.mxu1 %v7228_v5 }
 0x1d9   :  { %6319 = vmatpush3.bf16.msra.mxu0 %v7216_v55  ;;  %v7267_v55 = vld [vmem:[#allocation8 + $0x440] sm:$0xff]  }
 0x1da   :  { %6320 = vmatprep.subr.bf16.mxu0 %v7224_v0  ;;  %v3129_v0 = vpack.c.bf16 %v7266_v3, %v7265_v54  ;;  %v7316_v54 = vld [vmem:[#allocation2 + $0x281] ss:$8 sps:$4 sm:$0xff]   ;;  %v7317_v3 = vld [vmem:[#allocation2 + $0x291] ss:$8 sps:$4 sm:$0xff]  }
 0x1db   :  { %6707 = vmatpush3.bf16.msra.mxu1 %v7228_v5  ;;  %v3617_v5 = vpack.c.bf16 %v7271_v60, %v7270_v59  ;;  %v7321_v59 = vld [vmem:[#allocation2 + $0xa8] ss:$8 sps:$4 sm:$0xff]   ;;  %v7322_v60 = vld [vmem:[#allocation2 + $0xb8] ss:$8 sps:$4 sm:$0xff]  }
 0x1dc   :  { %3378 = vmatmul.mubr.bf16.gmra.mrb[72].mxu0 %v3130_v7  ;;  %6708 = vmatprep.subr.bf16.mxu1 %v7233_v16  ;;  %v7279_v7 = vld [vmem:[#allocation2 + $0x398] ss:$8 sps:$4 sm:$0xff]  }
 0x1dd   :  { %3385 = vmatprep.mubr.bf16.mxu0 %v3134_v14  ;;  %6321 = vmatpush3.bf16.msra.mxu0 %v7227_v4  ;;  %v3132_v4 = vpack.c.bf16 %v7269_v58, %v7268_v56  ;;  %v7282_v14 = vld [vmem:[#allocation2 + $0x259] ss:$8 sps:$4 sm:$0xff]   ;;  %v7319_v56 = vld [vmem:[#allocation2 + $0x68] ss:$8 sps:$4 sm:$0xff]  }
 0x1de   :  { %6322 = vmatprep.subr.bf16.mxu0 %v7229_v8  ;;  %6701 = vmatmul.mubr.bf16.gmra.mrb[36].mxu1 %v2646_v22  ;;  %v7280_v8 = vld [vmem:[#allocation2 + $0x3a8] ss:$8 sps:$4 sm:$0xff]   ;;  %v7320_v58 = vld [vmem:[#allocation8 + $0x5a0] sm:$0xff]  }
 0x1df   :  { %6709 = vmatpush3.bf16.msra.mxu1 %v7233_v16  ;;  %6720 = vmatprep.mubr.bf16.mxu1 %v3126_v26  ;;  %v7284_v16 = vld [vmem:[#allocation2 + $0x231] ss:$8 sps:$4 sm:$0xff]   ;;  %v3135_v20 = vpack.c.bf16 %v7280_v8, %v7279_v7  ;;  %v7293_v26 = vld [vmem:[#allocation8 + $0x460] sm:$0xff]   ;;  %v7326_v7 = vld [vmem:[#allocation8 + $0x568] sm:$0xff]  }
 0x1e0   :  { %6710 = vmatprep.subr.bf16.mxu1 %v7242_v28  ;;  %v7287_v22 = vld [vmem:[#allocation8 + $0x4b0] sm:$0xff]   ;;  %v3613_v25 = vpack.c.bf16 %v7285_v17, %v7284_v16 }
 0x1e1   :  { %6323 = vmatpush3.bf16.msra.mxu0 %v7230_v15  ;;  %v7283_v15 = vld [vmem:[#allocation2 + $0x269] ss:$8 sps:$4 sm:$0xff]  }
 0x1e2   :  { %6324 = vmatprep.subr.bf16.mxu0 %v7238_v21  ;;  %v7289_v21 = vld [vmem:[#allocation2 + $0x40] ss:$8 sps:$4 sm:$0xff]   ;;  %v3620_v24 = vpack.c.bf16 %v7283_v15, %v7282_v14  ;;  %v7329_v8 = vld [vmem:[#allocation8 + $0x510] sm:$0xff]  }
 0x1e3   :  { %6711 = vmatpush3.bf16.msra.mxu1 %v7242_v28  ;;  %v7291_v28 = vld [vmem:[#allocation8 + $0x4f8] sm:$0xff]   ;;  %v7333_v14 = vld [vmem:[#allocation2 + $0x68] ss:$8 sps:$4 sm:$0xff]  }
 0x1e4   :  { %3386 = vmatmul.mubr.bf16.gmra.mrb[76].mxu0 %v3133_v27  ;;  %6712 = vmatprep.subr.bf16.mxu1 %v7245_v34  ;;  %v4101_v27 = vpack.c.bf16 %v7289_v21, %v7288_v19  ;;  %v7334_v15 = vld [vmem:[#allocation8 + $0x5b0] sm:$0xff]  }
 0x1e5   :  { %6325 = vmatpush3.bf16.msra.mxu0 %v7239_v23  ;;  %3848 = vmatprep.mubr.bf16.mxu0 %v3612_v30  ;;  %v7290_v23 = vld [vmem:[#allocation8 + $0x458] sm:$0xff]   ;;  %v7294_v30 = vld [vmem:[#allocation2 + $0x8] ss:$8 sps:$4 sm:$0xff]  }
 0x1e6   :  { %6326 = vmatprep.subr.bf16.mxu0 %v7243_v29  ;;  %v7292_v29 = vld [vmem:[#allocation8 + $0x4b8] sm:$0xff]   ;;  %v7335_v21 = vld [vmem:[#allocation8 + $0x570] sm:$0xff]  }
 0x1e7   :  { %6713 = vmatpush3.bf16.msra.mxu1 %v7245_v34  ;;  %v7298_v34 = vld [vmem:[#allocation2 + $0x68] ss:$8 sps:$4 sm:$0xff]  }
 0x1e8   :  { %6714 = vmatprep.subr.bf16.mxu1 %v7252_v39  ;;  %v7337_v17 = vld [vmem:[#allocation2 + $0x130] ss:$8 sps:$4 sm:$0xff]  }
 0x1e9   :  { %6327 = vmatpush3.bf16.msra.mxu0 %v7244_v31  ;;  %v7295_v31 = vld [vmem:[#allocation2 + $0x18] ss:$8 sps:$4 sm:$0xff]  }
 0x1ea   :  { %6364 = vmatprep.subr.bf16.mxu0 %v7248_v35  ;;  %v4100_v35 = vpack.c.bf16 %v7295_v31, %v7294_v30  ;;  %v7345_v30 = vld [vmem:[#allocation2 + $0x148] ss:$8 sps:$4 sm:$0xff]   ;;  %v7346_v31 = vld [vmem:[#allocation2 + $0x158] ss:$8 sps:$4 sm:$0xff]  }
 0x1eb   :  { %6715 = vmatpush3.bf16.msra.mxu1 %v7252_v39  ;;  %v7302_v39 = vld [vmem:[#allocation8 + $0x548] sm:$0xff]  }
 0x1ec   :  { %3849 = vmatmul.mubr.bf16.vlgmr.msra.gmra.mrb[80].mxu0 %v3611_v38  ;;  %6716 = vmatprep.subr.bf16.mxu1 %v7255_v57  ;;  %v7301_v38 = vld [vmem:[#allocation8 + $0x588] sm:$0xff]  }
 0x1ed   :  { %3856 = vmatprep.mubr.bf16.mxu0 %v3615_v41  ;;  %6365 = vmatpush3.bf16.msra.mxu0 %v7251_v13  ;;  %v4104_v13 = vpack.c.bf16 %v7298_v34, %v7297_v33  ;;  %v7304_v41 = vld [vmem:[#allocation2 + $0x30] ss:$8 sps:$4 sm:$0xff]   ;;  %v7348_v34 = vld [vmem:[#allocation8 + $0x528] sm:$0xff]  }
 0x1ee   :  { %6366 = vmatprep.subr.bf16.mxu0 %v7253_v40  ;;  %v7303_v40 = vld [vmem:[#allocation8 + $0x470] sm:$0xff]  }
 0x1ef   :  { %6717 = vmatpush3.bf16.msra.mxu1 %v7255_v57  ;;  %v7306_v57 = vld [vmem:[#allocation8 + $0x590] sm:$0xff]  }
 0x1f0   :  { %6718 = vmatprep.subr.bf16.mxu1 %v7262_v49 }
 0x1f1   :  { %6367 = vmatpush3.bf16.msra.mxu0 %v7254_v42  ;;  %v7305_v42 = vld [vmem:[#allocation2 + $0x40] ss:$8 sps:$4 sm:$0xff]  }
 0x1f2   :  { %6368 = vmatprep.subr.bf16.mxu0 %v7258_v45  ;;  %v7309_v45 = vld [vmem:[#allocation8 + $0x550] sm:$0xff]   ;;  %v4103_v47 = vpack.c.bf16 %v7305_v42, %v7304_v41 }
 0x1f3   :  { %6719 = vmatpush3.bf16.msra.mxu1 %v7262_v49  ;;  %v4107_v49 = vpack.c.bf16 %v7308_v44, %v7307_v43  ;;  %v7351_v41 = vld [vmem:[#allocation8 + $0x530] sm:$0xff]  }
 0x1f4   :  { %3857 = vmatmul.mubr.bf16.gmra.mrb[84].mxu0 %v3614_v51  ;;  %6728 = vmatprep.subr.bf16.mxu1 %v7267_v55  ;;  %v7313_v51 = vld [vmem:[#allocation2 + $0x259] ss:$8 sps:$4 sm:$0xff]   ;;  %v7354_v43 = vld [vmem:[#allocation8 + $0x650] sm:$0xff]  }
 0x1f5   :  { %3864 = vmatprep.mubr.bf16.mxu0 %v3618_v52  ;;  %6369 = vmatpush3.bf16.msra.mxu0 %v7261_v48  ;;  %v7311_v48 = vld [vmem:[#allocation8 + $0x598] sm:$0xff]   ;;  %v7314_v52 = vld [vmem:[#allocation2 + $0x269] ss:$8 sps:$4 sm:$0xff]  }
 0x1f6   :  { %6370 = vmatprep.subr.bf16.mxu0 %v7263_v50  ;;  %6721 = vmatmul.mubr.bf16.vlgmr.msra.gmra.mrb[32].mxu1 %v3129_v0  ;;  %v7312_v50 = vld [vmem:[#allocation8 + $0x558] sm:$0xff]   ;;  %v3616_v63 = vpack.c.bf16 %v7314_v52, %v7313_v51  ;;  %v7325_v0 = vld [vmem:[#allocation8 + $0x5a8] sm:$0xff]  }
 0x1f7   :  { %6724 = vmatprep.mubr.bf16.mxu1 %v3132_v4  ;;  %6729 = vmatpush3.bf16.msra.mxu1 %v7267_v55  ;;  %v7318_v55 = vld [vmem:[#allocation2 + $0x58] ss:$8 sps:$4 sm:$0xff]   ;;  %v7327_v4 = vld [vmem:[#allocation2 + $0x2a9] ss:$8 sps:$4 sm:$0xff]  }
 0x1f8   :  { %6730 = vmatprep.subr.bf16.mxu1 %v7276_v2  ;;  %v7353_v42 = vld [vmem:[#allocation2 + $0x130] ss:$8 sps:$4 sm:$0xff]  }
 0x1f9   :  { %6371 = vmatpush3.bf16.msra.mxu0 %v7264_v53  ;;  %v7315_v53 = vld [vmem:[#allocation8 + $0x500] sm:$0xff]   ;;  %v7355_v44 = vld [vmem:[#allocation2 + $0x170] ss:$8 sps:$4 sm:$0xff]  }
 0x1fa   :  { %6372 = vmatprep.subr.bf16.mxu0 %v7272_v61  ;;  %v7323_v61 = vld [vmem:[#allocation8 + $0x560] sm:$0xff]   ;;  %v7358_v51 = vld [vmem:[#allocation8 + $0x538] sm:$0xff]  }
 0x1fb   :  { %6731 = vmatpush3.bf16.msra.mxu1 %v7276_v2  ;;  %v4106_v2 = vpack.c.bf16 %v7319_v56, %v7318_v55  ;;  %v7359_v52 = vld [vmem:[#allocation8 + $0x658] sm:$0xff]  }
 0x1fc   :  { %3865 = vmatmul.mubr.bf16.gmra.mrb[88].mxu0 %v3617_v5  ;;  %6732 = vmatprep.subr.bf16.mxu1 %v7281_v12  ;;  %v7328_v5 = vld [vmem:[#allocation2 + $0x2b9] ss:$8 sps:$4 sm:$0xff]  }
 0x1fd   :  { %3872 = vmatprep.mubr.bf16.mxu0 %v3621_v9  ;;  %6373 = vmatpush3.bf16.msra.mxu0 %v7275_v1  ;;  %v3619_v1 = vpack.c.bf16 %v7317_v3, %v7316_v54  ;;  %v7330_v9 = vld [vmem:[#allocation2 + $0x80] ss:$8 sps:$4 sm:$0xff]   ;;  %v3622_v16 = vpack.c.bf16 %v7328_v5, %v7327_v4  ;;  %v7360_v56 = vld [vmem:[#allocation8 + $0x618] sm:$0xff]  }
 0x1fe   :  { %6374 = vmatprep.subr.bf16.mxu0 %v7277_v6  ;;  %6725 = vmatmul.mubr.bf16.gmra.mrb[36].mxu1 %v3135_v20  ;;  %v4110_v6 = vpack.c.bf16 %v7322_v60, %v7321_v59  ;;  %v7362_v60 = vld [vmem:[#allocation2 + $0x90] ss:$8 sps:$4 sm:$0xff]  }
 0x1ff   :  { %6744 = vmatprep.mubr.bf16.mxu1 %v3613_v25  ;;  %6733 = vmatpush3.bf16.msra.mxu1 %v7281_v12  ;;  %v7332_v12 = vld [vmem:[#allocation2 + $0x58] ss:$8 sps:$4 sm:$0xff]   ;;  %v7370_v5 = vld [vmem:[#allocation2 + $0x1a8] ss:$8 sps:$4 sm:$0xff]  }
 0x200   :  { %6734 = vmatprep.subr.bf16.mxu1 %v7290_v23  ;;  %v4102_v20 = vpack.c.bf16 %v7333_v14, %v7332_v12  ;;  %v7340_v25 = vld [vmem:[#allocation8 + $0x578] sm:$0xff]  }
 0x201   :  { %6375 = vmatpush3.bf16.msra.mxu0 %v7278_v11  ;;  %v7331_v11 = vld [vmem:[#allocation2 + $0x90] ss:$8 sps:$4 sm:$0xff]  }
 0x202   :  { %6376 = vmatprep.subr.bf16.mxu0 %v7286_v18  ;;  %v7336_v18 = vld [vmem:[#allocation2 + $0x120] ss:$8 sps:$4 sm:$0xff]   ;;  %v4109_v19 = vpack.c.bf16 %v7331_v11, %v7330_v9 }
 0x203   :  { %6735 = vmatpush3.bf16.msra.mxu1 %v7290_v23  ;;  %v4590_v23 = vpack.c.bf16 %v7337_v17, %v7336_v18  ;;  %v7369_v4 = vld [vmem:[#allocation2 + $0x198] ss:$8 sps:$4 sm:$0xff]  }
 0x204   :  { %3873 = vmatmul.mubr.bf16.gmra.mrb[92].mxu0 %v3620_v24  ;;  %6736 = vmatprep.subr.bf16.mxu1 %v7293_v26  ;;  %v7339_v24 = vld [vmem:[#allocation8 + $0x5b8] sm:$0xff]   ;;  %v7371_v11 = vld [vmem:[#allocation8 + $0x620] sm:$0xff]   ;;  %v4599_v17 = vpack.c.bf16 %v7370_v5, %v7369_v4  ;;  %v7393_v4 = vld [vmem:[#allocation2 + $0x69] ss:$8 sps:$4 sm:$0xff]  }
 0x205   :  { %4337 = vmatprep.mubr.bf16.mxu0 %v4101_v27  ;;  %6377 = vmatpush3.bf16.msra.mxu0 %v7287_v22  ;;  %v7338_v22 = vld [vmem:[#allocation8 + $0x518] sm:$0xff]   ;;  %v7341_v27 = vld [vmem:[#allocation8 + $0x520] sm:$0xff]  }
 0x206   :  { %6378 = vmatprep.subr.bf16.mxu0 %v7291_v28  ;;  %v7342_v28 = vld [vmem:[#allocation2 + $0xf8] ss:$8 sps:$4 sm:$0xff]  }
 0x207   :  { %6737 = vmatpush3.bf16.msra.mxu1 %v7293_v26  ;;  %v7344_v26 = vld [vmem:[#allocation8 + $0x640] sm:$0xff]  }
 0x208   :  { %6738 = vmatprep.subr.bf16.mxu1 %v7300_v37 }
 0x209   :  { %6379 = vmatpush3.bf16.msra.mxu0 %v7292_v29  ;;  %v7343_v29 = vld [vmem:[#allocation2 + $0x108] ss:$8 sps:$4 sm:$0xff]  }
 0x20a   :  { %6416 = vmatprep.subr.bf16.mxu0 %v7296_v32  ;;  %v7347_v32 = vld [vmem:[#allocation8 + $0x600] sm:$0xff]   ;;  %v4589_v33 = vpack.c.bf16 %v7343_v29, %v7342_v28 }
 0x20b   :  { %6739 = vmatpush3.bf16.msra.mxu1 %v7300_v37  ;;  %v4593_v37 = vpack.c.bf16 %v7346_v31, %v7345_v30 }
 0x20c   :  { %4338 = vmatmul.mubr.bf16.vlgmr.msra.gmra.mrb[96].mxu0 %v4100_v35  ;;  %6740 = vmatprep.subr.bf16.mxu1 %v7303_v40 }
 0x20d   :  { %4345 = vmatprep.mubr.bf16.mxu0 %v4104_v13  ;;  %6417 = vmatpush3.bf16.msra.mxu0 %v7299_v36  ;;  %v7349_v36 = vld [vmem:[#allocation8 + $0x648] sm:$0xff]  }
 0x20e   :  { %6418 = vmatprep.subr.bf16.mxu0 %v7301_v38  ;;  %v7350_v13 = vld [vmem:[#allocation8 + $0x608] sm:$0xff]  }
 0x20f   :  { %6741 = vmatpush3.bf16.msra.mxu1 %v7303_v40 }
 0x210   :  { %6742 = vmatprep.subr.bf16.mxu1 %v7310_v46 }
 0x211   :  { %6419 = vmatpush3.bf16.msra.mxu0 %v7302_v39 }
 0x212   :  { %6420 = vmatprep.subr.bf16.mxu0 %v7306_v57 }
 0x213   :  { %6743 = vmatpush3.bf16.msra.mxu1 %v7310_v46 }
 0x214   :  { %4346 = vmatmul.mubr.bf16.gmra.mrb[100].mxu0 %v4103_v47  ;;  %6752 = vmatprep.subr.bf16.mxu1 %v7315_v53  ;;  %v7352_v47 = vld [vmem:[#allocation2 + $0x120] ss:$8 sps:$4 sm:$0xff]  }
 0x215   :  { %4353 = vmatprep.mubr.bf16.mxu0 %v4107_v49  ;;  %6421 = vmatpush3.bf16.msra.mxu0 %v7309_v45  ;;  %v7356_v45 = vld [vmem:[#allocation2 + $0x180] ss:$8 sps:$4 sm:$0xff]   ;;  %v4592_v49 = vpack.c.bf16 %v7353_v42, %v7352_v47 }
 0x216   :  { %6422 = vmatprep.subr.bf16.mxu0 %v7311_v48  ;;  %6745 = vmatmul.mubr.bf16.vlgmr.msra.gmra.mrb[32].mxu1 %v3616_v63  ;;  %v7357_v48 = vld [vmem:[#allocation8 + $0x610] sm:$0xff]  }
 0x217   :  { %6748 = vmatprep.mubr.bf16.mxu1 %v3619_v1  ;;  %6753 = vmatpush3.bf16.msra.mxu1 %v7315_v53  ;;  %v4596_v53 = vpack.c.bf16 %v7356_v45, %v7355_v44  ;;  %v7367_v1 = vld [vmem:[#allocation2 + $0x158] ss:$8 sps:$4 sm:$0xff]  }
 0x218   :  { %6754 = vmatprep.subr.bf16.mxu1 %v7324_v62  ;;  %v7386_v45 = vld [vmem:[#allocation8 + $0x5d8] sm:$0xff]  }
 0x219   :  { %6423 = vmatpush3.bf16.msra.mxu0 %v7312_v50 }
 0x21a   :  { %6424 = vmatprep.subr.bf16.mxu0 %v7320_v58  ;;  %v7361_v58 = vld [vmem:[#allocation2 + $0x80] ss:$8 sps:$4 sm:$0xff]  }
 0x21b   :  { %6755 = vmatpush3.bf16.msra.mxu1 %v7324_v62  ;;  %v7364_v62 = vld [vmem:[#allocation2 + $0xa8] ss:$8 sps:$4 sm:$0xff]  }
 0x21c   :  { %4354 = vmatmul.mubr.bf16.gmra.mrb[104].mxu0 %v4106_v2  ;;  %6756 = vmatprep.subr.bf16.mxu1 %v7329_v8  ;;  %v7368_v2 = vld [vmem:[#allocation8 + $0x660] sm:$0xff]  }
 0x21d   :  { %4361 = vmatprep.mubr.bf16.mxu0 %v4110_v6  ;;  %6425 = vmatpush3.bf16.msra.mxu0 %v7323_v61  ;;  %v7363_v61 = vld [vmem:[#allocation8 + $0x5c0] sm:$0xff]   ;;  %v7366_v6 = vld [vmem:[#allocation2 + $0x148] ss:$8 sps:$4 sm:$0xff]  }
 0x21e   :  { %6426 = vmatprep.subr.bf16.mxu0 %v7325_v0  ;;  %6749 = vmatmul.mubr.bf16.gmra.mrb[36].mxu1 %v3622_v16  ;;  %v7365_v0 = vld [vmem:[#allocation2 + $0xb8] ss:$8 sps:$4 sm:$0xff]   ;;  %v4595_v9 = vpack.c.bf16 %v7367_v1, %v7366_v6  ;;  %v7373_v16 = vld [vmem:[#allocation8 + $0x668] sm:$0xff]  }
 0x21f   :  { %6768 = vmatprep.mubr.bf16.mxu1 %v4102_v20  ;;  %6757 = vmatpush3.bf16.msra.mxu1 %v7329_v8  ;;  %v4108_v8 = vpack.c.bf16 %v7365_v0, %v7364_v62  ;;  %v7375_v20 = vld [vmem:[#allocation2 + $0xd0] ss:$8 sps:$4 sm:$0xff]   ;;  %v7389_v0 = vld [vmem:[#allocation8 + $0x5e0] sm:$0xff]  }
 0x220   :  { %6758 = vmatprep.subr.bf16.mxu1 %v7338_v22 }
 0x221   :  { %6427 = vmatpush3.bf16.msra.mxu0 %v7326_v7  ;;  %v4105_v7 = vpack.c.bf16 %v7362_v60, %v7361_v58  ;;  %v7391_v58 = vld [vmem:[#allocation2 + $0x19] ss:$8 sps:$4 sm:$0xff]  }
 0x222   :  { %6428 = vmatprep.subr.bf16.mxu0 %v7334_v15  ;;  %v7372_v15 = vld [vmem:[#allocation8 + $0x5c8] sm:$0xff]   ;;  %v7388_v60 = vld [vmem:[#allocation8 + $0x638] sm:$0xff]  }
 0x223   :  { %6759 = vmatpush3.bf16.msra.mxu1 %v7338_v22 }
 0x224   :  { %4362 = vmatmul.mubr.bf16.gmra.mrb[108].mxu0 %v4109_v19  ;;  %6760 = vmatprep.subr.bf16.mxu1 %v7341_v27 }
 0x225   :  { %4826 = vmatprep.mubr.bf16.mxu0 %v4590_v23  ;;  %6429 = vmatpush3.bf16.msra.mxu0 %v7335_v21  ;;  %v6068_v35 = vpop.f32.mrb[16].mxu1  ;;  %v7376_v21 = vld [vmem:[#allocation2 + $0xe0] ss:$8 sps:$4 sm:$0xff]  }
 0x226   :  { %6430 = vmatprep.subr.bf16.mxu0 %v7339_v24  ;;  %v6069_v38 = vpop.f32.mrb[17].mxu1 }
 0x227   :  { %6761 = vmatpush3.bf16.msra.mxu1 %v7341_v27  ;;  %v7866_v39 = vadd.f32 %v6069_v38, %v6068_v35  ;;  %v6071_v40 = vpop.f32.mrb[18].mxu1  ;;  %v7374_v27 = vld [vmem:[#allocation8 + $0x628] sm:$0xff]   ;;  %v7381_v35 = vld [vmem:[#allocation2 + $0x158] ss:$8 sps:$4 sm:$0xff]  }
 0x228   :  { %v6072_v57 = vpop.f32.mrb[19].mxu1  ;;  %6762 = vmatprep.subr.bf16.mxu1 %v7348_v34  ;;  %v7384_v38 = vld [vmem:[#allocation2 + $0x31] ss:$8 sps:$4 sm:$0xff]  }
 0x229   :  { %6431 = vmatpush3.bf16.msra.mxu0 %v7340_v25  ;;  %v7868_v46 = vadd.f32 %v6072_v57, %v6071_v40  ;;  %v7383_v57 = vld [vmem:[#allocation8 + $0x630] sm:$0xff]  }
 0x22a   :  { %6468 = vmatprep.subr.bf16.mxu0 %v7344_v26  ;;  %v7377_v26 = vld [vmem:[#allocation8 + $0x5d0] sm:$0xff]  }
 0x22b   :  { %6763 = vmatpush3.bf16.msra.mxu1 %v7348_v34  ;;  %v7379_v34 = vld [vmem:[#allocation2 + $0x180] ss:$8 sps:$4 sm:$0xff]  }
 0x22c   :  { %4827 = vmatmul.mubr.bf16.vlgmr.msra.gmra.mrb[112].mxu0 %v4589_v33  ;;  %6764 = vmatprep.subr.bf16.mxu1 %v7351_v41  ;;  %v7378_v33 = vld [vmem:[#allocation2 + $0x170] ss:$8 sps:$4 sm:$0xff]  }
 0x22d   :  { %4834 = vmatprep.mubr.bf16.mxu0 %v4593_v37  ;;  %6469 = vmatpush3.bf16.msra.mxu0 %v7347_v32  ;;  %v6074_v50 = vpop.f32.mrb[20].mxu1  ;;  %v7382_v37 = vld [vmem:[#allocation8 + $0x670] sm:$0xff]  }
 0x22e   :  { %6470 = vmatprep.subr.bf16.mxu0 %v7349_v36  ;;  %v6075_v54 = vpop.f32.mrb[21].mxu1  ;;  %v4111_v36 = vpack.c.bf16 %v7376_v21, %v7375_v20  ;;  %v7399_v20 = vld [vmem:[#allocation2 + $0x91] ss:$8 sps:$4 sm:$0xff]  }
 0x22f   :  { %6765 = vmatpush3.bf16.msra.mxu1 %v7351_v41  ;;  %v7870_v3 = vadd.f32 %v6075_v54, %v6074_v50  ;;  %v6077_v55 = vpop.f32.mrb[22].mxu1  ;;  %v7380_v41 = vld [vmem:[#allocation2 + $0x148] ss:$8 sps:$4 sm:$0xff]   ;;  %v7387_v50 = vld [vmem:[#allocation8 + $0x678] sm:$0xff]  }
 0x230   :  { %v6078_v59 = vpop.f32.mrb[23].mxu1  ;;  %6766 = vmatprep.subr.bf16.mxu1 %v7358_v51  ;;  %v4591_v42 = vpack.c.bf16 %v7381_v35, %v7380_v41  ;;  %v7404_v35 = vld [vmem:[#allocation2 + $0x198] ss:$8 sps:$4 sm:$0xff]   ;;  %v7408_v41 = vld [vmem:[#allocation2 + $0xa9] ss:$8 sps:$4 sm:$0xff]  }
 0x231   :  { %6471 = vmatpush3.bf16.msra.mxu0 %v7350_v13  ;;  %v7872_v63 = vadd.f32 %v6078_v59, %v6077_v55  ;;  %v7385_v13 = vld [vmem:[#allocation2 + $0x41] ss:$8 sps:$4 sm:$0xff]  }
 0x232   :  { %6472 = vmatprep.subr.bf16.mxu0 %v7354_v43  ;;  %v5077_v47 = vpack.c.bf16 %v7385_v13, %v7384_v38  ;;  %v7407_v38 = vld [vmem:[#allocation2 + $0x69] ss:$8 sps:$4 sm:$0xff]  }
 0x233   :  { %6767 = vmatpush3.bf16.msra.mxu1 %v7358_v51 }
 0x234   :  { %4835 = vmatmul.mubr.bf16.gmra.mrb[116].mxu0 %v4592_v49  ;;  %6776 = vmatprep.subr.bf16.mxu1 %v7363_v61 }
 0x235   :  { %4842 = vmatprep.mubr.bf16.mxu0 %v4596_v53  ;;  %6473 = vmatpush3.bf16.msra.mxu0 %v7357_v48 }
 0x236   :  { %6474 = vmatprep.subr.bf16.mxu0 %v7359_v52  ;;  %v6080_v12 = vpop.f32.mrb[24].mxu1  ;;  %6769 = vmatmul.mubr.bf16.vlgmr.msra.gmra.mrb[32].mxu1 %v4105_v7  ;;  %v7394_v7 = vld [vmem:[#allocation8 + $0x5e8] sm:$0xff]  }
 0x237   :  { %v6081_v18 = vpop.f32.mrb[25].mxu1  ;;  %6772 = vmatprep.mubr.bf16.mxu1 %v4108_v8  ;;  %6777 = vmatpush3.bf16.msra.mxu1 %v7363_v61 }
 0x238   :  { %v7874_v22 = vadd.f32 %v6081_v18, %v6080_v12  ;;  %v6083_v24 = vpop.f32.mrb[26].mxu1  ;;  %6778 = vmatprep.subr.bf16.mxu1 %v7372_v15 }
 0x239   :  { %6475 = vmatpush3.bf16.msra.mxu0 %v7360_v56  ;;  %v6084_v28 = vpop.f32.mrb[27].mxu1  ;;  %v7390_v56 = vld [vmem:[#allocation2 + $0x9] ss:$8 sps:$4 sm:$0xff]  }
 0x23a   :  { %6476 = vmatprep.subr.bf16.mxu0 %v7368_v2  ;;  %v7879_v31 = vadd.f32 %v6084_v28, %v6083_v24  ;;  %v7392_v2 = vld [vmem:[#allocation2 + $0x59] ss:$8 sps:$4 sm:$0xff]   ;;  %v5076_v5 = vpack.c.bf16 %v7391_v58, %v7390_v56 }
 0x23b   :  { %6779 = vmatpush3.bf16.msra.mxu1 %v7372_v15  ;;  %v7395_v15 = vld [vmem:[#allocation8 + $0x5f0] sm:$0xff]  }
 0x23c   :  { %4843 = vmatmul.mubr.bf16.gmra.mrb[120].mxu0 %v4595_v9  ;;  %6780 = vmatprep.subr.bf16.mxu1 %v7377_v26  ;;  %v5080_v9 = vpack.c.bf16 %v7393_v4, %v7392_v2  ;;  %v7415_v58 = vld [vmem:[#allocation2 + $0x91] ss:$8 sps:$4 sm:$0xff]  }
 0x23d   :  { %4850 = vmatprep.mubr.bf16.mxu0 %v4599_v17  ;;  %6477 = vmatpush3.bf16.msra.mxu0 %v7371_v11  ;;  %v7397_v17 = vld [vmem:[#allocation2 + $0x41] ss:$8 sps:$4 sm:$0xff]  }
 0x23e   :  { %6478 = vmatprep.subr.bf16.mxu0 %v7373_v16  ;;  %v6086_v43 = vpop.f32.mrb[28].mxu1  ;;  %6773 = vmatmul.mubr.bf16.gmra.mrb[36].mxu1 %v4111_v36  ;;  %v7396_v16 = vld [vmem:[#allocation2 + $0x31] ss:$8 sps:$4 sm:$0xff]  }
 0x23f   :  { %v6120_v14 = vpop.f32.mrb[16].mxu0  ;;  %v6087_v48 = vpop.f32.mrb[29].mxu1  ;;  %6792 = vmatprep.mubr.bf16.mxu1 %v4591_v42  ;;  %6781 = vmatpush3.bf16.msra.mxu1 %v7377_v26  ;;  %v5079_v24 = vpack.c.bf16 %v7397_v17, %v7396_v16  ;;  %v7401_v26 = vld [vmem:[#allocation2 + $0x170] ss:$8 sps:$4 sm:$0xff]  }
 0x240   :  { %v6121_v19 = vpop.f32.mrb[17].mxu0  ;;  %v6089_v52 = vpop.f32.mrb[30].mxu1  ;;  %6782 = vmatprep.subr.bf16.mxu1 %v7386_v45  ;;  %v7405_v36 = vld [vmem:[#allocation2 + $0x1a8] ss:$8 sps:$4 sm:$0xff]  }
 0x241   :  { %v6122_v23 = vadd.f32 %v6121_v19, %v6120_v14  ;;  %v6123_v25 = vpop.f32.mrb[18].mxu0  ;;  %6479 = vmatpush3.bf16.msra.mxu0 %v7374_v27  ;;  %v6090_v54 = vpop.f32.mrb[31].mxu1  ;;  %v7398_v19 = vld [vmem:[#allocation2 + $0x81] ss:$8 sps:$4 sm:$0xff]  }
 0x242   :  { %v6124_v29 = vpop.f32.mrb[19].mxu0  ;;  %6480 = vmatprep.subr.bf16.mxu0 %v7382_v37  ;;  %v6091_v61 = vadd.f32 %v6090_v54, %v6089_v52  ;;  %v5083_v27 = vpack.c.bf16 %v7399_v20, %v7398_v19  ;;  %v7406_v37 = vld [vmem:[#allocation2 + $0x59] ss:$8 sps:$4 sm:$0xff]  }
 0x243   :  { %v7877_v30 = vadd.f32 %v6122_v23, %v7866_v39  ;;  %v6125_v32 = vadd.f32 %v6124_v29, %v6123_v25  ;;  %v4598_v39 = vpack.c.bf16 %v7379_v34, %v7378_v33  ;;  %6783 = vmatpush3.bf16.msra.mxu1 %v7386_v45  ;;  %v7400_v23 = vld [vmem:[#allocation8 + $0x5f8] sm:$0xff]   ;;  %v7402_v33 = vld [vmem:[#allocation2 + $0x180] ss:$8 sps:$4 sm:$0xff]  }
 0x244   :  { %6784 = vmatprep.subr.bf16.mxu1 %v7389_v0  ;;  %v7403_v34 = vld [vmem:[#allocation8 + $0x680] sm:$0xff]   ;;  %v4594_v42 = vpack.c.bf16 %v7402_v33, %v7401_v26  ;;  %v7410_v45 = vld [vmem:[#allocation8 + $0x688] sm:$0xff]  }
 0x245   :  { %v7882_v40 = vadd.f32 %v6125_v32, %v7868_v46  ;;  %4851 = vmatmul.mubr.bf16.gmra.mrb[124].mxu0 %v4598_v39  ;;  %v6088_v46 = vadd.f32 %v6087_v48, %v6086_v43  ;;  %v7409_v39 = vld [vmem:[#allocation2 + $0xb9] ss:$8 sps:$4 sm:$0xff]   ;;  %v5082_v43 = vpack.c.bf16 %v7407_v38, %v7406_v37 }
 0x246   :  { %5313 = vmatprep.mubr.bf16.mxu0 %v5077_v47  ;;  %6481 = vmatpush3.bf16.msra.mxu0 %v7383_v57  ;;  %v4597_v57 = vpack.c.bf16 %v7405_v36, %v7404_v35  ;;  %v5086_v47 = vpack.c.bf16 %v7409_v39, %v7408_v41  ;;  %v7414_v54 = vld [vmem:[#allocation2 + $0x81] ss:$8 sps:$4 sm:$0xff]   ;;  %v7427_v39 = vld [vmem:[#allocation2 + $0xd1] ss:$8 sps:$4 sm:$0xff]  }
 0x247   :  { %v6126_v44 = vpop.f32.mrb[20].mxu0  ;;  %6482 = vmatprep.subr.bf16.mxu0 %v7387_v50  ;;  %6785 = vmatpush3.bf16.msra.mxu1 %v7389_v0  ;;  %v7412_v50 = vld [vmem:[#allocation2 + $0x1d0] ss:$8 sps:$4 sm:$0xff]   ;;  %v5085_v2 = vpack.c.bf16 %v7415_v58, %v7414_v54  ;;  %v7423_v33 = vld [vmem:[#allocation2 + $0x81] ss:$8 sps:$4 sm:$0xff]  }
 0x248   :  { %v6127_v49 = vpop.f32.mrb[21].mxu0  ;;  %6786 = vmatprep.subr.bf16.mxu1 %v7394_v7  ;;  %v7426_v35 = vld [vmem:[#allocation2 + $0xb9] ss:$8 sps:$4 sm:$0xff]  }
 0x249   :  { %v6128_v51 = vadd.f32 %v6127_v49, %v6126_v44  ;;  %v6129_v53 = vpop.f32.mrb[22].mxu0  ;;  %v7411_v49 = vld [vmem:[#allocation2 + $0x1c0] ss:$8 sps:$4 sm:$0xff]  }
 0x24a   :  { %v6130_v55 = vpop.f32.mrb[23].mxu0  ;;  %6483 = vmatpush3.bf16.msra.mxu0 %v7388_v60  ;;  %v7416_v60 = vld [vmem:[#allocation2 + $0x59] ss:$8 sps:$4 sm:$0xff]  }
 0x24b   :  { %v7885_v59 = vadd.f32 %v6128_v51, %v7870_v3  ;;  %v6131_v62 = vadd.f32 %v6130_v55, %v6129_v53  ;;  %6787 = vmatpush3.bf16.msra.mxu1 %v7394_v7  ;;  %v7413_v53 = vld [vmem:[#allocation8 + $0x690] sm:$0xff]  }
 0x24c   :  { %6788 = vmatprep.subr.bf16.mxu1 %v7395_v15 }
 0x24d   :  { %v7888_v1 = vadd.f32 %v6131_v62, %v7872_v63  ;;  %5314 = vmatmul.mubr.bf16.vlgmr.msra.gmra.mrb[128].mxu0 %v5076_v5  ;;  %v4600_v62 = vpack.c.bf16 %v7412_v50, %v7411_v49 }
 0x24e   :  { %5321 = vmatprep.mubr.bf16.mxu0 %v5080_v9 }
 0x24f   :  { %v6132_v6 = vpop.f32.mrb[24].mxu0  ;;  %6789 = vmatpush3.bf16.msra.mxu1 %v7395_v15  ;;  %v7420_v15 = vld [vmem:[#allocation8 + $0x6a8] sm:$0xff]  }
 0x250   :  { %v6133_v8 = vpop.f32.mrb[25].mxu0  ;;  %6790 = vmatprep.subr.bf16.mxu1 %v7400_v23 }
 0x251   :  { %v6134_v3 = vadd.f32 %v6133_v8, %v6132_v6  ;;  %v6135_v11 = vpop.f32.mrb[26].mxu0  ;;  %v7418_v6 = vld [vmem:[#allocation8 + $0x698] sm:$0xff]  }
 0x252   :  { %v6136_v12 = vpop.f32.mrb[27].mxu0 }
 0x253   :  { %v7891_v63 = vadd.f32 %v6134_v3, %v7874_v22  ;;  %v6137_v14 = vadd.f32 %v6136_v12, %v6135_v11  ;;  %6791 = vmatpush3.bf16.msra.mxu1 %v7400_v23 }
 0x254   :  { %6800 = vmatprep.subr.bf16.mxu1 %v7403_v34 }
 0x255   :  { %v7894_v18 = vadd.f32 %v6137_v14, %v7879_v31  ;;  %5322 = vmatmul.mubr.bf16.gmra.mrb[132].mxu0 %v5079_v24  ;;  %v7421_v24 = vld [vmem:[#allocation8 + $0x6b0] sm:$0xff]  }
 0x256   :  { %5329 = vmatprep.mubr.bf16.mxu0 %v5083_v27  ;;  %6793 = vmatmul.mubr.bf16.vlgmr.msra.gmra.mrb[32].mxu1 %v4594_v42  ;;  %v7428_v42 = vld [vmem:[#allocation2 + $0xe1] ss:$8 sps:$4 sm:$0xff]  }
 0x257   :  { %v6138_v21 = vpop.f32.mrb[28].mxu0  ;;  %6796 = vmatprep.mubr.bf16.mxu1 %v4597_v57  ;;  %6801 = vmatpush3.bf16.msra.mxu1 %v7403_v34  ;;  %v7424_v34 = vld [vmem:[#allocation2 + $0x91] ss:$8 sps:$4 sm:$0xff]  }
 0x258   :  { %v6139_v25 = vpop.f32.mrb[29].mxu0  ;;  %6802 = vmatprep.subr.bf16.mxu1 %v7410_v45 }
 0x259   :  { %v6140_v28 = vadd.f32 %v6139_v25, %v6138_v21  ;;  %v6141_v29 = vpop.f32.mrb[30].mxu0 }
 0x25a   :  { %v6142_v22 = vpop.f32.mrb[31].mxu0 }
 0x25b   :  { %v7896_v32 = vadd.f32 %v6140_v28, %v6088_v46  ;;  %v6143_v31 = vadd.f32 %v6142_v22, %v6141_v29  ;;  %6803 = vmatpush3.bf16.msra.mxu1 %v7410_v45 }
 0x25c   :  { %6804 = vmatprep.subr.bf16.mxu1 %v7413_v53 }
 0x25d   :  { %v7898_v13 = vadd.f32 %v6143_v31, %v6091_v61  ;;  %5330 = vmatmul.mubr.bf16.gmra.mrb[136].mxu0 %v5082_v43  ;;  %v7417_v61 = vld [vmem:[#allocation2 + $0x69] ss:$8 sps:$4 sm:$0xff]  }
 0x25e   :  { %5337 = vmatprep.mubr.bf16.mxu0 %v5086_v47  ;;  %v5078_v4 = vpack.c.bf16 %v7417_v61, %v7416_v60  ;;  %6797 = vmatmul.mubr.bf16.gmra.mrb[36].mxu1 %v4600_v62  ;;  %v5087_v47 = vpack.c.bf16 %v7428_v42, %v7427_v39 }
 0x25f   :  { %v6172_v44 = vpop.f32.mrb[32].mxu0  ;;  %6805 = vmatpush3.bf16.msra.mxu1 %v7413_v53 }
 0x260   :  { %v6173_v48 = vpop.f32.mrb[33].mxu0  ;;  %6816 = vmatprep.mubr.bf16.mxu1 %v5078_v4  ;;  %6806 = vmatprep.subr.bf16.mxu1 %v7418_v6 }
 0x261   :  { %v6174_v46 = vadd.f32 %v6173_v48, %v6172_v44  ;;  %v6175_v51 = vpop.f32.mrb[34].mxu0 }
 0x262   :  { %v6176_v52 = vpop.f32.mrb[35].mxu0 }
 0x263   :  { %v7901_v55 = vadd.f32 %v7877_v30, %v6174_v46  ;;  %v6177_v56 = vadd.f32 %v6176_v52, %v6175_v51  ;;  %6807 = vmatpush3.bf16.msra.mxu1 %v7418_v6 }
 0x265   :  { %v7904_v0 = vadd.f32 %v7882_v40, %v6177_v56  ;;  %5338 = vmatmul.mubr.bf16.gmra.mrb[140].mxu0 %v5085_v2  ;;  %v7419_v40 = vld [vmem:[#allocation8 + $0x6a0] sm:$0xff]  }
 0x266   :  { %6808 = vmatprep.subr.bf16.mxu1 %v7419_v40 }
 0x267   :  { %v6178_v5 = vpop.f32.mrb[36].mxu0  ;;  %6809 = vmatpush3.bf16.msra.mxu1 %v7419_v40 }
 0x268   :  { %v6179_v7 = vpop.f32.mrb[37].mxu0  ;;  %6810 = vmatprep.subr.bf16.mxu1 %v7420_v15 }
 0x269   :  { %v6180_v30 = vadd.f32 %v6179_v7, %v6178_v5  ;;  %v6181_v8 = vpop.f32.mrb[38].mxu0 }
 0x26a   :  { %v6182_v9 = vpop.f32.mrb[39].mxu0 }
 0x26b   :  { %v6841_v3 = vadd.f32 %v7885_v59, %v6180_v30  ;;  %v6183_v11 = vadd.f32 %v6182_v9, %v6181_v8  ;;  %6811 = vmatpush3.bf16.msra.mxu1 %v7420_v15 }
 0x26c   :  { %6812 = vmatprep.subr.bf16.mxu1 %v7421_v24 }
 0x26d   :  { %v6859_v12 = vadd.f32 %v7888_v1, %v6183_v11  ;;  %v7422_v1 = vld [vmem:[#allocation8 + $0x6b8] sm:$0xff]  }
 0x26f   :  { %v6184_v14 = vpop.f32.mrb[40].mxu0  ;;  %6813 = vmatpush3.bf16.msra.mxu1 %v7421_v24 }
 0x270   :  { %v6185_v16 = vpop.f32.mrb[41].mxu0  ;;  %6814 = vmatprep.subr.bf16.mxu1 %v7422_v1 }
 0x271   :  { %v6186_v17 = vadd.f32 %v6185_v16, %v6184_v14  ;;  %v6187_v19 = vpop.f32.mrb[42].mxu0 }
 0x272   :  { %v6188_v20 = vpop.f32.mrb[43].mxu0 }
 0x273   :  { %v6886_v21 = vadd.f32 %v7891_v63, %v6186_v17  ;;  %v6189_v23 = vadd.f32 %v6188_v20, %v6187_v19  ;;  %v7425_v63 = vld [vmem:[#allocation2 + $0xa9] ss:$8 sps:$4 sm:$0xff]   ;;  %6815 = vmatpush3.bf16.msra.mxu1 %v7422_v1 }
 0x274   :  { %v5084_v37 = vpack.c.bf16 %v7426_v35, %v7425_v63 }
 0x275   :  { %v6904_v59 = vadd.f32 %v7894_v18, %v6189_v23  ;;  %v5081_v18 = vpack.c.bf16 %v7424_v34, %v7423_v33 }
 0x277   :  { %v6190_v25 = vpop.f32.mrb[44].mxu0  ;;  %6817 = vmatmul.mubr.bf16.vlgmr.msra.gmra.mrb[32].mxu1 %v5081_v18 }
 0x278   :  { %v6191_v27 = vpop.f32.mrb[45].mxu0  ;;  %6820 = vmatprep.mubr.bf16.mxu1 %v5084_v37 }
 0x279   :  { %v6192_v28 = vadd.f32 %v6191_v27, %v6190_v25  ;;  %v6193_v29 = vpop.f32.mrb[46].mxu0 }
 0x27a   :  { %v6194_v22 = vpop.f32.mrb[47].mxu0 }
 0x27b   :  { %v6877_v26 = vadd.f32 %v7896_v32, %v6192_v28  ;;  %v6195_v31 = vadd.f32 %v6194_v22, %v6193_v29 }
 0x27d   :  { %v6895_v36 = vadd.f32 %v7898_v13, %v6195_v31 }
 0x27f   :  { %v6224_v38 = vpop.f32.mrb[48].mxu0  ;;  %6821 = vmatmul.mubr.bf16.gmra.mrb[36].mxu1 %v5087_v47  ;;  %v7432_v47 = vld [vmem:[#allocation9 + $0x8] sm:$0xff]  }
 0x280   :  { %v6225_v41 = vpop.f32.mrb[49].mxu0 }
 0x281   :  { %v6226_v57 = vadd.f32 %v6225_v41, %v6224_v38  ;;  %v6227_v43 = vpop.f32.mrb[50].mxu0 }
 0x282   :  { %v6228_v44 = vpop.f32.mrb[51].mxu0 }
 0x283   :  { %v6851_v32 = vadd.f32 %v7901_v55, %v6226_v57  ;;  %v6229_v45 = vadd.f32 %v6228_v44, %v6227_v43  ;;  %v7429_v57 = vld [vmem:[#allocation9 + $0x40] sm:$0xff]   ;;  %v7431_v44 = vld [vmem:[#allocation9 + $0x48] sm:$0xff]  }
 0x284   :  { %6520 = vmatprep.subr.bf16.mxu0 %v7429_v57  ;;  %v7430_v43 = vld [vmem:[#allocation9] sm:$0xff]  }
 0x285   :  { %v6869_v48 = vadd.f32 %v7904_v0, %v6229_v45  ;;  %6521 = vmatpush3.bf16.msra.mxu0 %v7430_v43 }
 0x286   :  { %6522 = vmatprep.subr.bf16.mxu0 %v7431_v44 }
 0x287   :  { %v6230_v49 = vpop.f32.mrb[52].mxu0 }
 0x288   :  { %v6231_v13 = vpop.f32.mrb[53].mxu0 }
 0x289   :  { %v6232_v50 = vadd.f32 %v6231_v13, %v6230_v49  ;;  %v6233_v46 = vpop.f32.mrb[54].mxu0  ;;  %v7433_v13 = vld [vmem:[#allocation9 + $0x50] sm:$0xff]   ;;  %6523 = vmatpush3.bf16.msra.mxu0 %v7432_v47 }
 0x28a   :  { %v6234_v51 = vpop.f32.mrb[55].mxu0  ;;  %6524 = vmatprep.subr.bf16.mxu0 %v7433_v13 }
 0x28b   :  { %v6842_v52 = vadd.f32 %v6841_v3, %v6232_v50  ;;  %v6235_v53 = vadd.f32 %v6234_v51, %v6233_v46 }
 0x28d   :  { %v6860_v54 = vadd.f32 %v6859_v12, %v6235_v53 }
 0x28f   :  { %v6236_v56 = vpop.f32.mrb[56].mxu0 }
 0x290   :  { %v6237_v58 = vpop.f32.mrb[57].mxu0 }
 0x291   :  { %v6238_v60 = vadd.f32 %v6237_v58, %v6236_v56  ;;  %v6239_v61 = vpop.f32.mrb[58].mxu0 }
 0x292   :  { %v6240_v62 = vpop.f32.mrb[59].mxu0 }
 0x293   :  { %v6887_v2 = vadd.f32 %v6886_v21, %v6238_v60  ;;  %v6241_v55 = vadd.f32 %v6240_v62, %v6239_v61  ;;  %v7436_v60 = vld [vmem:[#allocation9 + $0x18] sm:$0xff]  }
 0x295   :  { %v6905_v4 = vadd.f32 %v6904_v59, %v6241_v55 }
 0x297   :  { %v6242_v5 = vpop.f32.mrb[60].mxu0 }
 0x298   :  { %v6243_v6 = vpop.f32.mrb[61].mxu0 }
 0x299   :  { %v6244_v0 = vadd.f32 %v6243_v6, %v6242_v5  ;;  %v6245_v7 = vpop.f32.mrb[62].mxu0  ;;  %v7438_v6 = vld [vmem:[#allocation9 + $0x20] sm:$0xff]  }
 0x29a   :  { %v6246_v30 = vpop.f32.mrb[63].mxu0 }
 0x29b   :  { %v6878_v8 = vadd.f32 %v6877_v26, %v6244_v0  ;;  %v6247_v9 = vadd.f32 %v6246_v30, %v6245_v7  ;;  %v7439_v7 = vld [vmem:[#allocation9 + $0x68] sm:$0xff]  }
 0x29d   :  { %v6896_v11 = vadd.f32 %v6895_v36, %v6247_v9 }
 0x29f   :  { %v6276_v40 = vpop.f32.mrb[64].mxu0 }
 0x2a0   :  { %v6277_v3 = vpop.f32.mrb[65].mxu0 }
 0x2a1   :  { %v6278_v14 = vadd.f32 %v6277_v3, %v6276_v40  ;;  %v6279_v12 = vpop.f32.mrb[66].mxu0 }
 0x2a2   :  { %v6280_v15 = vpop.f32.mrb[67].mxu0 }
 0x2a3   :  { %v6852_v16 = vadd.f32 %v6851_v32, %v6278_v14  ;;  %v6281_v17 = vadd.f32 %v6280_v15, %v6279_v12 }
 0x2a5   :  { %v6870_v19 = vadd.f32 %v6869_v48, %v6281_v17 }
 0x2a7   :  { %v6282_v20 = vpop.f32.mrb[68].mxu0 }
 0x2a8   :  { %v6283_v21 = vpop.f32.mrb[69].mxu0 }
 0x2a9   :  { %v6284_v23 = vadd.f32 %v6283_v21, %v6282_v20  ;;  %v6285_v24 = vpop.f32.mrb[70].mxu0 }
 0x2aa   :  { %v6286_v59 = vpop.f32.mrb[71].mxu0 }
 0x2ab   :  { %v6843_v25 = vadd.f32 %v6842_v52, %v6284_v23  ;;  %v6287_v1 = vadd.f32 %v6286_v59, %v6285_v24  ;;  %v7434_v52 = vld [vmem:[#allocation9 + $0x10] sm:$0xff]  }
 0x2ac   :  { %6525 = vmatpush3.bf16.msra.mxu0 %v7434_v52  ;;  %v7441_v59 = vld [vmem:[#allocation9 + $0x70] sm:$0xff]  }
 0x2ad   :  { %v6861_v27 = vadd.f32 %v6860_v54, %v6287_v1  ;;  %v7435_v54 = vld [vmem:[#allocation9 + $0x58] sm:$0xff]  }
 0x2ae   :  { %6526 = vmatprep.subr.bf16.mxu0 %v7435_v54  ;;  %v7443_v1 = vld [vmem:[#allocation9 + $0x78] sm:$0xff]  }
 0x2af   :  { %v6288_v28 = vpop.f32.mrb[72].mxu0 }
 0x2b0   :  { %v6289_v29 = vpop.f32.mrb[73].mxu0  ;;  %6527 = vmatpush3.bf16.msra.mxu0 %v7436_v60 }
 0x2b1   :  { %v6290_v22 = vadd.f32 %v6289_v29, %v6288_v28  ;;  %v6291_v26 = vpop.f32.mrb[74].mxu0  ;;  %v7444_v28 = vld [vmem:[#allocation9 + $0x38] sm:$0xff]  }
 0x2b2   :  { %v6292_v31 = vpop.f32.mrb[75].mxu0 }
 0x2b3   :  { %v6888_v33 = vadd.f32 %v6887_v2, %v6290_v22  ;;  %v6293_v34 = vadd.f32 %v6292_v31, %v6291_v26  ;;  %v7437_v2 = vld [vmem:[#allocation9 + $0x60] sm:$0xff]  }
 0x2b4   :  { %6528 = vmatprep.subr.bf16.mxu0 %v7437_v2 }
 0x2b5   :  { %v6906_v63 = vadd.f32 %v6905_v4, %v6293_v34  ;;  %6529 = vmatpush3.bf16.msra.mxu0 %v7438_v6  ;;  %v5447_v34 = vld [vmem:[#allocation3 + $0x2] sm:$0x3] }
 0x2b6   :  { %6530 = vmatprep.subr.bf16.mxu0 %v7439_v7 }
 0x2b7   :  { %v6294_v35 = vpop.f32.mrb[76].mxu0 }
 0x2b8   :  { %v6295_v36 = vpop.f32.mrb[77].mxu0 }
 0x2b9   :  { %v6296_v18 = vadd.f32 %v6295_v36, %v6294_v35  ;;  %v6297_v37 = vpop.f32.mrb[78].mxu0  ;;  %v5448_v35 = vld [vmem:[#allocation3 + $0x4] sm:$0x3]  ;;  %v5449_v36 = vld [vmem:[#allocation3 + $0x6] sm:$0x3] }
 0x2ba   :  { %v6298_v38 = vpop.f32.mrb[79].mxu0 }
 0x2bb   :  { %v6879_v41 = vadd.f32 %v6878_v8, %v6296_v18  ;;  %v6299_v39 = vadd.f32 %v6298_v38, %v6297_v37 }
 0x2bd   :  { %v6897_v42 = vadd.f32 %v6896_v11, %v6299_v39 }
 0x2bf   :  { %v6328_v32 = vpop.f32.mrb[80].mxu0 }
 0x2c0   :  { %v6329_v45 = vpop.f32.mrb[81].mxu0 }
 0x2c1   :  { %v6330_v48 = vadd.f32 %v6329_v45, %v6328_v32  ;;  %v6331_v49 = vpop.f32.mrb[82].mxu0 }
 0x2c2   :  { %v6332_v50 = vpop.f32.mrb[83].mxu0 }
 0x2c3   :  { %v6853_v46 = vadd.f32 %v6852_v16, %v6330_v48  ;;  %v6333_v51 = vadd.f32 %v6332_v50, %v6331_v49  ;;  %v7440_v16 = vld [vmem:[#allocation9 + $0x28] sm:$0xff]  }
 0x2c4   :  { %6531 = vmatpush3.bf16.msra.mxu0 %v7440_v16 }
 0x2c5   :  { %v6871_v53 = vadd.f32 %v6870_v19, %v6333_v51  ;;  %6532 = vmatprep.subr.bf16.mxu0 %v7441_v59 }
 0x2c7   :  { %v6334_v56 = vpop.f32.mrb[84].mxu0 }
 0x2c8   :  { %v6335_v58 = vpop.f32.mrb[85].mxu0 }
 0x2c9   :  { %v6336_v61 = vadd.f32 %v6335_v58, %v6334_v56  ;;  %v6337_v62 = vpop.f32.mrb[86].mxu0 }
 0x2ca   :  { %v6338_v55 = vpop.f32.mrb[87].mxu0 }
 0x2cb   :  { %v6844_v4 = vadd.f32 %v6843_v25, %v6336_v61  ;;  %v6339_v5 = vadd.f32 %v6338_v55, %v6337_v62  ;;  %v7442_v25 = vld [vmem:[#allocation9 + $0x30] sm:$0xff]  }
 0x2cc   :  { %6533 = vmatpush3.bf16.msra.mxu0 %v7442_v25 }
 0x2cd   :  { %v6862_v0 = vadd.f32 %v6861_v27, %v6339_v5  ;;  %6534 = vmatprep.subr.bf16.mxu0 %v7443_v1 }
 0x2cf   :  { %v6340_v30 = vpop.f32.mrb[88].mxu0 }
 0x2d0   :  { %v6341_v8 = vpop.f32.mrb[89].mxu0  ;;  %6535 = vmatpush3.bf16.msra.mxu0 %v7444_v28 }
 0x2d1   :  { %v6342_v9 = vadd.f32 %v6341_v8, %v6340_v30  ;;  %v6343_v11 = vpop.f32.mrb[90].mxu0 }
 0x2d2   :  { %v6344_v40 = vpop.f32.mrb[91].mxu0 }
 0x2d3   :  { %v6889_v3 = vadd.f32 %v6888_v33, %v6342_v9  ;;  %v6345_v14 = vadd.f32 %v6344_v40, %v6343_v11  ;;  %v5446_v33 = vld [vmem:[#allocation3] sm:$0x3] }
 0x2d4   :  { %v5478_v18 = vcombine.low %v5446_v33, %v5447_v34 }
 0x2d5   :  { %v6907_v12 = vadd.f32 %v6906_v63, %v6345_v14 }
 0x2d6   :  { %v5486_v39 = vrot.slane %v5478_v18, %v7782_v10 }
 0x2d7   :  { %v6346_v15 = vpop.f32.mrb[92].mxu0 }
 0x2d8   :  { %v6347_v17 = vpop.f32.mrb[93].mxu0 }
 0x2d9   :  { %v6348_v19 = vadd.f32 %v6347_v17, %v6346_v15  ;;  %v6349_v20 = vpop.f32.mrb[94].mxu0 }
 0x2da   :  { %v6350_v21 = vpop.f32.mrb[95].mxu0 }
 0x2db   :  { %v6880_v23 = vadd.f32 %v6879_v41, %v6348_v19  ;;  %v6351_v24 = vadd.f32 %v6350_v21, %v6349_v20  ;;  %v5479_v41 = vcombine.low %v5448_v35, %v5449_v36 }
 0x2dd   :  { %v6898_v27 = vadd.f32 %v6897_v42, %v6351_v24  ;;  %v5493_v57 = vrot.slane %v5479_v41, %v7782_v10 }
 0x2df   :  { %v6380_v29 = vpop.f32.mrb[96].mxu0  ;;  %v5494_v44 = vcombine.low %v5486_v39, %v5493_v57 }
 0x2e0   :  { %v6381_v22 = vpop.f32.mrb[97].mxu0 }
 0x2e1   :  { %v6382_v26 = vadd.f32 %v6381_v22, %v6380_v29  ;;  %v6383_v31 = vpop.f32.mrb[98].mxu0  ;;  %5717 = vmatprep.mubr.bf16.mxu0 %v5494_v44 }
 0x2e2   :  { %v6384_v63 = vpop.f32.mrb[99].mxu0 }
 0x2e3   :  { %v6854_v37 = vadd.f32 %v6853_v46, %v6382_v26  ;;  %v6385_v38 = vadd.f32 %v6384_v63, %v6383_v31 }
 0x2e5   :  { %v6872_v42 = vadd.f32 %v6871_v53, %v6385_v38 }
 0x2e7   :  { %v6386_v43 = vpop.f32.mrb[100].mxu0 }
 0x2e8   :  { %v6387_v32 = vpop.f32.mrb[101].mxu0 }
 0x2e9   :  { %v6388_v45 = vadd.f32 %v6387_v32, %v6386_v43  ;;  %v6389_v47 = vpop.f32.mrb[102].mxu0 }
 0x2ea   :  { %v6390_v48 = vpop.f32.mrb[103].mxu0 }
 0x2eb   :  { %v6845_v49 = vadd.f32 %v6844_v4, %v6388_v45  ;;  %v6391_v13 = vadd.f32 %v6390_v48, %v6389_v47 }
 0x2ed   :  { %v6863_v50 = vadd.f32 %v6862_v0, %v6391_v13 }
 0x2ef   :  { %v6392_v51 = vpop.f32.mrb[104].mxu0 }
 0x2f0   :  { %v6393_v52 = vpop.f32.mrb[105].mxu0 }
 0x2f1   :  { %v6394_v46 = vadd.f32 %v6393_v52, %v6392_v51  ;;  %v6395_v54 = vpop.f32.mrb[106].mxu0 }
 0x2f2   :  { %v6396_v56 = vpop.f32.mrb[107].mxu0 }
 0x2f3   :  { %v6890_v58 = vadd.f32 %v6889_v3, %v6394_v46  ;;  %v6397_v60 = vadd.f32 %v6396_v56, %v6395_v54 }
 0x2f5   :  { %v6908_v53 = vadd.f32 %v6907_v12, %v6397_v60 }
 0x2f7   :  { %v6398_v61 = vpop.f32.mrb[108].mxu0 }
 0x2f8   :  { %v6399_v62 = vpop.f32.mrb[109].mxu0 }
 0x2f9   :  { %v6400_v2 = vadd.f32 %v6399_v62, %v6398_v61  ;;  %v6401_v55 = vpop.f32.mrb[110].mxu0 }
 0x2fa   :  { %v6402_v5 = vpop.f32.mrb[111].mxu0 }
 0x2fb   :  { %v6881_v6 = vadd.f32 %v6880_v23, %v6400_v2  ;;  %v6403_v7 = vadd.f32 %v6402_v5, %v6401_v55 }
 0x2fd   :  { %v6899_v30 = vadd.f32 %v6898_v27, %v6403_v7 }
 0x2ff   :  { %v6432_v8 = vpop.f32.mrb[112].mxu0 }
 0x300   :  { %v6433_v4 = vpop.f32.mrb[113].mxu0 }
 0x301   :  { %v6434_v9 = vadd.f32 %v6433_v4, %v6432_v8  ;;  %v6435_v0 = vpop.f32.mrb[114].mxu0  ;;  %v5450_v4 = vld [vmem:[#allocation3 + $0x8] sm:$0x3] }
 0x302   :  { %v6436_v11 = vpop.f32.mrb[115].mxu0 }
 0x303   :  { %v6855_v40 = vadd.f32 %v6854_v37, %v6434_v9  ;;  %v6437_v14 = vadd.f32 %v6436_v11, %v6435_v0  ;;  %v5451_v9 = vld [vmem:[#allocation3 + $0xa] sm:$0x3]  ;;  %v5452_v0 = vld [vmem:[#allocation3 + $0xc] sm:$0x3]  ;;  %v5453_v11 = vld [vmem:[#allocation3 + $0xe] sm:$0x3] }
 0x305   :  { %v6873_v15 = vadd.f32 %v6872_v42, %v6437_v14  ;;  %v6010_v14 = vld [vmem:[%s7945_s5] ss:$0 sm:$0xff] }
 0x307   :  { %v6438_v16 = vpop.f32.mrb[116].mxu0 }
 0x308   :  { %v6439_v3 = vpop.f32.mrb[117].mxu0 }
 0x309   :  { %v6440_v17 = vadd.f32 %v6439_v3, %v6438_v16  ;;  %v6441_v12 = vpop.f32.mrb[118].mxu0  ;;  %v5495_v3 = vcombine.low %v5450_v4, %v5451_v9 }
 0x30a   :  { %v6442_v19 = vpop.f32.mrb[119].mxu0 }
 0x30b   :  { %v6846_v20 = vadd.f32 %v6845_v49, %v6440_v17  ;;  %v6443_v21 = vadd.f32 %v6442_v19, %v6441_v12  ;;  %v5496_v17 = vcombine.low %v5452_v0, %v5453_v11  ;;  %v6011_v0 = vld [vmem:[%s7946_s6] ss:$0 sm:$0xff]  ;;  %s7573_s6 = smov [#allocation11]  }
 0x30c   :  { %s5771_s29 = sshll.u32 %s7573_s6, 4  ;;  %s5772_s29 = int_to_ptr.vmem [resolvable:$true] %s5771_s29 }
 0x30d   :  { %v6864_v24 = vadd.f32 %v6863_v50, %v6443_v21  ;;  %s7533_s30 = scalar_lea.vmem %s5772_s29, 1024  ;;  %p7538_p5 = scmp.lt.s32.totalorder %s5772_s29, %s5772_s29 }
 0x30e   :  { %p7534_p4 = scmp.ne.s32.totalorder %s5772_s29, %s7533_s30  ;;  %p7539_p6 = scmp.lt.s32.totalorder %s7533_s30, %s7533_s30 }
 0x30f   :  { %v6444_v59 = vpop.f32.mrb[120].mxu0 }
 0x310   :  { %v6445_v23 = vpop.f32.mrb[121].mxu0  ;;  %p7540_p7 = por %p7539_p6, %p7538_p5 }
 0x311   :  { %v6446_v25 = vadd.f32 %v6445_v23, %v6444_v59  ;;  %v6447_v1 = vpop.f32.mrb[122].mxu0 }
 0x312   :  { %v6448_v27 = vpop.f32.mrb[123].mxu0  ;;  %p7541_p8 = pnand %p7540_p7, %p7534_p4 }
 0x313   :  { %v6891_v28 = vadd.f32 %v6890_v58, %v6446_v25  ;;  %v6449_v29 = vadd.f32 %v6448_v27, %v6447_v1  ;;  %v5503_v1 = vrot.slane %v5495_v3, %v7782_v10  ;;  %v5510_v27 = vrot.slane %v5496_v17, %v7782_v10 }
 0x315   :  { %v6909_v22 = vadd.f32 %v6908_v53, %v6449_v29  ;;  %v5455_v29 = vld [vmem:[#allocation3 + $0x12] sm:$0x3] }
 0x318   :  { %v6450_v26 = vpop.f32.mrb[124].mxu0 }
 0x319   :  { %v6451_v31 = vpop.f32.mrb[125].mxu0 }
 0x31a   :  { %v6452_v33 = vadd.f32 %v6451_v31, %v6450_v26  ;;  %v6453_v34 = vpop.f32.mrb[126].mxu0  ;;  %v5456_v26 = vld [vmem:[#allocation3 + $0x14] sm:$0x3]  ;;  %v5457_v31 = vld [vmem:[#allocation3 + $0x16] sm:$0x3] }
 0x31b   :  { %v6454_v63 = vpop.f32.mrb[127].mxu0 }
 0x31c   :  { %v6882_v35 = vadd.f32 %v6881_v6, %v6452_v33  ;;  %v6455_v36 = vadd.f32 %v6454_v63, %v6453_v34 }
 0x31e   :  { %v6900_v18 = vadd.f32 %v6899_v30, %v6455_v36 }
 0x320   :  { %v6484_v37 = vpop.f32.mrb[128].mxu0 }
 0x321   :  { %v6485_v38 = vpop.f32.mrb[129].mxu0 }
 0x322   :  { %v6486_v41 = vadd.f32 %v6485_v38, %v6484_v37  ;;  %v6487_v39 = vpop.f32.mrb[130].mxu0 }
 0x323   :  { %v6488_v42 = vpop.f32.mrb[131].mxu0 }
 0x324   :  { %v6489_v57 = vadd.f32 %v6488_v42, %v6487_v39  ;;  %v6856_v43 = vadd.f32 %v6855_v40, %v6486_v41  ;;  %v5511_v41 = vcombine.low %v5503_v1, %v5510_v27  ;;  %v5513_v42 = vcombine.low %v5456_v26, %v5457_v31 }
 0x326   :  { %v6874_v44 = vadd.f32 %v6873_v15, %v6489_v57 }
 0x328   :  { %v6490_v32 = vpop.f32.mrb[132].mxu0 }
 0x329   :  { %v6491_v45 = vpop.f32.mrb[133].mxu0 }
 0x32a   :  { %v6492_v47 = vadd.f32 %v6491_v45, %v6490_v32  ;;  %v6493_v48 = vpop.f32.mrb[134].mxu0 }
 0x32b   :  { %v6494_v49 = vpop.f32.mrb[135].mxu0 }
 0x32c   :  { %v6495_v13 = vadd.f32 %v6494_v49, %v6493_v48  ;;  %v6847_v50 = vadd.f32 %v6846_v20, %v6492_v47 }
 0x32e   :  { %v6865_v51 = vadd.f32 %v6864_v24, %v6495_v13 }
 0x330   :  { %v6496_v52 = vpop.f32.mrb[136].mxu0 }
 0x331   :  { %v6497_v46 = vpop.f32.mrb[137].mxu0 }
 0x332   :  { %v6498_v54 = vadd.f32 %v6497_v46, %v6496_v52  ;;  %v6499_v56 = vpop.f32.mrb[138].mxu0  ;;  %v5458_v52 = vld [vmem:[#allocation3 + $0x18] sm:$0x3] }
 0x333   :  { %v6500_v58 = vpop.f32.mrb[139].mxu0 }
 0x334   :  { %v6501_v60 = vadd.f32 %v6500_v58, %v6499_v56  ;;  %v6892_v53 = vadd.f32 %v6891_v28, %v6498_v54  ;;  %v5454_v28 = vld [vmem:[#allocation3 + $0x10] sm:$0x3]  ;;  %v5459_v54 = vld [vmem:[#allocation3 + $0x1a] sm:$0x3]  ;;  %v5460_v56 = vld [vmem:[#allocation3 + $0x1c] sm:$0x3] }
 0x335   :  { %v5461_v58 = vld [vmem:[#allocation3 + $0x1e] sm:$0x3] }
 0x336   :  { %v6910_v61 = vadd.f32 %v6909_v22, %v6501_v60 }
 0x338   :  { %v6502_v62 = vpop.f32.mrb[140].mxu0 }
 0x339   :  { %v6503_v2 = vpop.f32.mrb[141].mxu0 }
 0x33a   :  { %v6504_v55 = vadd.f32 %v6503_v2, %v6502_v62  ;;  %v6505_v5 = vpop.f32.mrb[142].mxu0 }
 0x33b   :  { %v6506_v6 = vpop.f32.mrb[143].mxu0 }
 0x33c   :  { %v6507_v7 = vadd.f32 %v6506_v6, %v6505_v5  ;;  %v6883_v30 = vadd.f32 %v6882_v35, %v6504_v55  ;;  %v5529_v5 = vcombine.low %v5458_v52, %v5459_v54  ;;  %v5530_v6 = vcombine.low %v5460_v56, %v5461_v58 }
 0x33e   :  { %v6901_v8 = vadd.f32 %v6900_v18, %v6507_v7  ;;  %v5512_v18 = vcombine.low %v5454_v28, %v5455_v29 }
 0x34a   :  { %v6818_v40 = vpop.f32.mrb[32].mxu1 }
 0x34b   :  { %v6848_v15 = vadd.f32 %v6847_v50, %v6818_v40  ;;  %v5380_v16 = vpop.f32.mrb[33].mxu1  ;;  %v5520_v50 = vrot.slane %v5512_v18, %v7782_v10 }
 0x34c   :  { %v6857_v12 = vadd.f32 %v6856_v43, %v5380_v16  ;;  %v6819_v19 = vpop.f32.mrb[34].mxu1 }
 0x34d   :  { %v5428_v20 = vadd.f32 %v6848_v15, %v6010_v14  ;;  %v6866_v21 = vadd.f32 %v6865_v51, %v6819_v19  ;;  %v5383_v24 = vpop.f32.mrb[35].mxu1  ;;  %v5527_v51 = vrot.slane %v5513_v42, %v7782_v10 }
 0x34e   :  { %v5426_v59 = vadd.f32 %v6857_v12, %v6010_v14  ;;  %v6875_v23 = vadd.f32 %v6874_v44, %v5383_v24 }
 0x34f   :  { %v5429_v25 = vadd.f32 %v6866_v21, %v6010_v14  ;;  %v5436_v33 = vmax.f32 %v5428_v20, 0.0  ;;  %v5528_v55 = vcombine.low %v5520_v50, %v5527_v51 }
 0x350   :  { %v5427_v22 = vadd.f32 %v6875_v23, %v6010_v14  ;;  %v5434_v63 = vmax.f32 %v5426_v59, 0.0 }
 0x351   :  { %v5437_v34 = vmax.f32 %v5429_v25, 0.0 }
 0x352   :  { %v5435_v35 = vmax.f32 %v5427_v22, 0.0  ;;  %v6822_v36 = vpop.f32.mrb[36].mxu1 }
 0x353   :  { %v6884_v37 = vadd.f32 %v6883_v30, %v6822_v36  ;;  %v5396_v38 = vpop.f32.mrb[37].mxu1  ;;  %v5443_v39 = vpack.c.bf16 %v5437_v34, %v5436_v33  ;;  %v5537_v30 = vrot.slane %v5529_v5, %v7782_v10 }
 0x354   :  { %v5442_v57 = vpack.c.bf16 %v5435_v35, %v5434_v63  ;;  %v6893_v43 = vadd.f32 %v6892_v53, %v5396_v38  ;;  %v6823_v44 = vpop.f32.mrb[38].mxu1 }
 0x355   :  { %v5432_v32 = vadd.f32 %v6884_v37, %v6010_v14  ;;  %v6902_v45 = vadd.f32 %v6901_v8, %v6823_v44  ;;  %v5399_v47 = vpop.f32.mrb[39].mxu1  ;;  %v5544_v8 = vrot.slane %v5530_v6, %v7782_v10 }
 0x356   :  { %v5430_v48 = vadd.f32 %v6893_v43, %v6010_v14  ;;  %v6911_v49 = vadd.f32 %v6910_v61, %v5399_v47  ;;  %5718 = vmatmul.mubr.bf16.vlgmr.msra.gmra.mrb[144].mxu0 %v5442_v57 }
 0x357   :  { %v5433_v13 = vadd.f32 %v6902_v45, %v6010_v14  ;;  %5725 = vmatprep.mubr.bf16.mxu0 %v5511_v41  ;;  %v5440_v60 = vmax.f32 %v5432_v32, 0.0  ;;  %v5545_v4 = vcombine.low %v5537_v30, %v5544_v8 }
 0x358   :  { %v5431_v46 = vadd.f32 %v6911_v49, %v6010_v14  ;;  %v5438_v62 = vmax.f32 %v5430_v48, 0.0 }
 0x359   :  { %v5441_v53 = vmax.f32 %v5433_v13, 0.0 }
 0x35a   :  { %v5439_v2 = vmax.f32 %v5431_v46, 0.0 }
 0x35b   :  { %v5445_v61 = vpack.c.bf16 %v5441_v53, %v5440_v60 }
 0x35c   :  { %v5444_v7 = vpack.c.bf16 %v5439_v2, %v5438_v62 }
 0x35e   :  { %5726 = vmatmul.mubr.bf16.gmra.mrb[148].mxu0 %v5443_v39 }
 0x35f   :  { %5733 = vmatprep.mubr.bf16.mxu0 %v5528_v55 }
 0x366   :  { %5734 = vmatmul.mubr.bf16.gmra.mrb[152].mxu0 %v5444_v7 }
 0x367   :  { %5741 = vmatprep.mubr.bf16.mxu0 %v5545_v4 }
 0x36e   :  { %5742 = vmatmul.mubr.bf16.gmra.mrb[156].mxu0 %v5445_v61 }
 0x429   :  { %v6536_v9 = vpop.f32.mrb[144].mxu0 }
 0x42a   :  { %v6537_v11 = vpop.f32.mrb[145].mxu0 }
 0x42b   :  { %v6538_v40 = vadd.f32 %v6537_v11, %v6536_v9  ;;  %v6539_v14 = vpop.f32.mrb[146].mxu0 }
 0x42c   :  { %v6540_v15 = vpop.f32.mrb[147].mxu0 }
 0x42d   :  { %v5720_v16 = vadd.f32 %v6538_v40, %v6011_v0  ;;  %v6541_v3 = vadd.f32 %v6540_v15, %v6539_v14 }
 0x42f   :  { %v5750_v17 = vmax.f32 %v5720_v16, 0.0  ;;  %v5723_v12 = vadd.f32 %v6541_v3, %v6011_v0 }
 0x431   :  { %5758 = vst [vmem:[#allocation11] sm:$0xff] %v5750_v17  ;;  %v5751_v19 = vmax.f32 %v5723_v12, 0.0  ;;  %v6542_v10 = vpop.f32.mrb[148].mxu0 }
 0x432   :  { %v6543_v20 = vpop.f32.mrb[149].mxu0 }
 0x433   :  { %5759 = vst [vmem:[#allocation11 + $0x8] sm:$0xff] %v5751_v19  ;;  %v6544_v21 = vadd.f32 %v6543_v20, %v6542_v10  ;;  %v6545_v24 = vpop.f32.mrb[150].mxu0 }
 0x434   :  { %v6546_v59 = vpop.f32.mrb[151].mxu0 }
 0x435   :  { %v5728_v23 = vadd.f32 %v6544_v21, %v6011_v0  ;;  %v6547_v25 = vadd.f32 %v6546_v59, %v6545_v24 }
 0x437   :  { %v5752_v1 = vmax.f32 %v5728_v23, 0.0  ;;  %v5731_v27 = vadd.f32 %v6547_v25, %v6011_v0 }
 0x439   :  { %5760 = vst [vmem:[#allocation11 + $0x10] sm:$0xff] %v5752_v1  ;;  %v5753_v28 = vmax.f32 %v5731_v27, 0.0  ;;  %v6548_v29 = vpop.f32.mrb[152].mxu0 }
 0x43a   :  { %v6549_v22 = vpop.f32.mrb[153].mxu0 }
 0x43b   :  { %5761 = vst [vmem:[#allocation11 + $0x18] sm:$0xff] %v5753_v28  ;;  %v6550_v26 = vadd.f32 %v6549_v22, %v6548_v29  ;;  %v6551_v31 = vpop.f32.mrb[154].mxu0 }
 0x43c   :  { %v6552_v33 = vpop.f32.mrb[155].mxu0 }
 0x43d   :  { %v5736_v34 = vadd.f32 %v6550_v26, %v6011_v0  ;;  %v6553_v63 = vadd.f32 %v6552_v33, %v6551_v31 }
 0x43f   :  { %v5754_v35 = vmax.f32 %v5736_v34, 0.0  ;;  %v5739_v36 = vadd.f32 %v6553_v63, %v6011_v0 }
 0x441   :  { %5762 = vst [vmem:[#allocation11 + $0x20] sm:$0xff] %v5754_v35  ;;  %v5755_v18 = vmax.f32 %v5739_v36, 0.0  ;;  %v6554_v37 = vpop.f32.mrb[156].mxu0 }
 0x442   :  { %v6555_v38 = vpop.f32.mrb[157].mxu0 }
 0x443   :  { %5763 = vst [vmem:[#allocation11 + $0x28] sm:$0xff] %v5755_v18  ;;  %v6556_v41 = vadd.f32 %v6555_v38, %v6554_v37  ;;  %v6557_v39 = vpop.f32.mrb[158].mxu0 }
 0x444   :  { %v6558_v42 = vpop.f32.mrb[159].mxu0 }
 0x445   :  { %v5744_v57 = vadd.f32 %v6556_v41, %v6011_v0  ;;  %v6559_v43 = vadd.f32 %v6558_v42, %v6557_v39 }
 0x447   :  { %v5756_v44 = vmax.f32 %v5744_v57, 0.0  ;;  %v5747_v32 = vadd.f32 %v6559_v43, %v6011_v0 }
 0x449   :  { %5764 = vst [vmem:[#allocation11 + $0x30] sm:$0xff] %v5756_v44  ;;  %v5757_v45 = vmax.f32 %v5747_v32, 0.0 }
 0x44b   :  { %5765 = vst [vmem:[#allocation11 + $0x38] sm:$0xff] %v5757_v45 }
 0x44c   :  { %7544 = shalt.err (!%p7541_p8)
}
 0x44d   :  { %s7545_s10 = scalar_lea.hbm %s7947_s7, 1024 }
 0x44e   :  { %p7546_p9 = scmp.ne.s32.totalorder %s7947_s7, %s7545_s10  ;;  %p7549_p10 = scmp.lt.u32.totalorder %s7545_s10, %s7947_s7 }
 0x450   :  { %p7551_p11 = pnand %p7549_p10, %p7546_p9 }
 0x452   :  { %7554 = shalt.err (!%p7551_p11)
}
 0x453   :  { %s7574_s18 = smov 128   ;;  %s7575_s0 = smov 8  }
 0x454   :  { %5777 = dma.vmem_to_hbm [thread:$0]  %s5772_s29, 1024, %s7947_s7, [#allocation5], %s7574_s18, %s7574_s18, %s7575_s0  }
 0x455   :  { %7561 = dma.done.wait [#allocation5], 1024  }
 0x456   :  { %7562 = vsyncadd [#allocation5], 4294966272 }
 0x457   :  { %5781 = vsyncpa [#allocation4], 1 }
 0x458   :  { %5782 = vsyncpa [#allocation7], 1 }
 0x459   :  { %5783 = vsyncpa [#allocation10], 1 }
 0x45a   :  { %5784 = vsyncpa [#allocation5], 1 }

</bundles_post_ra>
